<compile_context>
chip_gen: v7x
topology: tpu7x:2x2x1
jax: 0.10.0
libtpu: 0.0.40
codegen_flags: <defaults>
</compile_context>

<pallas_src>
import functools

import jax
import jax.numpy as jnp
from jax.experimental import pallas as pl
from jax.experimental.pallas import tpu as pltpu


# ----------------------------------------------------------------------------
# helpers
# ----------------------------------------------------------------------------
def _round_up(x, m):
    return (x + m - 1) // m * m


def _pick_vmem_limit_bytes():
    """Per-generation VMEM budget: ~48 MiB on v7x (64 MiB/TC), 96 MiB on v5e/v6e."""
    try:
        cap = int(pltpu.get_tpu_info().vmem_capacity_bytes)
    except Exception:
        cap = 64 * 1024 * 1024
    return max(32 * 1024 * 1024, min((cap * 3) // 4, 96 * 1024 * 1024))


_VMEM_LIMIT_BYTES = _pick_vmem_limit_bytes()

# Tile caps: 2 bf16 input blocks x 2 buffers + bf16 output + f32 accumulator
# stays well under the scoped-VMEM budget on every generation (incl. v7x).
_TM_MAX, _TK_MAX, _TN_MAX = 256, 512, 256


def _pick_tk_tn(K, N):
    tk = min(_round_up(K, 128), _TK_MAX)
    tn = min(_round_up(N, 128), _TN_MAX)
    return tk, tn


# ----------------------------------------------------------------------------
# Tiled fused matmul + bias + activation Pallas kernel (hot path of every layer)
# ----------------------------------------------------------------------------
def _mm_bias_act_kernel(a_ref, b_ref, bias_ref, o_ref, acc_ref, *, act):
    k = pl.program_id(2)

    @pl.when(k == 0)
    def _():
        acc_ref[...] = jnp.zeros_like(acc_ref)

    acc_ref[...] += jnp.dot(a_ref[...], b_ref[...],
                            preferred_element_type=jnp.float32)

    @pl.when(k == pl.num_programs(2) - 1)
    def _():
        acc = acc_ref[...] + bias_ref[...]           # (1, tn) broadcast over rows
        if act == "relu":
            acc = jnp.maximum(acc, 0.0)
        elif act == "leaky_relu":                    # PyTorch default slope 0.01
            acc = jnp.where(acc >= 0.0, acc, 0.01 * acc)
        elif act == "sigmoid":
            e = jnp.exp(jnp.minimum(-acc, 60.0))     # exp on the EUP
            acc = pl.reciprocal(1.0 + e, approx=True)
            acc = jnp.clip(acc, 0.0, 1.0)
        o_ref[...] = acc.astype(o_ref.dtype)


def matmul_bias_act(a, w_pad, b_pad, meta, act, out_dtype=jnp.float32):
    """a: (M, K) activation; w_pad: (Kp, Np) pre-padded bf16 weight;
    b_pad: (1, Np) f32 bias.  Returns (M, meta['n']) with fused activation."""
    M, K = a.shape
    assert K == meta["k"], (K, meta["k"])
    Kp, Np = w_pad.shape
    tk, tn = meta["tk"], meta["tn"]

    tm = min(_round_up(M, 8), _TM_MAX)
    Mp = _round_up(M, tm)

    a_p = a if a.dtype == jnp.bfloat16 else a.astype(jnp.bfloat16)
    if Mp != M or Kp != K:                           # skip no-op pads
        a_p = jnp.pad(a_p, ((0, Mp - M), (0, Kp - K)))

    out = pl.pallas_call(
        functools.partial(_mm_bias_act_kernel, act=act),
        out_shape=jax.ShapeDtypeStruct((Mp, Np), out_dtype),
        grid=(Mp // tm, Np // tn, Kp // tk),
        in_specs=[
            pl.BlockSpec((tm, tk), lambda i, j, k: (i, k)),
            pl.BlockSpec((tk, tn), lambda i, j, k: (k, j)),
            pl.BlockSpec((1, tn), lambda i, j, k: (0, j)),
        ],
        out_specs=pl.BlockSpec((tm, tn), lambda i, j, k: (i, j)),
        scratch_shapes=[pltpu.VMEM((tm, tn), jnp.float32)],
        compiler_params=pltpu.CompilerParams(
            dimension_semantics=("parallel", "parallel", "arbitrary"),
            vmem_limit_bytes=_VMEM_LIMIT_BYTES),
    )(a_p, w_pad, b_pad)

    if Mp == M and Np == meta["n"]:
        return out
    return out[:M, :meta["n"]]


# ----------------------------------------------------------------------------
# One-time weight packing (runs once, outside the jitted forward)
# ----------------------------------------------------------------------------
def _prep_mm_weights(w_kn, b_n):
    """Pad + cast a (K, N) weight and (N,) bias once for the tiled kernel."""
    K, N = int(w_kn.shape[0]), int(w_kn.shape[1])
    tk, tn = _pick_tk_tn(K, N)
    Kp, Np = _round_up(K, tk), _round_up(N, tn)
    w_pad = jnp.zeros((Kp, Np), jnp.bfloat16).at[:K, :N].set(w_kn.astype(jnp.bfloat16))
    b_pad = jnp.zeros((1, Np), jnp.float32).at[0, :N].set(b_n.astype(jnp.float32))
    return (w_pad, b_pad), {"k": K, "n": N, "tk": tk, "tn": tn}


def _prep_linear(w_oi, b):
    return _prep_mm_weights(jnp.transpose(w_oi), b)


def _prep_conv(w_oihw, b):
    cout, cin, kh, kw = (int(s) for s in w_oihw.shape)
    # match im2col layout: tap-major (kh, kw), cin-minor; cout in lanes
    w_mat = jnp.transpose(w_oihw, (2, 3, 1, 0)).reshape(kh * kw * cin, cout)
    arrs, meta = _prep_mm_weights(w_mat, b)
    meta.update(kh=kh, kw=kw)
    return arrs, meta


def _prep_deconv_k4s2p1(w_iohw, b):
    """ConvTranspose2d(k=4, s=2, p=1) via sub-pixel decomposition.

    out[2m+ph, 2n+pw] needs only a 2x2 subset of the 4x4 kernel applied to a
    2x2 input neighbourhood; all four phases fit inside one 3x3 im2col window,
    so the whole layer becomes one matmul against a (9*cin, 4*cout) weight.
    """
    cin, cout, kh, kw = (int(s) for s in w_iohw.shape)
    assert kh == 4 and kw == 4
    # phase -> ((tap index in 3x3 window, kernel index), ...); taps cover m-1, m, m+1
    tap_map = {0: ((0, 3), (1, 1)), 1: ((1, 2), (2, 0))}
    wbig = jnp.zeros((3, 3, cin, 2, 2, cout), jnp.float32)
    for ph in (0, 1):
        for (ty, ky) in tap_map[ph]:
            for pw_ in (0, 1):
                for (tx, kx) in tap_map[pw_]:
                    wbig = wbig.at[ty, tx, :, ph, pw_, :].set(w_iohw[:, :, ky, kx])
    w_mat = wbig.reshape(9 * cin, 4 * cout)
    b4 = jnp.tile(b.astype(jnp.float32), 4)          # column order (ph, pw, cout)
    arrs, meta = _prep_mm_weights(w_mat, b4)
    meta.update(cout=cout)
    return arrs, meta


# ----------------------------------------------------------------------------
# JAX glue: im2col + layer wrappers (activations stay NHWC / bf16)
# ----------------------------------------------------------------------------
# TODO(synk): im2col patches are still materialized by XLA before the matmul; a
# fully in-kernel im2col (taps folded into the K grid axis / manual DMA) would
# remove that extra HBM round-trip.
def _im2col(x_nhwc, kh, kw, stride, pad):
    x = jnp.pad(x_nhwc, ((0, 0), (pad, pad), (pad, pad), (0, 0)))
    B, Hp, Wp, C = x.shape
    Ho = (Hp - kh) // stride + 1
    Wo = (Wp - kw) // stride + 1
    taps = []
    for i in range(kh):
        for j in range(kw):
            taps.append(x[:, i:i + stride * Ho:stride, j:j + stride * Wo:stride, :])
    p = jnp.stack(taps, axis=3)                      # (B, Ho, Wo, kh*kw, C)
    return p.reshape(B * Ho * Wo, kh * kw * C), (B, Ho, Wo)


def conv2d(x_nhwc, arrs, meta, stride, pad, act, out_dtype=jnp.bfloat16):
    a, (B, Ho, Wo) = _im2col(x_nhwc, meta["kh"], meta["kw"], stride, pad)
    y = matmul_bias_act(a, arrs[0], arrs[1], meta, act, out_dtype)
    return y.reshape(B, Ho, Wo, meta["n"])


def conv_transpose_k4s2p1(x_nhwc, arrs, meta, act, out_dtype=jnp.bfloat16):
    B, H, W, _ = x_nhwc.shape
    a, _ = _im2col(x_nhwc, 3, 3, stride=1, pad=1)
    y = matmul_bias_act(a, arrs[0], arrs[1], meta, act, out_dtype)
    cout = meta["cout"]
    y = y.reshape(B, H, W, 2, 2, cout)               # (b, m, n, ph, pw, c)
    return jnp.transpose(y, (0, 1, 3, 2, 4, 5)).reshape(B, 2 * H, 2 * W, cout)


# ----------------------------------------------------------------------------
# Model = Encoder + Decoder
# ----------------------------------------------------------------------------
def init_params(key, z_dim, n_channel, size_):
    def nrm(key, shape, scale=0.05):
        return scale * jax.random.normal(key, shape, dtype=jnp.float32)

    ks = jax.random.split(key, 20)
    nc = n_channel
    p = {}
    # Encoder
    p["e_c1_w"] = nrm(ks[0], (64 * nc, 3, 4, 4));         p["e_c1_b"] = nrm(ks[1], (64 * nc,))
    p["e_c2_w"] = nrm(ks[2], (128 * nc, 64 * nc, 4, 4));  p["e_c2_b"] = nrm(ks[3], (128 * nc,))
    p["e_c3_w"] = nrm(ks[4], (256 * nc, 128 * nc, 4, 4)); p["e_c3_b"] = nrm(ks[5], (256 * nc,))
    p["e_f1_w"] = nrm(ks[6], (1024 * nc, 256 * nc * size_ ** 2), 0.02)
    p["e_f1_b"] = nrm(ks[7], (1024 * nc,))
    p["e_f2_w"] = nrm(ks[8], (z_dim, 1024 * nc), 0.02);   p["e_f2_b"] = nrm(ks[9], (z_dim,))
    # Decoder
    p["d_f1_w"] = nrm(ks[10], (1024 * nc, z_dim), 0.02);  p["d_f1_b"] = nrm(ks[11], (1024 * nc,))
    p["d_f2_w"] = nrm(ks[12], (256 * size_ ** 2 * nc, 1024 * nc), 0.02)
    p["d_f2_b"] = nrm(ks[13], (256 * size_ ** 2 * nc,))
    p["d_t1_w"] = nrm(ks[14], (256 * nc, 128 * nc, 4, 4)); p["d_t1_b"] = nrm(ks[15], (128 * nc,))
    p["d_t2_w"] = nrm(ks[16], (128 * nc, 64 * nc, 4, 4));  p["d_t2_b"] = nrm(ks[17], (64 * nc,))
    p["d_t3_w"] = nrm(ks[18], (64 * nc, nc, 4, 4));        p["d_t3_b"] = nrm(ks[19], (nc,))
    return p


def prepare_params(p):
    """Hoist all weight transposes / phase packing / pads / bf16 casts out of
    the jitted forward.  Returns (array pytree, static per-layer metadata)."""
    arrs, meta = {}, {}
    arrs["e_c1"], meta["e_c1"] = _prep_conv(p["e_c1_w"], p["e_c1_b"])
    arrs["e_c2"], meta["e_c2"] = _prep_conv(p["e_c2_w"], p["e_c2_b"])
    arrs["e_c3"], meta["e_c3"] = _prep_conv(p["e_c3_w"], p["e_c3_b"])
    arrs["e_f1"], meta["e_f1"] = _prep_linear(p["e_f1_w"], p["e_f1_b"])
    arrs["e_f2"], meta["e_f2"] = _prep_linear(p["e_f2_w"], p["e_f2_b"])
    arrs["d_f1"], meta["d_f1"] = _prep_linear(p["d_f1_w"], p["d_f1_b"])
    arrs["d_f2"], meta["d_f2"] = _prep_linear(p["d_f2_w"], p["d_f2_b"])
    arrs["d_t1"], meta["d_t1"] = _prep_deconv_k4s2p1(p["d_t1_w"], p["d_t1_b"])
    arrs["d_t2"], meta["d_t2"] = _prep_deconv_k4s2p1(p["d_t2_w"], p["d_t2_b"])
    arrs["d_t3"], meta["d_t3"] = _prep_deconv_k4s2p1(p["d_t3_w"], p["d_t3_b"])
    return arrs, meta


def model_forward(x_nchw, arrs, *, meta, n_channel, size_):
    nc = n_channel
    B = x_nchw.shape[0]
    x = jnp.transpose(x_nchw, (0, 2, 3, 1)).astype(jnp.bfloat16)   # NCHW -> NHWC

    # ---- Encoder ----
    h = conv2d(x, arrs["e_c1"], meta["e_c1"], 2, 1, "leaky_relu")
    h = conv2d(h, arrs["e_c2"], meta["e_c2"], 2, 1, "leaky_relu")
    h = conv2d(h, arrs["e_c3"], meta["e_c3"], 2, 1, "leaky_relu")
    flat = jnp.transpose(h, (0, 3, 1, 2)).reshape(B, -1)           # PyTorch NCHW flatten
    h = matmul_bias_act(flat, *arrs["e_f1"], meta["e_f1"], "leaky_relu", jnp.bfloat16)
    z = matmul_bias_act(h, *arrs["e_f2"], meta["e_f2"], "none", jnp.float32)

    # ---- Decoder ----
    d = matmul_bias_act(z, *arrs["d_f1"], meta["d_f1"], "relu", jnp.bfloat16)
    d = matmul_bias_act(d, *arrs["d_f2"], meta["d_f2"], "relu", jnp.bfloat16)
    d = d.reshape(B, 256 * nc, size_, size_)                       # Reshape (NCHW semantics)
    d = jnp.transpose(d, (0, 2, 3, 1))                             # -> NHWC
    d = conv_transpose_k4s2p1(d, arrs["d_t1"], meta["d_t1"], "relu")
    d = conv_transpose_k4s2p1(d, arrs["d_t2"], meta["d_t2"], "relu")
    d = conv_transpose_k4s2p1(d, arrs["d_t3"], meta["d_t3"], "sigmoid", jnp.float32)
    x_rec = jnp.transpose(d, (0, 3, 1, 2)).astype(jnp.float32)     # back to NCHW
    return z, x_rec


# ----------------------------------------------------------------------------
# Pure-JAX f32 reference (numerical validation only)
# ----------------------------------------------------------------------------
def _ref_forward(x_nchw, p, n_channel, size_):
    nc = n_channel
    lrelu = lambda t: jnp.where(t >= 0, t, 0.01 * t)
    relu = lambda t: jnp.maximum(t, 0.0)

    def conv(x, w, b, s, pad):
        y = jax.lax.conv_general_dilated(
            x, w, (s, s), [(pad, pad), (pad, pad)],
            dimension_numbers=("NCHW", "OIHW", "NCHW"))
        return y + b[None, :, None, None]

    def deconv(x, w, b, s, pad):
        kh = w.shape[2]
        w_conv = jnp.transpose(w[:, :, ::-1, ::-1], (1, 0, 2, 3))
        y = jax.lax.conv_general_dilated(
            x, w_conv, (1, 1), [(kh - 1 - pad,) * 2] * 2,
            lhs_dilation=(s, s),
            dimension_numbers=("NCHW", "OIHW", "NCHW"))
        return y + b[None, :, None, None]

    B = x_nchw.shape[0]
    h = lrelu(conv(x_nchw, p["e_c1_w"], p["e_c1_b"], 2, 1))
    h = lrelu(conv(h, p["e_c2_w"], p["e_c2_b"], 2, 1))
    h = lrelu(conv(h, p["e_c3_w"], p["e_c3_b"], 2, 1))
    h = h.reshape(B, -1)
    h = lrelu(h @ p["e_f1_w"].T + p["e_f1_b"])
    z = h @ p["e_f2_w"].T + p["e_f2_b"]
    d = relu(z @ p["d_f1_w"].T + p["d_f1_b"])
    d = relu(d @ p["d_f2_w"].T + p["d_f2_b"])
    d = d.reshape(B, 256 * nc, size_, size_)
    d = relu(deconv(d, p["d_t1_w"], p["d_t1_b"], 2, 1))
    d = relu(deconv(d, p["d_t2_w"], p["d_t2_b"], 2, 1))
    d = jax.nn.sigmoid(deconv(d, p["d_t3_w"], p["d_t3_b"], 2, 1))
    return z, d


if __name__ == "__main__":
    Z_DIM, N_CHANNEL, SIZE_ = 8, 1, 2
    BATCH = 2
    H = W = 8 * SIZE_  # three stride-2 convs must land on SIZE_ x SIZE_

    key = jax.random.PRNGKey(0)
    k_param, k_x = jax.random.split(key)
    params = init_params(k_param, Z_DIM, N_CHANNEL, SIZE_)
    x = jax.random.normal(k_x, (BATCH, 3, H, W), dtype=jnp.float32)

    arrs, meta = prepare_params(params)   # one-time weight packing (bf16, padded)
    fwd = jax.jit(functools.partial(model_forward, meta=meta,
                                    n_channel=N_CHANNEL, size_=SIZE_))
    z, x_rec = fwd(x, arrs)
    jax.block_until_ready((z, x_rec))

    assert z.shape == (BATCH, Z_DIM)
    assert x_rec.shape == (BATCH, N_CHANNEL, H, W)
    assert bool(jnp.all(jnp.isfinite(z))) and bool(jnp.all(jnp.isfinite(x_rec)))
    assert bool(jnp.all((x_rec >= 0.0) & (x_rec <= 1.0)))  # sigmoid output

    # numerical check against a pure-JAX f32 reference (bf16-MXU tolerance)
    z_ref, xr_ref = _ref_forward(x, params, N_CHANNEL, SIZE_)
    err_x = float(jnp.max(jnp.abs(x_rec - xr_ref)))
    err_z = float(jnp.max(jnp.abs(z - z_ref))) / (float(jnp.max(jnp.abs(z_ref))) + 1e-6)
    assert err_x < 5e-2, f"x_rec max abs err {err_x}"
    assert err_z < 5e-2, f"z max rel err {err_z}"

    print("KERNEL_OK")
</pallas_src>

<mosaic_0001>
module attributes {stable_mosaic.version = 11 : i64} {
  func.func @_mm_bias_act_kernel(%arg0: i32, %arg1: i32, %arg2: i32, %arg3: memref<128x128xbf16, #tpu.memory_space<vmem>>, %arg4: memref<128x128xbf16, #tpu.memory_space<vmem>>, %arg5: memref<1x128xf32, #tpu.memory_space<vmem>>, %arg6: memref<128x128xbf16, #tpu.memory_space<vmem>>, %arg7: memref<128x128xf32, #tpu.memory_space<vmem>>) attributes {dimension_semantics = [#tpu.dimension_semantics<parallel>, #tpu.dimension_semantics<parallel>, #tpu.dimension_semantics<arbitrary>], iteration_bounds = array<i64: 1, 1, 1>, scalar_prefetch = 0 : i64, scratch_operands = 1 : i64, tpu.core_type = #tpu.core_type<tc>, window_params = [{transform_indices = @transform_0, window_bounds = array<i64: 128, 128>}, {transform_indices = @transform_1, window_bounds = array<i64: 128, 128>}, {transform_indices = @transform_2, window_bounds = array<i64: 1, 128>}, {transform_indices = @transform_3, window_bounds = array<i64: 128, 128>}]} {
    %c0_i32 = arith.constant 0 : i32
    %0 = arith.cmpi eq, %arg2, %c0_i32 : i32
    %1 = arith.extui %0 : i1 to i32
    %c0_i32_0 = arith.constant 0 : i32
    %2 = arith.cmpi ne, %1, %c0_i32_0 : i32
    scf.if %2 {
      %cst_10 = arith.constant 0.000000e+00 : f32
      %12 = vector.broadcast %cst_10 : f32 to vector<128x128xf32>
      %c0_11 = arith.constant 0 : index
      %c0_12 = arith.constant 0 : index
      %13 = vector.load %arg7[%c0_11, %c0_12] : memref<128x128xf32, #tpu.memory_space<vmem>>, vector<128x128xf32>
      tpu.vector_store %arg7[%c0_11, %c0_12], %12 {strides = array<i32>} : memref<128x128xf32, #tpu.memory_space<vmem>>, vector<128x128xf32>,
    } else {
    }
    %c0 = arith.constant 0 : index
    %c0_1 = arith.constant 0 : index
    %3 = vector.load %arg7[%c0, %c0_1] : memref<128x128xf32, #tpu.memory_space<vmem>>, vector<128x128xf32>
    %c0_2 = arith.constant 0 : index
    %c0_3 = arith.constant 0 : index
    %4 = vector.load %arg3[%c0_2, %c0_3] : memref<128x128xbf16, #tpu.memory_space<vmem>>, vector<128x128xbf16>
    %c0_4 = arith.constant 0 : index
    %c0_5 = arith.constant 0 : index
    %5 = vector.load %arg4[%c0_4, %c0_5] : memref<128x128xbf16, #tpu.memory_space<vmem>>, vector<128x128xbf16>
    %cst = arith.constant dense<0.000000e+00> : vector<128x128xf32>
    %6 = tpu.matmul %4, %5, %cst {dimension_numbers = #tpu.dot_dimension_numbers<[1], [0], [0], [1], [0, 0, 1, 1], [], []>} : vector<128x128xbf16>, vector<128x128xbf16>, vector<128x128xf32> -> vector<128x128xf32>
    %7 = arith.addf %3, %6 : vector<128x128xf32>
    %c0_6 = arith.constant 0 : index
    %c0_7 = arith.constant 0 : index
    %8 = vector.load %arg7[%c0_6, %c0_7] : memref<128x128xf32, #tpu.memory_space<vmem>>, vector<128x128xf32>
    tpu.vector_store %arg7[%c0_6, %c0_7], %7 {strides = array<i32>} : memref<128x128xf32, #tpu.memory_space<vmem>>, vector<128x128xf32>,
    %c0_i32_8 = arith.constant 0 : i32
    %9 = arith.cmpi eq, %arg2, %c0_i32_8 : i32
    %10 = arith.extui %9 : i1 to i32
    %c0_i32_9 = arith.constant 0 : i32
    %11 = arith.cmpi ne, %10, %c0_i32_9 : i32
    scf.if %11 {
      %c0_10 = arith.constant 0 : index
      %c0_11 = arith.constant 0 : index
      %12 = vector.load %arg7[%c0_10, %c0_11] : memref<128x128xf32, #tpu.memory_space<vmem>>, vector<128x128xf32>
      %c0_12 = arith.constant 0 : index
      %c0_13 = arith.constant 0 : index
      %13 = vector.load %arg5[%c0_12, %c0_13] : memref<1x128xf32, #tpu.memory_space<vmem>>, vector<1x128xf32>
      %14 = vector.broadcast %13 : vector<1x128xf32> to vector<128x128xf32>
      %15 = arith.addf %12, %14 : vector<128x128xf32>
      %cst_14 = arith.constant 0.000000e+00 : f32
      %16 = vector.broadcast %cst_14 : f32 to vector<128x128xf32>
      %17 = arith.cmpf oge, %15, %16 : vector<128x128xf32>
      %cst_15 = arith.constant 0.00999999977 : f32
      %18 = vector.broadcast %cst_15 : f32 to vector<128x128xf32>
      %19 = arith.mulf %18, %15 : vector<128x128xf32>
      %20 = arith.select %17, %15, %19 : vector<128x128xi1>, vector<128x128xf32>
      %21 = arith.truncf %20 : vector<128x128xf32> to vector<128x128xbf16>
      %c0_16 = arith.constant 0 : index
      %c0_17 = arith.constant 0 : index
      %22 = vector.load %arg6[%c0_16, %c0_17] : memref<128x128xbf16, #tpu.memory_space<vmem>>, vector<128x128xbf16>
      tpu.vector_store %arg6[%c0_16, %c0_17], %21 {strides = array<i32>} : memref<128x128xbf16, #tpu.memory_space<vmem>>, vector<128x128xbf16>,
    } else {
    }
    return
  }
  func.func @transform_0(%arg0: i32, %arg1: i32, %arg2: i32) -> (i32, i32) {
    %c0_i32 = arith.constant 0 : i32
    return %arg0, %arg2 : i32, i32
  }
  func.func @transform_1(%arg0: i32, %arg1: i32, %arg2: i32) -> (i32, i32) {
    %c0_i32 = arith.constant 0 : i32
    return %arg2, %arg1 : i32, i32
  }
  func.func @transform_2(%arg0: i32, %arg1: i32, %arg2: i32) -> (i32, i32) {
    %c0_i32 = arith.constant 0 : i32
    %c0_i32_0 = arith.constant 0 : i32
    return %c0_i32, %arg1 : i32, i32
  }
  func.func @transform_3(%arg0: i32, %arg1: i32, %arg2: i32) -> (i32, i32) {
    %c0_i32 = arith.constant 0 : i32
    return %arg0, %arg1 : i32, i32
  }
}

module attributes {stable_mosaic.version = 11 : i64} {
  func.func @_mm_bias_act_kernel(%arg0: i32, %arg1: i32, %arg2: i32, %arg3: memref<32x512xbf16, #tpu.memory_space<vmem>>, %arg4: memref<512x128xbf16, #tpu.memory_space<vmem>>, %arg5: memref<1x128xf32, #tpu.memory_space<vmem>>, %arg6: memref<32x128xbf16, #tpu.memory_space<vmem>>, %arg7: memref<32x128xf32, #tpu.memory_space<vmem>>) attributes {dimension_semantics = [#tpu.dimension_semantics<parallel>, #tpu.dimension_semantics<parallel>, #tpu.dimension_semantics<arbitrary>], iteration_bounds = array<i64: 1, 1, 2>, scalar_prefetch = 0 : i64, scratch_operands = 1 : i64, tpu.core_type = #tpu.core_type<tc>, window_params = [{transform_indices = @transform_0, window_bounds = array<i64: 32, 512>}, {transform_indices = @transform_1, window_bounds = array<i64: 512, 128>}, {transform_indices = @transform_2, window_bounds = array<i64: 1, 128>}, {transform_indices = @transform_3, window_bounds = array<i64: 32, 128>}]} {
    %c0_i32 = arith.constant 0 : i32
    %0 = arith.cmpi eq, %arg2, %c0_i32 : i32
    %1 = arith.extui %0 : i1 to i32
    %c0_i32_0 = arith.constant 0 : i32
    %2 = arith.cmpi ne, %1, %c0_i32_0 : i32
    scf.if %2 {
      %cst_9 = arith.constant 0.000000e+00 : f32
      %12 = vector.broadcast %cst_9 : f32 to vector<32x128xf32>
      %c0_10 = arith.constant 0 : index
      %c0_11 = arith.constant 0 : index
      %13 = vector.load %arg7[%c0_10, %c0_11] : memref<32x128xf32, #tpu.memory_space<vmem>>, vector<32x128xf32>
      tpu.vector_store %arg7[%c0_10, %c0_11], %12 {strides = array<i32>} : memref<32x128xf32, #tpu.memory_space<vmem>>, vector<32x128xf32>,
    } else {
    }
    %c0 = arith.constant 0 : index
    %c0_1 = arith.constant 0 : index
    %3 = vector.load %arg7[%c0, %c0_1] : memref<32x128xf32, #tpu.memory_space<vmem>>, vector<32x128xf32>
    %c0_2 = arith.constant 0 : index
    %c0_3 = arith.constant 0 : index
    %4 = vector.load %arg3[%c0_2, %c0_3] : memref<32x512xbf16, #tpu.memory_space<vmem>>, vector<32x512xbf16>
    %c0_4 = arith.constant 0 : index
    %c0_5 = arith.constant 0 : index
    %5 = vector.load %arg4[%c0_4, %c0_5] : memref<512x128xbf16, #tpu.memory_space<vmem>>, vector<512x128xbf16>
    %cst = arith.constant dense<0.000000e+00> : vector<32x128xf32>
    %6 = tpu.matmul %4, %5, %cst {dimension_numbers = #tpu.dot_dimension_numbers<[1], [0], [0], [1], [0, 0, 1, 1], [], []>} : vector<32x512xbf16>, vector<512x128xbf16>, vector<32x128xf32> -> vector<32x128xf32>
    %7 = arith.addf %3, %6 : vector<32x128xf32>
    %c0_6 = arith.constant 0 : index
    %c0_7 = arith.constant 0 : index
    %8 = vector.load %arg7[%c0_6, %c0_7] : memref<32x128xf32, #tpu.memory_space<vmem>>, vector<32x128xf32>
    tpu.vector_store %arg7[%c0_6, %c0_7], %7 {strides = array<i32>} : memref<32x128xf32, #tpu.memory_space<vmem>>, vector<32x128xf32>,
    %c1_i32 = arith.constant 1 : i32
    %9 = arith.cmpi eq, %arg2, %c1_i32 : i32
    %10 = arith.extui %9 : i1 to i32
    %c0_i32_8 = arith.constant 0 : i32
    %11 = arith.cmpi ne, %10, %c0_i32_8 : i32
    scf.if %11 {
      %c0_9 = arith.constant 0 : index
      %c0_10 = arith.constant 0 : index
      %12 = vector.load %arg7[%c0_9, %c0_10] : memref<32x128xf32, #tpu.memory_space<vmem>>, vector<32x128xf32>
      %c0_11 = arith.constant 0 : index
      %c0_12 = arith.constant 0 : index
      %13 = vector.load %arg5[%c0_11, %c0_12] : memref<1x128xf32, #tpu.memory_space<vmem>>, vector<1x128xf32>
      %14 = vector.broadcast %13 : vector<1x128xf32> to vector<32x128xf32>
      %15 = arith.addf %12, %14 : vector<32x128xf32>
      %cst_13 = arith.constant 0.000000e+00 : f32
      %16 = vector.broadcast %cst_13 : f32 to vector<32x128xf32>
      %17 = arith.cmpf oge, %15, %16 : vector<32x128xf32>
      %cst_14 = arith.constant 0.00999999977 : f32
      %18 = vector.broadcast %cst_14 : f32 to vector<32x128xf32>
      %19 = arith.mulf %18, %15 : vector<32x128xf32>
      %20 = arith.select %17, %15, %19 : vector<32x128xi1>, vector<32x128xf32>
      %21 = arith.truncf %20 : vector<32x128xf32> to vector<32x128xbf16>
      %c0_15 = arith.constant 0 : index
      %c0_16 = arith.constant 0 : index
      %22 = vector.load %arg6[%c0_15, %c0_16] : memref<32x128xbf16, #tpu.memory_space<vmem>>, vector<32x128xbf16>
      tpu.vector_store %arg6[%c0_15, %c0_16], %21 {strides = array<i32>} : memref<32x128xbf16, #tpu.memory_space<vmem>>, vector<32x128xbf16>,
    } else {
    }
    return
  }
  func.func @transform_0(%arg0: i32, %arg1: i32, %arg2: i32) -> (i32, i32) {
    %c0_i32 = arith.constant 0 : i32
    return %arg0, %arg2 : i32, i32
  }
  func.func @transform_1(%arg0: i32, %arg1: i32, %arg2: i32) -> (i32, i32) {
    %c0_i32 = arith.constant 0 : i32
    return %arg2, %arg1 : i32, i32
  }
  func.func @transform_2(%arg0: i32, %arg1: i32, %arg2: i32) -> (i32, i32) {
    %c0_i32 = arith.constant 0 : i32
    %c0_i32_0 = arith.constant 0 : i32
    return %c0_i32, %arg1 : i32, i32
  }
  func.func @transform_3(%arg0: i32, %arg1: i32, %arg2: i32) -> (i32, i32) {
    %c0_i32 = arith.constant 0 : i32
    return %arg0, %arg1 : i32, i32
  }
}

module attributes {stable_mosaic.version = 11 : i64} {
  func.func @_mm_bias_act_kernel(%arg0: i32, %arg1: i32, %arg2: i32, %arg3: memref<8x512xbf16, #tpu.memory_space<vmem>>, %arg4: memref<512x256xbf16, #tpu.memory_space<vmem>>, %arg5: memref<1x256xf32, #tpu.memory_space<vmem>>, %arg6: memref<8x256xbf16, #tpu.memory_space<vmem>>, %arg7: memref<8x256xf32, #tpu.memory_space<vmem>>) attributes {dimension_semantics = [#tpu.dimension_semantics<parallel>, #tpu.dimension_semantics<parallel>, #tpu.dimension_semantics<arbitrary>], iteration_bounds = array<i64: 1, 4, 2>, scalar_prefetch = 0 : i64, scratch_operands = 1 : i64, tpu.core_type = #tpu.core_type<tc>, window_params = [{transform_indices = @transform_0, window_bounds = array<i64: 8, 512>}, {transform_indices = @transform_1, window_bounds = array<i64: 512, 256>}, {transform_indices = @transform_2, window_bounds = array<i64: 1, 256>}, {transform_indices = @transform_3, window_bounds = array<i64: 8, 256>}]} {
    %c0_i32 = arith.constant 0 : i32
    %0 = arith.cmpi eq, %arg2, %c0_i32 : i32
    %1 = arith.extui %0 : i1 to i32
    %c0_i32_0 = arith.constant 0 : i32
    %2 = arith.cmpi ne, %1, %c0_i32_0 : i32
    scf.if %2 {
      %cst_9 = arith.constant 0.000000e+00 : f32
      %12 = vector.broadcast %cst_9 : f32 to vector<8x256xf32>
      %c0_10 = arith.constant 0 : index
      %c0_11 = arith.constant 0 : index
      %13 = vector.load %arg7[%c0_10, %c0_11] : memref<8x256xf32, #tpu.memory_space<vmem>>, vector<8x256xf32>
      tpu.vector_store %arg7[%c0_10, %c0_11], %12 {strides = array<i32>} : memref<8x256xf32, #tpu.memory_space<vmem>>, vector<8x256xf32>,
    } else {
    }
    %c0 = arith.constant 0 : index
    %c0_1 = arith.constant 0 : index
    %3 = vector.load %arg7[%c0, %c0_1] : memref<8x256xf32, #tpu.memory_space<vmem>>, vector<8x256xf32>
    %c0_2 = arith.constant 0 : index
    %c0_3 = arith.constant 0 : index
    %4 = vector.load %arg3[%c0_2, %c0_3] : memref<8x512xbf16, #tpu.memory_space<vmem>>, vector<8x512xbf16>
    %c0_4 = arith.constant 0 : index
    %c0_5 = arith.constant 0 : index
    %5 = vector.load %arg4[%c0_4, %c0_5] : memref<512x256xbf16, #tpu.memory_space<vmem>>, vector<512x256xbf16>
    %cst = arith.constant dense<0.000000e+00> : vector<8x256xf32>
    %6 = tpu.matmul %4, %5, %cst {dimension_numbers = #tpu.dot_dimension_numbers<[1], [0], [0], [1], [0, 0, 1, 1], [], []>} : vector<8x512xbf16>, vector<512x256xbf16>, vector<8x256xf32> -> vector<8x256xf32>
    %7 = arith.addf %3, %6 : vector<8x256xf32>
    %c0_6 = arith.constant 0 : index
    %c0_7 = arith.constant 0 : index
    %8 = vector.load %arg7[%c0_6, %c0_7] : memref<8x256xf32, #tpu.memory_space<vmem>>, vector<8x256xf32>
    tpu.vector_store %arg7[%c0_6, %c0_7], %7 {strides = array<i32>} : memref<8x256xf32, #tpu.memory_space<vmem>>, vector<8x256xf32>,
    %c1_i32 = arith.constant 1 : i32
    %9 = arith.cmpi eq, %arg2, %c1_i32 : i32
    %10 = arith.extui %9 : i1 to i32
    %c0_i32_8 = arith.constant 0 : i32
    %11 = arith.cmpi ne, %10, %c0_i32_8 : i32
    scf.if %11 {
      %c0_9 = arith.constant 0 : index
      %c0_10 = arith.constant 0 : index
      %12 = vector.load %arg7[%c0_9, %c0_10] : memref<8x256xf32, #tpu.memory_space<vmem>>, vector<8x256xf32>
      %c0_11 = arith.constant 0 : index
      %c0_12 = arith.constant 0 : index
      %13 = vector.load %arg5[%c0_11, %c0_12] : memref<1x256xf32, #tpu.memory_space<vmem>>, vector<1x256xf32>
      %14 = vector.broadcast %13 : vector<1x256xf32> to vector<8x256xf32>
      %15 = arith.addf %12, %14 : vector<8x256xf32>
      %cst_13 = arith.constant 0.000000e+00 : f32
      %16 = vector.broadcast %cst_13 : f32 to vector<8x256xf32>
      %17 = arith.cmpf oge, %15, %16 : vector<8x256xf32>
      %cst_14 = arith.constant 0.00999999977 : f32
      %18 = vector.broadcast %cst_14 : f32 to vector<8x256xf32>
      %19 = arith.mulf %18, %15 : vector<8x256xf32>
      %20 = arith.select %17, %15, %19 : vector<8x256xi1>, vector<8x256xf32>
      %21 = arith.truncf %20 : vector<8x256xf32> to vector<8x256xbf16>
      %c0_15 = arith.constant 0 : index
      %c0_16 = arith.constant 0 : index
      %22 = vector.load %arg6[%c0_15, %c0_16] : memref<8x256xbf16, #tpu.memory_space<vmem>>, vector<8x256xbf16>
      tpu.vector_store %arg6[%c0_15, %c0_16], %21 {strides = array<i32>} : memref<8x256xbf16, #tpu.memory_space<vmem>>, vector<8x256xbf16>,
    } else {
    }
    return
  }
  func.func @transform_0(%arg0: i32, %arg1: i32, %arg2: i32) -> (i32, i32) {
    %c0_i32 = arith.constant 0 : i32
    return %arg0, %arg2 : i32, i32
  }
  func.func @transform_1(%arg0: i32, %arg1: i32, %arg2: i32) -> (i32, i32) {
    %c0_i32 = arith.constant 0 : i32
    return %arg2, %arg1 : i32, i32
  }
  func.func @transform_2(%arg0: i32, %arg1: i32, %arg2: i32) -> (i32, i32) {
    %c0_i32 = arith.constant 0 : i32
    %c0_i32_0 = arith.constant 0 : i32
    return %c0_i32, %arg1 : i32, i32
  }
  func.func @transform_3(%arg0: i32, %arg1: i32, %arg2: i32) -> (i32, i32) {
    %c0_i32 = arith.constant 0 : i32
    return %arg0, %arg1 : i32, i32
  }
}

module attributes {stable_mosaic.version = 11 : i64} {
  func.func @_mm_bias_act_kernel(%arg0: i32, %arg1: i32, %arg2: i32, %arg3: memref<8x512xbf16, #tpu.memory_space<vmem>>, %arg4: memref<512x256xbf16, #tpu.memory_space<vmem>>, %arg5: memref<1x256xf32, #tpu.memory_space<vmem>>, %arg6: memref<8x256xbf16, #tpu.memory_space<vmem>>, %arg7: memref<8x256xf32, #tpu.memory_space<vmem>>) attributes {dimension_semantics = [#tpu.dimension_semantics<parallel>, #tpu.dimension_semantics<parallel>, #tpu.dimension_semantics<arbitrary>], iteration_bounds = array<i64: 1, 1, 4>, scalar_prefetch = 0 : i64, scratch_operands = 1 : i64, tpu.core_type = #tpu.core_type<tc>, window_params = [{transform_indices = @transform_0, window_bounds = array<i64: 8, 512>}, {transform_indices = @transform_1, window_bounds = array<i64: 512, 256>}, {transform_indices = @transform_2, window_bounds = array<i64: 1, 256>}, {transform_indices = @transform_3, window_bounds = array<i64: 8, 256>}]} {
    %c0_i32 = arith.constant 0 : i32
    %0 = arith.cmpi eq, %arg2, %c0_i32 : i32
    %1 = arith.extui %0 : i1 to i32
    %c0_i32_0 = arith.constant 0 : i32
    %2 = arith.cmpi ne, %1, %c0_i32_0 : i32
    scf.if %2 {
      %cst_9 = arith.constant 0.000000e+00 : f32
      %12 = vector.broadcast %cst_9 : f32 to vector<8x256xf32>
      %c0_10 = arith.constant 0 : index
      %c0_11 = arith.constant 0 : index
      %13 = vector.load %arg7[%c0_10, %c0_11] : memref<8x256xf32, #tpu.memory_space<vmem>>, vector<8x256xf32>
      tpu.vector_store %arg7[%c0_10, %c0_11], %12 {strides = array<i32>} : memref<8x256xf32, #tpu.memory_space<vmem>>, vector<8x256xf32>,
    } else {
    }
    %c0 = arith.constant 0 : index
    %c0_1 = arith.constant 0 : index
    %3 = vector.load %arg7[%c0, %c0_1] : memref<8x256xf32, #tpu.memory_space<vmem>>, vector<8x256xf32>
    %c0_2 = arith.constant 0 : index
    %c0_3 = arith.constant 0 : index
    %4 = vector.load %arg3[%c0_2, %c0_3] : memref<8x512xbf16, #tpu.memory_space<vmem>>, vector<8x512xbf16>
    %c0_4 = arith.constant 0 : index
    %c0_5 = arith.constant 0 : index
    %5 = vector.load %arg4[%c0_4, %c0_5] : memref<512x256xbf16, #tpu.memory_space<vmem>>, vector<512x256xbf16>
    %cst = arith.constant dense<0.000000e+00> : vector<8x256xf32>
    %6 = tpu.matmul %4, %5, %cst {dimension_numbers = #tpu.dot_dimension_numbers<[1], [0], [0], [1], [0, 0, 1, 1], [], []>} : vector<8x512xbf16>, vector<512x256xbf16>, vector<8x256xf32> -> vector<8x256xf32>
    %7 = arith.addf %3, %6 : vector<8x256xf32>
    %c0_6 = arith.constant 0 : index
    %c0_7 = arith.constant 0 : index
    %8 = vector.load %arg7[%c0_6, %c0_7] : memref<8x256xf32, #tpu.memory_space<vmem>>, vector<8x256xf32>
    tpu.vector_store %arg7[%c0_6, %c0_7], %7 {strides = array<i32>} : memref<8x256xf32, #tpu.memory_space<vmem>>, vector<8x256xf32>,
    %c3_i32 = arith.constant 3 : i32
    %9 = arith.cmpi eq, %arg2, %c3_i32 : i32
    %10 = arith.extui %9 : i1 to i32
    %c0_i32_8 = arith.constant 0 : i32
    %11 = arith.cmpi ne, %10, %c0_i32_8 : i32
    scf.if %11 {
      %c0_9 = arith.constant 0 : index
      %c0_10 = arith.constant 0 : index
      %12 = vector.load %arg7[%c0_9, %c0_10] : memref<8x256xf32, #tpu.memory_space<vmem>>, vector<8x256xf32>
      %c0_11 = arith.constant 0 : index
      %c0_12 = arith.constant 0 : index
      %13 = vector.load %arg5[%c0_11, %c0_12] : memref<1x256xf32, #tpu.memory_space<vmem>>, vector<1x256xf32>
      %14 = vector.broadcast %13 : vector<1x256xf32> to vector<8x256xf32>
      %15 = arith.addf %12, %14 : vector<8x256xf32>
      %cst_13 = arith.constant 0.000000e+00 : f32
      %16 = vector.broadcast %cst_13 : f32 to vector<8x256xf32>
      %17 = arith.cmpf oge, %15, %16 : vector<8x256xf32>
      %cst_14 = arith.constant 0.00999999977 : f32
      %18 = vector.broadcast %cst_14 : f32 to vector<8x256xf32>
      %19 = arith.mulf %18, %15 : vector<8x256xf32>
      %20 = arith.select %17, %15, %19 : vector<8x256xi1>, vector<8x256xf32>
      %21 = arith.truncf %20 : vector<8x256xf32> to vector<8x256xbf16>
      %c0_15 = arith.constant 0 : index
      %c0_16 = arith.constant 0 : index
      %22 = vector.load %arg6[%c0_15, %c0_16] : memref<8x256xbf16, #tpu.memory_space<vmem>>, vector<8x256xbf16>
      tpu.vector_store %arg6[%c0_15, %c0_16], %21 {strides = array<i32>} : memref<8x256xbf16, #tpu.memory_space<vmem>>, vector<8x256xbf16>,
    } else {
    }
    return
  }
  func.func @transform_0(%arg0: i32, %arg1: i32, %arg2: i32) -> (i32, i32) {
    %c0_i32 = arith.constant 0 : i32
    return %arg0, %arg2 : i32, i32
  }
  func.func @transform_1(%arg0: i32, %arg1: i32, %arg2: i32) -> (i32, i32) {
    %c0_i32 = arith.constant 0 : i32
    return %arg2, %arg1 : i32, i32
  }
  func.func @transform_2(%arg0: i32, %arg1: i32, %arg2: i32) -> (i32, i32) {
    %c0_i32 = arith.constant 0 : i32
    %c0_i32_0 = arith.constant 0 : i32
    return %c0_i32, %arg1 : i32, i32
  }
  func.func @transform_3(%arg0: i32, %arg1: i32, %arg2: i32) -> (i32, i32) {
    %c0_i32 = arith.constant 0 : i32
    return %arg0, %arg1 : i32, i32
  }
}

module attributes {stable_mosaic.version = 11 : i64} {
  func.func @_mm_bias_act_kernel(%arg0: i32, %arg1: i32, %arg2: i32, %arg3: memref<8x512xbf16, #tpu.memory_space<vmem>>, %arg4: memref<512x128xbf16, #tpu.memory_space<vmem>>, %arg5: memref<1x128xf32, #tpu.memory_space<vmem>>, %arg6: memref<8x128xf32, #tpu.memory_space<vmem>>, %arg7: memref<8x128xf32, #tpu.memory_space<vmem>>) attributes {dimension_semantics = [#tpu.dimension_semantics<parallel>, #tpu.dimension_semantics<parallel>, #tpu.dimension_semantics<arbitrary>], iteration_bounds = array<i64: 1, 1, 2>, scalar_prefetch = 0 : i64, scratch_operands = 1 : i64, tpu.core_type = #tpu.core_type<tc>, window_params = [{transform_indices = @transform_0, window_bounds = array<i64: 8, 512>}, {transform_indices = @transform_1, window_bounds = array<i64: 512, 128>}, {transform_indices = @transform_2, window_bounds = array<i64: 1, 128>}, {transform_indices = @transform_3, window_bounds = array<i64: 8, 128>}]} {
    %c0_i32 = arith.constant 0 : i32
    %0 = arith.cmpi eq, %arg2, %c0_i32 : i32
    %1 = arith.extui %0 : i1 to i32
    %c0_i32_0 = arith.constant 0 : i32
    %2 = arith.cmpi ne, %1, %c0_i32_0 : i32
    scf.if %2 {
      %cst_9 = arith.constant 0.000000e+00 : f32
      %12 = vector.broadcast %cst_9 : f32 to vector<8x128xf32>
      %c0_10 = arith.constant 0 : index
      %c0_11 = arith.constant 0 : index
      %13 = vector.load %arg7[%c0_10, %c0_11] : memref<8x128xf32, #tpu.memory_space<vmem>>, vector<8x128xf32>
      tpu.vector_store %arg7[%c0_10, %c0_11], %12 {strides = array<i32>} : memref<8x128xf32, #tpu.memory_space<vmem>>, vector<8x128xf32>,
    } else {
    }
    %c0 = arith.constant 0 : index
    %c0_1 = arith.constant 0 : index
    %3 = vector.load %arg7[%c0, %c0_1] : memref<8x128xf32, #tpu.memory_space<vmem>>, vector<8x128xf32>
    %c0_2 = arith.constant 0 : index
    %c0_3 = arith.constant 0 : index
    %4 = vector.load %arg3[%c0_2, %c0_3] : memref<8x512xbf16, #tpu.memory_space<vmem>>, vector<8x512xbf16>
    %c0_4 = arith.constant 0 : index
    %c0_5 = arith.constant 0 : index
    %5 = vector.load %arg4[%c0_4, %c0_5] : memref<512x128xbf16, #tpu.memory_space<vmem>>, vector<512x128xbf16>
    %cst = arith.constant dense<0.000000e+00> : vector<8x128xf32>
    %6 = tpu.matmul %4, %5, %cst {dimension_numbers = #tpu.dot_dimension_numbers<[1], [0], [0], [1], [0, 0, 1, 1], [], []>} : vector<8x512xbf16>, vector<512x128xbf16>, vector<8x128xf32> -> vector<8x128xf32>
    %7 = arith.addf %3, %6 : vector<8x128xf32>
    %c0_6 = arith.constant 0 : index
    %c0_7 = arith.constant 0 : index
    %8 = vector.load %arg7[%c0_6, %c0_7] : memref<8x128xf32, #tpu.memory_space<vmem>>, vector<8x128xf32>
    tpu.vector_store %arg7[%c0_6, %c0_7], %7 {strides = array<i32>} : memref<8x128xf32, #tpu.memory_space<vmem>>, vector<8x128xf32>,
    %c1_i32 = arith.constant 1 : i32
    %9 = arith.cmpi eq, %arg2, %c1_i32 : i32
    %10 = arith.extui %9 : i1 to i32
    %c0_i32_8 = arith.constant 0 : i32
    %11 = arith.cmpi ne, %10, %c0_i32_8 : i32
    scf.if %11 {
      %c0_9 = arith.constant 0 : index
      %c0_10 = arith.constant 0 : index
      %12 = vector.load %arg7[%c0_9, %c0_10] : memref<8x128xf32, #tpu.memory_space<vmem>>, vector<8x128xf32>
      %c0_11 = arith.constant 0 : index
      %c0_12 = arith.constant 0 : index
      %13 = vector.load %arg5[%c0_11, %c0_12] : memref<1x128xf32, #tpu.memory_space<vmem>>, vector<1x128xf32>
      %14 = vector.broadcast %13 : vector<1x128xf32> to vector<8x128xf32>
      %15 = arith.addf %12, %14 : vector<8x128xf32>
      %c0_13 = arith.constant 0 : index
      %c0_14 = arith.constant 0 : index
      %16 = vector.load %arg6[%c0_13, %c0_14] : memref<8x128xf32, #tpu.memory_space<vmem>>, vector<8x128xf32>
      tpu.vector_store %arg6[%c0_13, %c0_14], %15 {strides = array<i32>} : memref<8x128xf32, #tpu.memory_space<vmem>>, vector<8x128xf32>,
    } else {
    }
    return
  }
  func.func @transform_0(%arg0: i32, %arg1: i32, %arg2: i32) -> (i32, i32) {
    %c0_i32 = arith.constant 0 : i32
    return %arg0, %arg2 : i32, i32
  }
  func.func @transform_1(%arg0: i32, %arg1: i32, %arg2: i32) -> (i32, i32) {
    %c0_i32 = arith.constant 0 : i32
    return %arg2, %arg1 : i32, i32
  }
  func.func @transform_2(%arg0: i32, %arg1: i32, %arg2: i32) -> (i32, i32) {
    %c0_i32 = arith.constant 0 : i32
    %c0_i32_0 = arith.constant 0 : i32
    return %c0_i32, %arg1 : i32, i32
  }
  func.func @transform_3(%arg0: i32, %arg1: i32, %arg2: i32) -> (i32, i32) {
    %c0_i32 = arith.constant 0 : i32
    return %arg0, %arg1 : i32, i32
  }
}

module attributes {stable_mosaic.version = 11 : i64} {
  func.func @_mm_bias_act_kernel(%arg0: i32, %arg1: i32, %arg2: i32, %arg3: memref<8x128xbf16, #tpu.memory_space<vmem>>, %arg4: memref<128x256xbf16, #tpu.memory_space<vmem>>, %arg5: memref<1x256xf32, #tpu.memory_space<vmem>>, %arg6: memref<8x256xbf16, #tpu.memory_space<vmem>>, %arg7: memref<8x256xf32, #tpu.memory_space<vmem>>) attributes {dimension_semantics = [#tpu.dimension_semantics<parallel>, #tpu.dimension_semantics<parallel>, #tpu.dimension_semantics<arbitrary>], iteration_bounds = array<i64: 1, 4, 1>, scalar_prefetch = 0 : i64, scratch_operands = 1 : i64, tpu.core_type = #tpu.core_type<tc>, window_params = [{transform_indices = @transform_0, window_bounds = array<i64: 8, 128>}, {transform_indices = @transform_1, window_bounds = array<i64: 128, 256>}, {transform_indices = @transform_2, window_bounds = array<i64: 1, 256>}, {transform_indices = @transform_3, window_bounds = array<i64: 8, 256>}]} {
    %c0_i32 = arith.constant 0 : i32
    %0 = arith.cmpi eq, %arg2, %c0_i32 : i32
    %1 = arith.extui %0 : i1 to i32
    %c0_i32_0 = arith.constant 0 : i32
    %2 = arith.cmpi ne, %1, %c0_i32_0 : i32
    scf.if %2 {
      %cst_10 = arith.constant 0.000000e+00 : f32
      %12 = vector.broadcast %cst_10 : f32 to vector<8x256xf32>
      %c0_11 = arith.constant 0 : index
      %c0_12 = arith.constant 0 : index
      %13 = vector.load %arg7[%c0_11, %c0_12] : memref<8x256xf32, #tpu.memory_space<vmem>>, vector<8x256xf32>
      tpu.vector_store %arg7[%c0_11, %c0_12], %12 {strides = array<i32>} : memref<8x256xf32, #tpu.memory_space<vmem>>, vector<8x256xf32>,
    } else {
    }
    %c0 = arith.constant 0 : index
    %c0_1 = arith.constant 0 : index
    %3 = vector.load %arg7[%c0, %c0_1] : memref<8x256xf32, #tpu.memory_space<vmem>>, vector<8x256xf32>
    %c0_2 = arith.constant 0 : index
    %c0_3 = arith.constant 0 : index
    %4 = vector.load %arg3[%c0_2, %c0_3] : memref<8x128xbf16, #tpu.memory_space<vmem>>, vector<8x128xbf16>
    %c0_4 = arith.constant 0 : index
    %c0_5 = arith.constant 0 : index
    %5 = vector.load %arg4[%c0_4, %c0_5] : memref<128x256xbf16, #tpu.memory_space<vmem>>, vector<128x256xbf16>
    %cst = arith.constant dense<0.000000e+00> : vector<8x256xf32>
    %6 = tpu.matmul %4, %5, %cst {dimension_numbers = #tpu.dot_dimension_numbers<[1], [0], [0], [1], [0, 0, 1, 1], [], []>} : vector<8x128xbf16>, vector<128x256xbf16>, vector<8x256xf32> -> vector<8x256xf32>
    %7 = arith.addf %3, %6 : vector<8x256xf32>
    %c0_6 = arith.constant 0 : index
    %c0_7 = arith.constant 0 : index
    %8 = vector.load %arg7[%c0_6, %c0_7] : memref<8x256xf32, #tpu.memory_space<vmem>>, vector<8x256xf32>
    tpu.vector_store %arg7[%c0_6, %c0_7], %7 {strides = array<i32>} : memref<8x256xf32, #tpu.memory_space<vmem>>, vector<8x256xf32>,
    %c0_i32_8 = arith.constant 0 : i32
    %9 = arith.cmpi eq, %arg2, %c0_i32_8 : i32
    %10 = arith.extui %9 : i1 to i32
    %c0_i32_9 = arith.constant 0 : i32
    %11 = arith.cmpi ne, %10, %c0_i32_9 : i32
    scf.if %11 {
      %c0_10 = arith.constant 0 : index
      %c0_11 = arith.constant 0 : index
      %12 = vector.load %arg7[%c0_10, %c0_11] : memref<8x256xf32, #tpu.memory_space<vmem>>, vector<8x256xf32>
      %c0_12 = arith.constant 0 : index
      %c0_13 = arith.constant 0 : index
      %13 = vector.load %arg5[%c0_12, %c0_13] : memref<1x256xf32, #tpu.memory_space<vmem>>, vector<1x256xf32>
      %14 = vector.broadcast %13 : vector<1x256xf32> to vector<8x256xf32>
      %15 = arith.addf %12, %14 : vector<8x256xf32>
      %cst_14 = arith.constant 0.000000e+00 : f32
      %16 = vector.broadcast %cst_14 : f32 to vector<8x256xf32>
      %17 = arith.maximumf %15, %16 : vector<8x256xf32>
      %18 = arith.truncf %17 : vector<8x256xf32> to vector<8x256xbf16>
      %c0_15 = arith.constant 0 : index
      %c0_16 = arith.constant 0 : index
      %19 = vector.load %arg6[%c0_15, %c0_16] : memref<8x256xbf16, #tpu.memory_space<vmem>>, vector<8x256xbf16>
      tpu.vector_store %arg6[%c0_15, %c0_16], %18 {strides = array<i32>} : memref<8x256xbf16, #tpu.memory_space<vmem>>, vector<8x256xbf16>,
    } else {
    }
    return
  }
  func.func @transform_0(%arg0: i32, %arg1: i32, %arg2: i32) -> (i32, i32) {
    %c0_i32 = arith.constant 0 : i32
    return %arg0, %arg2 : i32, i32
  }
  func.func @transform_1(%arg0: i32, %arg1: i32, %arg2: i32) -> (i32, i32) {
    %c0_i32 = arith.constant 0 : i32
    return %arg2, %arg1 : i32, i32
  }
  func.func @transform_2(%arg0: i32, %arg1: i32, %arg2: i32) -> (i32, i32) {
    %c0_i32 = arith.constant 0 : i32
    %c0_i32_0 = arith.constant 0 : i32
    return %c0_i32, %arg1 : i32, i32
  }
  func.func @transform_3(%arg0: i32, %arg1: i32, %arg2: i32) -> (i32, i32) {
    %c0_i32 = arith.constant 0 : i32
    return %arg0, %arg1 : i32, i32
  }
}

module attributes {stable_mosaic.version = 11 : i64} {
  func.func @_mm_bias_act_kernel(%arg0: i32, %arg1: i32, %arg2: i32, %arg3: memref<8x512xbf16, #tpu.memory_space<vmem>>, %arg4: memref<512x256xbf16, #tpu.memory_space<vmem>>, %arg5: memref<1x256xf32, #tpu.memory_space<vmem>>, %arg6: memref<8x256xbf16, #tpu.memory_space<vmem>>, %arg7: memref<8x256xf32, #tpu.memory_space<vmem>>) attributes {dimension_semantics = [#tpu.dimension_semantics<parallel>, #tpu.dimension_semantics<parallel>, #tpu.dimension_semantics<arbitrary>], iteration_bounds = array<i64: 1, 4, 2>, scalar_prefetch = 0 : i64, scratch_operands = 1 : i64, tpu.core_type = #tpu.core_type<tc>, window_params = [{transform_indices = @transform_0, window_bounds = array<i64: 8, 512>}, {transform_indices = @transform_1, window_bounds = array<i64: 512, 256>}, {transform_indices = @transform_2, window_bounds = array<i64: 1, 256>}, {transform_indices = @transform_3, window_bounds = array<i64: 8, 256>}]} {
    %c0_i32 = arith.constant 0 : i32
    %0 = arith.cmpi eq, %arg2, %c0_i32 : i32
    %1 = arith.extui %0 : i1 to i32
    %c0_i32_0 = arith.constant 0 : i32
    %2 = arith.cmpi ne, %1, %c0_i32_0 : i32
    scf.if %2 {
      %cst_9 = arith.constant 0.000000e+00 : f32
      %12 = vector.broadcast %cst_9 : f32 to vector<8x256xf32>
      %c0_10 = arith.constant 0 : index
      %c0_11 = arith.constant 0 : index
      %13 = vector.load %arg7[%c0_10, %c0_11] : memref<8x256xf32, #tpu.memory_space<vmem>>, vector<8x256xf32>
      tpu.vector_store %arg7[%c0_10, %c0_11], %12 {strides = array<i32>} : memref<8x256xf32, #tpu.memory_space<vmem>>, vector<8x256xf32>,
    } else {
    }
    %c0 = arith.constant 0 : index
    %c0_1 = arith.constant 0 : index
    %3 = vector.load %arg7[%c0, %c0_1] : memref<8x256xf32, #tpu.memory_space<vmem>>, vector<8x256xf32>
    %c0_2 = arith.constant 0 : index
    %c0_3 = arith.constant 0 : index
    %4 = vector.load %arg3[%c0_2, %c0_3] : memref<8x512xbf16, #tpu.memory_space<vmem>>, vector<8x512xbf16>
    %c0_4 = arith.constant 0 : index
    %c0_5 = arith.constant 0 : index
    %5 = vector.load %arg4[%c0_4, %c0_5] : memref<512x256xbf16, #tpu.memory_space<vmem>>, vector<512x256xbf16>
    %cst = arith.constant dense<0.000000e+00> : vector<8x256xf32>
    %6 = tpu.matmul %4, %5, %cst {dimension_numbers = #tpu.dot_dimension_numbers<[1], [0], [0], [1], [0, 0, 1, 1], [], []>} : vector<8x512xbf16>, vector<512x256xbf16>, vector<8x256xf32> -> vector<8x256xf32>
    %7 = arith.addf %3, %6 : vector<8x256xf32>
    %c0_6 = arith.constant 0 : index
    %c0_7 = arith.constant 0 : index
    %8 = vector.load %arg7[%c0_6, %c0_7] : memref<8x256xf32, #tpu.memory_space<vmem>>, vector<8x256xf32>
    tpu.vector_store %arg7[%c0_6, %c0_7], %7 {strides = array<i32>} : memref<8x256xf32, #tpu.memory_space<vmem>>, vector<8x256xf32>,
    %c1_i32 = arith.constant 1 : i32
    %9 = arith.cmpi eq, %arg2, %c1_i32 : i32
    %10 = arith.extui %9 : i1 to i32
    %c0_i32_8 = arith.constant 0 : i32
    %11 = arith.cmpi ne, %10, %c0_i32_8 : i32
    scf.if %11 {
      %c0_9 = arith.constant 0 : index
      %c0_10 = arith.constant 0 : index
      %12 = vector.load %arg7[%c0_9, %c0_10] : memref<8x256xf32, #tpu.memory_space<vmem>>, vector<8x256xf32>
      %c0_11 = arith.constant 0 : index
      %c0_12 = arith.constant 0 : index
      %13 = vector.load %arg5[%c0_11, %c0_12] : memref<1x256xf32, #tpu.memory_space<vmem>>, vector<1x256xf32>
      %14 = vector.broadcast %13 : vector<1x256xf32> to vector<8x256xf32>
      %15 = arith.addf %12, %14 : vector<8x256xf32>
      %cst_13 = arith.constant 0.000000e+00 : f32
      %16 = vector.broadcast %cst_13 : f32 to vector<8x256xf32>
      %17 = arith.maximumf %15, %16 : vector<8x256xf32>
      %18 = arith.truncf %17 : vector<8x256xf32> to vector<8x256xbf16>
      %c0_14 = arith.constant 0 : index
      %c0_15 = arith.constant 0 : index
      %19 = vector.load %arg6[%c0_14, %c0_15] : memref<8x256xbf16, #tpu.memory_space<vmem>>, vector<8x256xbf16>
      tpu.vector_store %arg6[%c0_14, %c0_15], %18 {strides = array<i32>} : memref<8x256xbf16, #tpu.memory_space<vmem>>, vector<8x256xbf16>,
    } else {
    }
    return
  }
  func.func @transform_0(%arg0: i32, %arg1: i32, %arg2: i32) -> (i32, i32) {
    %c0_i32 = arith.constant 0 : i32
    return %arg0, %arg2 : i32, i32
  }
  func.func @transform_1(%arg0: i32, %arg1: i32, %arg2: i32) -> (i32, i32) {
    %c0_i32 = arith.constant 0 : i32
    return %arg2, %arg1 : i32, i32
  }
  func.func @transform_2(%arg0: i32, %arg1: i32, %arg2: i32) -> (i32, i32) {
    %c0_i32 = arith.constant 0 : i32
    %c0_i32_0 = arith.constant 0 : i32
    return %c0_i32, %arg1 : i32, i32
  }
  func.func @transform_3(%arg0: i32, %arg1: i32, %arg2: i32) -> (i32, i32) {
    %c0_i32 = arith.constant 0 : i32
    return %arg0, %arg1 : i32, i32
  }
}

module attributes {stable_mosaic.version = 11 : i64} {
  func.func @_mm_bias_act_kernel(%arg0: i32, %arg1: i32, %arg2: i32, %arg3: memref<8x512xbf16, #tpu.memory_space<vmem>>, %arg4: memref<512x256xbf16, #tpu.memory_space<vmem>>, %arg5: memref<1x256xf32, #tpu.memory_space<vmem>>, %arg6: memref<8x256xbf16, #tpu.memory_space<vmem>>, %arg7: memref<8x256xf32, #tpu.memory_space<vmem>>) attributes {dimension_semantics = [#tpu.dimension_semantics<parallel>, #tpu.dimension_semantics<parallel>, #tpu.dimension_semantics<arbitrary>], iteration_bounds = array<i64: 1, 2, 5>, scalar_prefetch = 0 : i64, scratch_operands = 1 : i64, tpu.core_type = #tpu.core_type<tc>, window_params = [{transform_indices = @transform_0, window_bounds = array<i64: 8, 512>}, {transform_indices = @transform_1, window_bounds = array<i64: 512, 256>}, {transform_indices = @transform_2, window_bounds = array<i64: 1, 256>}, {transform_indices = @transform_3, window_bounds = array<i64: 8, 256>}]} {
    %c0_i32 = arith.constant 0 : i32
    %0 = arith.cmpi eq, %arg2, %c0_i32 : i32
    %1 = arith.extui %0 : i1 to i32
    %c0_i32_0 = arith.constant 0 : i32
    %2 = arith.cmpi ne, %1, %c0_i32_0 : i32
    scf.if %2 {
      %cst_9 = arith.constant 0.000000e+00 : f32
      %12 = vector.broadcast %cst_9 : f32 to vector<8x256xf32>
      %c0_10 = arith.constant 0 : index
      %c0_11 = arith.constant 0 : index
      %13 = vector.load %arg7[%c0_10, %c0_11] : memref<8x256xf32, #tpu.memory_space<vmem>>, vector<8x256xf32>
      tpu.vector_store %arg7[%c0_10, %c0_11], %12 {strides = array<i32>} : memref<8x256xf32, #tpu.memory_space<vmem>>, vector<8x256xf32>,
    } else {
    }
    %c0 = arith.constant 0 : index
    %c0_1 = arith.constant 0 : index
    %3 = vector.load %arg7[%c0, %c0_1] : memref<8x256xf32, #tpu.memory_space<vmem>>, vector<8x256xf32>
    %c0_2 = arith.constant 0 : index
    %c0_3 = arith.constant 0 : index
    %4 = vector.load %arg3[%c0_2, %c0_3] : memref<8x512xbf16, #tpu.memory_space<vmem>>, vector<8x512xbf16>
    %c0_4 = arith.constant 0 : index
    %c0_5 = arith.constant 0 : index
    %5 = vector.load %arg4[%c0_4, %c0_5] : memref<512x256xbf16, #tpu.memory_space<vmem>>, vector<512x256xbf16>
    %cst = arith.constant dense<0.000000e+00> : vector<8x256xf32>
    %6 = tpu.matmul %4, %5, %cst {dimension_numbers = #tpu.dot_dimension_numbers<[1], [0], [0], [1], [0, 0, 1, 1], [], []>} : vector<8x512xbf16>, vector<512x256xbf16>, vector<8x256xf32> -> vector<8x256xf32>
    %7 = arith.addf %3, %6 : vector<8x256xf32>
    %c0_6 = arith.constant 0 : index
    %c0_7 = arith.constant 0 : index
    %8 = vector.load %arg7[%c0_6, %c0_7] : memref<8x256xf32, #tpu.memory_space<vmem>>, vector<8x256xf32>
    tpu.vector_store %arg7[%c0_6, %c0_7], %7 {strides = array<i32>} : memref<8x256xf32, #tpu.memory_space<vmem>>, vector<8x256xf32>,
    %c4_i32 = arith.constant 4 : i32
    %9 = arith.cmpi eq, %arg2, %c4_i32 : i32
    %10 = arith.extui %9 : i1 to i32
    %c0_i32_8 = arith.constant 0 : i32
    %11 = arith.cmpi ne, %10, %c0_i32_8 : i32
    scf.if %11 {
      %c0_9 = arith.constant 0 : index
      %c0_10 = arith.constant 0 : index
      %12 = vector.load %arg7[%c0_9, %c0_10] : memref<8x256xf32, #tpu.memory_space<vmem>>, vector<8x256xf32>
      %c0_11 = arith.constant 0 : index
      %c0_12 = arith.constant 0 : index
      %13 = vector.load %arg5[%c0_11, %c0_12] : memref<1x256xf32, #tpu.memory_space<vmem>>, vector<1x256xf32>
      %14 = vector.broadcast %13 : vector<1x256xf32> to vector<8x256xf32>
      %15 = arith.addf %12, %14 : vector<8x256xf32>
      %cst_13 = arith.constant 0.000000e+00 : f32
      %16 = vector.broadcast %cst_13 : f32 to vector<8x256xf32>
      %17 = arith.maximumf %15, %16 : vector<8x256xf32>
      %18 = arith.truncf %17 : vector<8x256xf32> to vector<8x256xbf16>
      %c0_14 = arith.constant 0 : index
      %c0_15 = arith.constant 0 : index
      %19 = vector.load %arg6[%c0_14, %c0_15] : memref<8x256xbf16, #tpu.memory_space<vmem>>, vector<8x256xbf16>
      tpu.vector_store %arg6[%c0_14, %c0_15], %18 {strides = array<i32>} : memref<8x256xbf16, #tpu.memory_space<vmem>>, vector<8x256xbf16>,
    } else {
    }
    return
  }
  func.func @transform_0(%arg0: i32, %arg1: i32, %arg2: i32) -> (i32, i32) {
    %c0_i32 = arith.constant 0 : i32
    return %arg0, %arg2 : i32, i32
  }
  func.func @transform_1(%arg0: i32, %arg1: i32, %arg2: i32) -> (i32, i32) {
    %c0_i32 = arith.constant 0 : i32
    return %arg2, %arg1 : i32, i32
  }
  func.func @transform_2(%arg0: i32, %arg1: i32, %arg2: i32) -> (i32, i32) {
    %c0_i32 = arith.constant 0 : i32
    %c0_i32_0 = arith.constant 0 : i32
    return %c0_i32, %arg1 : i32, i32
  }
  func.func @transform_3(%arg0: i32, %arg1: i32, %arg2: i32) -> (i32, i32) {
    %c0_i32 = arith.constant 0 : i32
    return %arg0, %arg1 : i32, i32
  }
}

module attributes {stable_mosaic.version = 11 : i64} {
  func.func @_mm_bias_act_kernel(%arg0: i32, %arg1: i32, %arg2: i32, %arg3: memref<32x512xbf16, #tpu.memory_space<vmem>>, %arg4: memref<512x256xbf16, #tpu.memory_space<vmem>>, %arg5: memref<1x256xf32, #tpu.memory_space<vmem>>, %arg6: memref<32x256xbf16, #tpu.memory_space<vmem>>, %arg7: memref<32x256xf32, #tpu.memory_space<vmem>>) attributes {dimension_semantics = [#tpu.dimension_semantics<parallel>, #tpu.dimension_semantics<parallel>, #tpu.dimension_semantics<arbitrary>], iteration_bounds = array<i64: 1, 1, 3>, scalar_prefetch = 0 : i64, scratch_operands = 1 : i64, tpu.core_type = #tpu.core_type<tc>, window_params = [{transform_indices = @transform_0, window_bounds = array<i64: 32, 512>}, {transform_indices = @transform_1, window_bounds = array<i64: 512, 256>}, {transform_indices = @transform_2, window_bounds = array<i64: 1, 256>}, {transform_indices = @transform_3, window_bounds = array<i64: 32, 256>}]} {
    %c0_i32 = arith.constant 0 : i32
    %0 = arith.cmpi eq, %arg2, %c0_i32 : i32
    %1 = arith.extui %0 : i1 to i32
    %c0_i32_0 = arith.constant 0 : i32
    %2 = arith.cmpi ne, %1, %c0_i32_0 : i32
    scf.if %2 {
      %cst_9 = arith.constant 0.000000e+00 : f32
      %12 = vector.broadcast %cst_9 : f32 to vector<32x256xf32>
      %c0_10 = arith.constant 0 : index
      %c0_11 = arith.constant 0 : index
      %13 = vector.load %arg7[%c0_10, %c0_11] : memref<32x256xf32, #tpu.memory_space<vmem>>, vector<32x256xf32>
      tpu.vector_store %arg7[%c0_10, %c0_11], %12 {strides = array<i32>} : memref<32x256xf32, #tpu.memory_space<vmem>>, vector<32x256xf32>,
    } else {
    }
    %c0 = arith.constant 0 : index
    %c0_1 = arith.constant 0 : index
    %3 = vector.load %arg7[%c0, %c0_1] : memref<32x256xf32, #tpu.memory_space<vmem>>, vector<32x256xf32>
    %c0_2 = arith.constant 0 : index
    %c0_3 = arith.constant 0 : index
    %4 = vector.load %arg3[%c0_2, %c0_3] : memref<32x512xbf16, #tpu.memory_space<vmem>>, vector<32x512xbf16>
    %c0_4 = arith.constant 0 : index
    %c0_5 = arith.constant 0 : index
    %5 = vector.load %arg4[%c0_4, %c0_5] : memref<512x256xbf16, #tpu.memory_space<vmem>>, vector<512x256xbf16>
    %cst = arith.constant dense<0.000000e+00> : vector<32x256xf32>
    %6 = tpu.matmul %4, %5, %cst {dimension_numbers = #tpu.dot_dimension_numbers<[1], [0], [0], [1], [0, 0, 1, 1], [], []>} : vector<32x512xbf16>, vector<512x256xbf16>, vector<32x256xf32> -> vector<32x256xf32>
    %7 = arith.addf %3, %6 : vector<32x256xf32>
    %c0_6 = arith.constant 0 : index
    %c0_7 = arith.constant 0 : index
    %8 = vector.load %arg7[%c0_6, %c0_7] : memref<32x256xf32, #tpu.memory_space<vmem>>, vector<32x256xf32>
    tpu.vector_store %arg7[%c0_6, %c0_7], %7 {strides = array<i32>} : memref<32x256xf32, #tpu.memory_space<vmem>>, vector<32x256xf32>,
    %c2_i32 = arith.constant 2 : i32
    %9 = arith.cmpi eq, %arg2, %c2_i32 : i32
    %10 = arith.extui %9 : i1 to i32
    %c0_i32_8 = arith.constant 0 : i32
    %11 = arith.cmpi ne, %10, %c0_i32_8 : i32
    scf.if %11 {
      %c0_9 = arith.constant 0 : index
      %c0_10 = arith.constant 0 : index
      %12 = vector.load %arg7[%c0_9, %c0_10] : memref<32x256xf32, #tpu.memory_space<vmem>>, vector<32x256xf32>
      %c0_11 = arith.constant 0 : index
      %c0_12 = arith.constant 0 : index
      %13 = vector.load %arg5[%c0_11, %c0_12] : memref<1x256xf32, #tpu.memory_space<vmem>>, vector<1x256xf32>
      %14 = vector.broadcast %13 : vector<1x256xf32> to vector<32x256xf32>
      %15 = arith.addf %12, %14 : vector<32x256xf32>
      %cst_13 = arith.constant 0.000000e+00 : f32
      %16 = vector.broadcast %cst_13 : f32 to vector<32x256xf32>
      %17 = arith.maximumf %15, %16 : vector<32x256xf32>
      %18 = arith.truncf %17 : vector<32x256xf32> to vector<32x256xbf16>
      %c0_14 = arith.constant 0 : index
      %c0_15 = arith.constant 0 : index
      %19 = vector.load %arg6[%c0_14, %c0_15] : memref<32x256xbf16, #tpu.memory_space<vmem>>, vector<32x256xbf16>
      tpu.vector_store %arg6[%c0_14, %c0_15], %18 {strides = array<i32>} : memref<32x256xbf16, #tpu.memory_space<vmem>>, vector<32x256xbf16>,
    } else {
    }
    return
  }
  func.func @transform_0(%arg0: i32, %arg1: i32, %arg2: i32) -> (i32, i32) {
    %c0_i32 = arith.constant 0 : i32
    return %arg0, %arg2 : i32, i32
  }
  func.func @transform_1(%arg0: i32, %arg1: i32, %arg2: i32) -> (i32, i32) {
    %c0_i32 = arith.constant 0 : i32
    return %arg2, %arg1 : i32, i32
  }
  func.func @transform_2(%arg0: i32, %arg1: i32, %arg2: i32) -> (i32, i32) {
    %c0_i32 = arith.constant 0 : i32
    %c0_i32_0 = arith.constant 0 : i32
    return %c0_i32, %arg1 : i32, i32
  }
  func.func @transform_3(%arg0: i32, %arg1: i32, %arg2: i32) -> (i32, i32) {
    %c0_i32 = arith.constant 0 : i32
    return %arg0, %arg1 : i32, i32
  }
}

module attributes {stable_mosaic.version = 11 : i64} {
  func.func @_mm_bias_act_kernel(%arg0: i32, %arg1: i32, %arg2: i32, %arg3: memref<128x512xbf16, #tpu.memory_space<vmem>>, %arg4: memref<512x128xbf16, #tpu.memory_space<vmem>>, %arg5: memref<1x128xf32, #tpu.memory_space<vmem>>, %arg6: memref<128x128xf32, #tpu.memory_space<vmem>>, %arg7: memref<128x128xf32, #tpu.memory_space<vmem>>) attributes {dimension_semantics = [#tpu.dimension_semantics<parallel>, #tpu.dimension_semantics<parallel>, #tpu.dimension_semantics<arbitrary>], iteration_bounds = array<i64: 1, 1, 2>, scalar_prefetch = 0 : i64, scratch_operands = 1 : i64, tpu.core_type = #tpu.core_type<tc>, window_params = [{transform_indices = @transform_0, window_bounds = array<i64: 128, 512>}, {transform_indices = @transform_1, window_bounds = array<i64: 512, 128>}, {transform_indices = @transform_2, window_bounds = array<i64: 1, 128>}, {transform_indices = @transform_3, window_bounds = array<i64: 128, 128>}]} {
    %c0_i32 = arith.constant 0 : i32
    %0 = arith.cmpi eq, %arg2, %c0_i32 : i32
    %1 = arith.extui %0 : i1 to i32
    %c0_i32_0 = arith.constant 0 : i32
    %2 = arith.cmpi ne, %1, %c0_i32_0 : i32
    scf.if %2 {
      %cst_9 = arith.constant 0.000000e+00 : f32
      %12 = vector.broadcast %cst_9 : f32 to vector<128x128xf32>
      %c0_10 = arith.constant 0 : index
      %c0_11 = arith.constant 0 : index
      %13 = vector.load %arg7[%c0_10, %c0_11] : memref<128x128xf32, #tpu.memory_space<vmem>>, vector<128x128xf32>
      tpu.vector_store %arg7[%c0_10, %c0_11], %12 {strides = array<i32>} : memref<128x128xf32, #tpu.memory_space<vmem>>, vector<128x128xf32>,
    } else {
    }
    %c0 = arith.constant 0 : index
    %c0_1 = arith.constant 0 : index
    %3 = vector.load %arg7[%c0, %c0_1] : memref<128x128xf32, #tpu.memory_space<vmem>>, vector<128x128xf32>
    %c0_2 = arith.constant 0 : index
    %c0_3 = arith.constant 0 : index
    %4 = vector.load %arg3[%c0_2, %c0_3] : memref<128x512xbf16, #tpu.memory_space<vmem>>, vector<128x512xbf16>
    %c0_4 = arith.constant 0 : index
    %c0_5 = arith.constant 0 : index
    %5 = vector.load %arg4[%c0_4, %c0_5] : memref<512x128xbf16, #tpu.memory_space<vmem>>, vector<512x128xbf16>
    %cst = arith.constant dense<0.000000e+00> : vector<128x128xf32>
    %6 = tpu.matmul %4, %5, %cst {dimension_numbers = #tpu.dot_dimension_numbers<[1], [0], [0], [1], [0, 0, 1, 1], [], []>} : vector<128x512xbf16>, vector<512x128xbf16>, vector<128x128xf32> -> vector<128x128xf32>
    %7 = arith.addf %3, %6 : vector<128x128xf32>
    %c0_6 = arith.constant 0 : index
    %c0_7 = arith.constant 0 : index
    %8 = vector.load %arg7[%c0_6, %c0_7] : memref<128x128xf32, #tpu.memory_space<vmem>>, vector<128x128xf32>
    tpu.vector_store %arg7[%c0_6, %c0_7], %7 {strides = array<i32>} : memref<128x128xf32, #tpu.memory_space<vmem>>, vector<128x128xf32>,
    %c1_i32 = arith.constant 1 : i32
    %9 = arith.cmpi eq, %arg2, %c1_i32 : i32
    %10 = arith.extui %9 : i1 to i32
    %c0_i32_8 = arith.constant 0 : i32
    %11 = arith.cmpi ne, %10, %c0_i32_8 : i32
    scf.if %11 {
      %c0_9 = arith.constant 0 : index
      %c0_10 = arith.constant 0 : index
      %12 = vector.load %arg7[%c0_9, %c0_10] : memref<128x128xf32, #tpu.memory_space<vmem>>, vector<128x128xf32>
      %c0_11 = arith.constant 0 : index
      %c0_12 = arith.constant 0 : index
      %13 = vector.load %arg5[%c0_11, %c0_12] : memref<1x128xf32, #tpu.memory_space<vmem>>, vector<1x128xf32>
      %14 = vector.broadcast %13 : vector<1x128xf32> to vector<128x128xf32>
      %15 = arith.addf %12, %14 : vector<128x128xf32>
      %cst_13 = arith.constant 0.000000e+00 : f32
      %16 = vector.broadcast %cst_13 : f32 to vector<128x128xf32>
      %17 = arith.subf %16, %15 : vector<128x128xf32>
      %cst_14 = arith.constant 6.000000e+01 : f32
      %18 = vector.broadcast %cst_14 : f32 to vector<128x128xf32>
      %19 = arith.minimumf %17, %18 : vector<128x128xf32>
      %20 = math.exp %19 : vector<128x128xf32>
      %cst_15 = arith.constant 1.000000e+00 : f32
      %21 = vector.broadcast %cst_15 : f32 to vector<128x128xf32>
      %22 = arith.addf %21, %20 : vector<128x128xf32>
      %23 = tpu.reciprocal %22 {approx = true} : vector<128x128xf32> -> vector<128x128xf32>
      %cst_16 = arith.constant 0.000000e+00 : f32
      %cst_17 = arith.constant 1.000000e+00 : f32
      %24 = vector.broadcast %cst_16 : f32 to vector<128x128xf32>
      %25 = arith.maximumf %24, %23 : vector<128x128xf32>
      %26 = vector.broadcast %cst_17 : f32 to vector<128x128xf32>
      %27 = arith.minimumf %26, %25 : vector<128x128xf32>
      %c0_18 = arith.constant 0 : index
      %c0_19 = arith.constant 0 : index
      %28 = vector.load %arg6[%c0_18, %c0_19] : memref<128x128xf32, #tpu.memory_space<vmem>>, vector<128x128xf32>
      tpu.vector_store %arg6[%c0_18, %c0_19], %27 {strides = array<i32>} : memref<128x128xf32, #tpu.memory_space<vmem>>, vector<128x128xf32>,
    } else {
    }
    return
  }
  func.func @transform_0(%arg0: i32, %arg1: i32, %arg2: i32) -> (i32, i32) {
    %c0_i32 = arith.constant 0 : i32
    return %arg0, %arg2 : i32, i32
  }
  func.func @transform_1(%arg0: i32, %arg1: i32, %arg2: i32) -> (i32, i32) {
    %c0_i32 = arith.constant 0 : i32
    return %arg2, %arg1 : i32, i32
  }
  func.func @transform_2(%arg0: i32, %arg1: i32, %arg2: i32) -> (i32, i32) {
    %c0_i32 = arith.constant 0 : i32
    %c0_i32_0 = arith.constant 0 : i32
    return %c0_i32, %arg1 : i32, i32
  }
  func.func @transform_3(%arg0: i32, %arg1: i32, %arg2: i32) -> (i32, i32) {
    %c0_i32 = arith.constant 0 : i32
    return %arg0, %arg1 : i32, i32
  }
}

</mosaic_0001>

<bundles_post_ra>
// kernel: model_forward.10
= control target key start
LH: loop header
LB: loop body
LE: loop exit
PB: predicated region body
PF: predicated region fallthrough
CT: control target
= control target key end

     0   :  { %8 = vsyncpa [#allocation4], 0  ;;  %s856_s0 = inlined_call_operand.vmem [shape: bf16[128,128], index: 0, kind: input, shape index: {}]   ;;  %s857_s1 = inlined_call_operand.hbm [shape: bf16[128,128], index: 1, kind: input, shape index: {}]   ;;  %s858_s2 = inlined_call_operand.hbm [shape: f32[1,128], index: 2, kind: input, shape index: {}]   ;;  %s859_s3 = inlined_call_operand.vmem [shape: bf16[128,128], index: 3, kind: output, shape index: {}]  }
   0x1   :  { %9 = vsyncpa [#allocation6], 0  ;;  %s738_s12 = smov [#allocation3]   ;;  %s690_s16 = scalar_lea.hbm %s857_s1, 1024 }
   0x2   :  { %s17_s13 = sshll.u32 %s738_s12, 4  ;;  %p691_p0 = scmp.ne.s32.totalorder %s857_s1, %s690_s16  ;;  %s18_s13 = int_to_ptr.vmem [resolvable:$true] %s17_s13 }
   0x3   :  { %p694_p1 = scmp.lt.u32.totalorder %s690_s16, %s857_s1 }
   0x5   :  { %p696_p2 = pnand %p694_p1, %p691_p0 }
   0x7   :  { %699 = shalt.err (!%p696_p2)
}
   0x8   :  { %s700_s21 = scalar_lea.vmem %s18_s13, 1024  ;;  %p705_p4 = scmp.lt.s32.totalorder %s18_s13, %s18_s13 }
   0x9   :  { %p701_p3 = scmp.ne.s32.totalorder %s18_s13, %s700_s21  ;;  %p706_p5 = scmp.lt.s32.totalorder %s700_s21, %s700_s21 }
   0xb   :  { %p707_p6 = por %p706_p5, %p705_p4 }
   0xd   :  { %p708_p7 = pnand %p707_p6, %p701_p3 }
   0xf   :  { %711 = shalt.err (!%p708_p7)
}
  0x10   :  { %s739_s22 = smov 64   ;;  %s740_s23 = smov 4  }
  0x11   :  { %23 = dma.hbm_to_vmem [thread:$0]  %s857_s1, 1024, %s18_s13, [#allocation4], %s739_s22, %s739_s22, %s740_s23  }
  0x12   :  { %s741_s26 = smov [#allocation5]   ;;  %s712_s30 = scalar_lea.hbm %s858_s2, 16 }
  0x13   :  { %s30_s27 = sshll.u32 %s741_s26, 4  ;;  %p713_p8 = scmp.ne.s32.totalorder %s858_s2, %s712_s30  ;;  %s31_s27 = int_to_ptr.vmem [resolvable:$true] %s30_s27 }
  0x14   :  { %p716_p9 = scmp.lt.u32.totalorder %s712_s30, %s858_s2 }
  0x16   :  { %p718_p10 = pnand %p716_p9, %p713_p8 }
  0x18   :  { %721 = shalt.err (!%p718_p10)
}
  0x19   :  { %s722_s8 = scalar_lea.vmem %s31_s27, 16  ;;  %s726_s1 = scalar_lea.vmem %s31_s27, 32 }
  0x1a   :  { %p723_p11 = scmp.ne.s32.totalorder %s31_s27, %s722_s8  ;;  %p727_p12 = scmp.lt.s32.totalorder %s31_s27, %s31_s27 }
  0x1b   :  { %p728_p13 = scmp.lt.s32.totalorder %s726_s1, %s722_s8 }
  0x1d   :  { %p729_p0 = por %p728_p13, %p727_p12 }
  0x1f   :  { %p730_p1 = pnand %p729_p0, %p723_p11 }
  0x21   :  { %733 = shalt.err (!%p730_p1)
}
  0x22   :  { %33 = dma.hbm_to_vmem [thread:$0]  %s858_s2, 16, %s31_s27, [#allocation6]  }
  0x23   :  { %734 = dma.done.wait [#allocation4], 1024  }
  0x24   :  { %735 = vsyncadd [#allocation4], 4294966272 }
  0x25   :  { %736 = dma.done.wait [#allocation6], 16  }
  0x26   :  { %737 = vsyncadd [#allocation6], 4294967280  ;;  %v674_v0 = vld [vmem:[#allocation3] sm:$0xff]   ;;  %v675_v1 = vld [vmem:[#allocation3 + $0x8] sm:$0xff]  }
  0x27   :  { %622 = vmatprep.subr.bf16.mxu0 %v674_v0  ;;  %654 = vmatprep.subr.bf16.mxu1 %v674_v0  ;;  %v676_v2 = vld [vmem:[#allocation3 + $0x10] sm:$0xff]   ;;  %v677_v3 = vld [vmem:[#allocation3 + $0x18] sm:$0xff]   ;;  %v682_v4 = vld [vmem:[%s856_s0] sm:$0xff]  }
  0x28   :  { %623 = vmatpush3.bf16.msra.mxu0 %v674_v0  ;;  %662 = vmatpush3.bf16.msra.mxu1 %v674_v0  ;;  %v683_v5 = vld [vmem:[%s856_s0 + $0x20] sm:$0xff]   ;;  %v679_v7 = vld [vmem:[#allocation3 + $0x28] sm:$0xff]   ;;  %v680_v8 = vld [vmem:[#allocation3 + $0x30] sm:$0xff]  }
  0x29   :  { %624 = vmatprep.subr.bf16.mxu0 %v675_v1  ;;  %655 = vmatprep.subr.bf16.mxu1 %v675_v1  ;;  %v678_v6 = vld [vmem:[#allocation3 + $0x20] sm:$0xff]   ;;  %v681_v9 = vld [vmem:[#allocation3 + $0x38] sm:$0xff]   ;;  %v684_v10 = vld [vmem:[%s856_s0 + $0x8] sm:$0xff]  }
  0x2a   :  { %638 = vmatprep.mubr.bf16.mxu0 %v682_v4  ;;  %646 = vmatprep.mubr.bf16.mxu1 %v683_v5  ;;  %v685_v11 = vld [vmem:[%s856_s0 + $0x28] sm:$0xff]   ;;  %v686_v12 = vld [vmem:[%s856_s0 + $0x10] sm:$0xff]   ;;  %v688_v14 = vld [vmem:[%s856_s0 + $0x18] sm:$0xff]  }
  0x2b   :  { %v687_v13 = vld [vmem:[%s856_s0 + $0x30] sm:$0xff]   ;;  %v689_v15 = vld [vmem:[%s856_s0 + $0x38] sm:$0xff]   ;;  %v810_v16 = vld [vmem:[#allocation5] ss:$0 sm:$0xff] }
  0x2c   :  { %625 = vmatpush3.bf16.msra.mxu0 %v675_v1  ;;  %663 = vmatpush3.bf16.msra.mxu1 %v675_v1 }
  0x2d   :  { %626 = vmatprep.subr.bf16.mxu0 %v676_v2  ;;  %656 = vmatprep.subr.bf16.mxu1 %v676_v2 }
  0x30   :  { %627 = vmatpush3.bf16.msra.mxu0 %v676_v2  ;;  %664 = vmatpush3.bf16.msra.mxu1 %v676_v2 }
  0x31   :  { %628 = vmatprep.subr.bf16.mxu0 %v677_v3  ;;  %657 = vmatprep.subr.bf16.mxu1 %v677_v3 }
  0x34   :  { %629 = vmatpush3.bf16.msra.mxu0 %v677_v3  ;;  %665 = vmatpush3.bf16.msra.mxu1 %v677_v3 }
  0x35   :  { %630 = vmatprep.subr.bf16.mxu0 %v678_v6  ;;  %658 = vmatprep.subr.bf16.mxu1 %v678_v6 }
  0x38   :  { %631 = vmatpush3.bf16.msra.mxu0 %v678_v6  ;;  %666 = vmatpush3.bf16.msra.mxu1 %v678_v6 }
  0x39   :  { %632 = vmatprep.subr.bf16.mxu0 %v679_v7  ;;  %659 = vmatprep.subr.bf16.mxu1 %v679_v7 }
  0x3c   :  { %633 = vmatpush3.bf16.msra.mxu0 %v679_v7  ;;  %667 = vmatpush3.bf16.msra.mxu1 %v679_v7 }
  0x3d   :  { %634 = vmatprep.subr.bf16.mxu0 %v680_v8  ;;  %660 = vmatprep.subr.bf16.mxu1 %v680_v8 }
  0x40   :  { %635 = vmatpush3.bf16.msra.mxu0 %v680_v8  ;;  %668 = vmatpush3.bf16.msra.mxu1 %v680_v8 }
  0x41   :  { %636 = vmatprep.subr.bf16.mxu0 %v681_v9  ;;  %661 = vmatprep.subr.bf16.mxu1 %v681_v9 }
  0x44   :  { %637 = vmatpush3.bf16.msra.mxu0 %v681_v9  ;;  %669 = vmatpush3.bf16.msra.mxu1 %v681_v9 }
  0x47   :  { %639 = vmatmul.mubr.bf16.vlgmr.msra.gmra.mrb[0].mxu0 %v684_v10  ;;  %647 = vmatmul.mubr.bf16.vlgmr.msra.gmra.mrb[0].mxu1 %v685_v11 }
  0x48   :  { %642 = vmatprep.mubr.bf16.mxu0 %v686_v12  ;;  %650 = vmatprep.mubr.bf16.mxu1 %v687_v13 }
  0x4f   :  { %643 = vmatmul.mubr.bf16.gmra.mrb[4].mxu0 %v688_v14  ;;  %651 = vmatmul.mubr.bf16.gmra.mrb[4].mxu1 %v689_v15 }
 0x11a   :  { %v640_v17 = vpop.f32.mrb[0].mxu0  ;;  %v648_v18 = vpop.f32.mrb[0].mxu1 }
 0x11b   :  { %v362_v19 = vadd.f32 %v640_v17, %v810_v16  ;;  %v370_v20 = vadd.f32 %v648_v18, %v810_v16  ;;  %v239_v21 = vpop.f32.mrb[1].mxu0  ;;  %v271_v22 = vpop.f32.mrb[1].mxu1 }
 0x11c   :  { %v360_v23 = vadd.f32 %v810_v16, %v239_v21  ;;  %v368_v24 = vadd.f32 %v810_v16, %v271_v22  ;;  %v641_v25 = vpop.f32.mrb[2].mxu0  ;;  %v649_v26 = vpop.f32.mrb[2].mxu1 }
 0x11d   :  { %vm378_vm0 = vcmp.ge.f32.partialorder %v362_v19, 0.0  ;;  %v394_v27 = vmul.f32 0.01, %v362_v19  ;;  %vm386_vm1 = vcmp.ge.f32.partialorder %v370_v20, 0.0  ;;  %v402_v28 = vmul.f32 0.01, %v370_v20 }
 0x11e   :  { %vm376_vm2 = vcmp.ge.f32.partialorder %v360_v23, 0.0  ;;  %v392_v29 = vmul.f32 0.01, %v360_v23  ;;  %vm384_vm3 = vcmp.ge.f32.partialorder %v368_v24, 0.0  ;;  %v400_v30 = vmul.f32 0.01, %v368_v24 }
 0x11f   :  { %v363_v31 = vadd.f32 %v641_v25, %v810_v16  ;;  %v371_v32 = vadd.f32 %v649_v26, %v810_v16  ;;  %v242_v33 = vpop.f32.mrb[3].mxu0  ;;  %v274_v34 = vpop.f32.mrb[3].mxu1  ;;  %v410_v35 = vsel %vm378_vm0, %v362_v19, %v394_v27  ;;  %v418_v36 = vsel %vm386_vm1, %v370_v20, %v402_v28 }
 0x120   :  { %v361_v37 = vadd.f32 %v810_v16, %v242_v33  ;;  %v369_v38 = vadd.f32 %v810_v16, %v274_v34  ;;  %v408_v43 = vsel %vm376_vm2, %v360_v23, %v392_v29  ;;  %v416_v44 = vsel %vm384_vm3, %v368_v24, %v400_v30 }
 0x121   :  { %vm379_vm4 = vcmp.ge.f32.partialorder %v363_v31, 0.0  ;;  %v395_v39 = vmul.f32 0.01, %v363_v31  ;;  %vm387_vm5 = vcmp.ge.f32.partialorder %v371_v32, 0.0  ;;  %v403_v40 = vmul.f32 0.01, %v371_v32 }
 0x122   :  { %vm377_vm6 = vcmp.ge.f32.partialorder %v361_v37, 0.0  ;;  %v393_v41 = vmul.f32 0.01, %v361_v37  ;;  %vm385_vm7 = vcmp.ge.f32.partialorder %v369_v38, 0.0  ;;  %v401_v42 = vmul.f32 0.01, %v369_v38 }
 0x123   :  { %v411_v45 = vsel %vm379_vm4, %v363_v31, %v395_v39  ;;  %v419_v46 = vsel %vm387_vm5, %v371_v32, %v403_v40  ;;  %v644_v47 = vpop.f32.mrb[4].mxu0  ;;  %v652_v48 = vpop.f32.mrb[4].mxu1 }
 0x124   :  { %v567_v49 = vpack.c.bf16 %v411_v45, %v410_v35  ;;  %v587_v50 = vpack.c.bf16 %v419_v46, %v418_v36  ;;  %v409_v51 = vsel %vm377_vm6, %v361_v37, %v393_v41  ;;  %v417_v52 = vsel %vm385_vm7, %v369_v38, %v401_v42  ;;  %v255_v53 = vpop.f32.mrb[5].mxu0  ;;  %v287_v54 = vpop.f32.mrb[5].mxu1 }
 0x125   :  { %v562_v55 = vpack.c.bf16 %v409_v51, %v408_v43  ;;  %v582_v56 = vpack.c.bf16 %v417_v52, %v416_v44  ;;  %v366_v57 = vadd.f32 %v644_v47, %v810_v16  ;;  %v374_v58 = vadd.f32 %v652_v48, %v810_v16  ;;  %v645_v59 = vpop.f32.mrb[6].mxu0  ;;  %v653_v60 = vpop.f32.mrb[6].mxu1 }
 0x126   :  { %599 = vst [vmem:[%s859_s3 + $0x8] sm:$0xff] %v567_v49   ;;  %603 = vst [vmem:[%s859_s3 + $0x28] sm:$0xff] %v587_v50   ;;  %v364_v61 = vadd.f32 %v810_v16, %v255_v53  ;;  %v372_v62 = vadd.f32 %v810_v16, %v287_v54  ;;  %v367_v63 = vadd.f32 %v645_v59, %v810_v16  ;;  %v258_v1 = vpop.f32.mrb[7].mxu0  ;;  %v290_v2 = vpop.f32.mrb[7].mxu1 }
 0x127   :  { %v375_v0 = vadd.f32 %v653_v60, %v810_v16  ;;  %563 = vst [vmem:[%s859_s3] sm:$0xff] %v562_v55   ;;  %602 = vst [vmem:[%s859_s3 + $0x20] sm:$0xff] %v582_v56   ;;  %v398_v3 = vmul.f32 0.01, %v366_v57  ;;  %vm382_vm8 = vcmp.ge.f32.partialorder %v366_v57, 0.0  ;;  %v406_v4 = vmul.f32 0.01, %v374_v58 }
 0x128   :  { %vm390_vm9 = vcmp.ge.f32.partialorder %v374_v58, 0.0  ;;  %vm380_vm10 = vcmp.ge.f32.partialorder %v364_v61, 0.0  ;;  %vm383_vm11 = vcmp.ge.f32.partialorder %v367_v63, 0.0  ;;  %v399_v5 = vmul.f32 0.01, %v367_v63 }
 0x129   :  { %v396_v6 = vmul.f32 0.01, %v364_v61  ;;  %vm388_vm12 = vcmp.ge.f32.partialorder %v372_v62, 0.0  ;;  %vm391_vm13 = vcmp.ge.f32.partialorder %v375_v0, 0.0  ;;  %v407_v7 = vmul.f32 0.01, %v375_v0 }
 0x12a   :  { %v414_v8 = vsel %vm382_vm8, %v366_v57, %v398_v3  ;;  %v415_v9 = vsel %vm383_vm11, %v367_v63, %v399_v5  ;;  %v365_v10 = vadd.f32 %v810_v16, %v258_v1  ;;  %v373_v11 = vadd.f32 %v810_v16, %v290_v2 }
 0x12b   :  { %v422_v12 = vsel %vm390_vm9, %v374_v58, %v406_v4  ;;  %v404_v13 = vmul.f32 0.01, %v372_v62  ;;  %v577_v14 = vpack.c.bf16 %v415_v9, %v414_v8  ;;  %v423_v15 = vsel %vm391_vm13, %v375_v0, %v407_v7 }
 0x12c   :  { %v597_v17 = vpack.c.bf16 %v423_v15, %v422_v12  ;;  %vm381_vm14 = vcmp.ge.f32.partialorder %v365_v10, 0.0  ;;  %v397_v18 = vmul.f32 0.01, %v365_v10  ;;  %vm389_vm15 = vcmp.ge.f32.partialorder %v373_v11, 0.0 }
 0x12d   :  { %601 = vst [vmem:[%s859_s3 + $0x18] sm:$0xff] %v577_v14   ;;  %v405_v19 = vmul.f32 0.01, %v373_v11  ;;  %v412_v20 = vsel %vm380_vm10, %v364_v61, %v396_v6  ;;  %v420_v21 = vsel %vm388_vm12, %v372_v62, %v404_v13 }
 0x12e   :  { %605 = vst [vmem:[%s859_s3 + $0x38] sm:$0xff] %v597_v17   ;;  %v413_v16 = vsel %vm381_vm14, %v365_v10, %v397_v18 }
 0x12f   :  { %v572_v22 = vpack.c.bf16 %v413_v16, %v412_v20  ;;  %v421_v23 = vsel %vm389_vm15, %v373_v11, %v405_v19 }
 0x130   :  { %v592_v24 = vpack.c.bf16 %v421_v23, %v420_v21 }
 0x131   :  { %600 = vst [vmem:[%s859_s3 + $0x10] sm:$0xff] %v572_v22  }
 0x132   :  { %604 = vst [vmem:[%s859_s3 + $0x30] sm:$0xff] %v592_v24  }
 0x133   :  { %508 = vsyncpa [#allocation4], 1 }
 0x134   :  { %509 = vsyncpa [#allocation6], 1 }

// kernel: model_forward.11
= control target key start
LH: loop header
LB: loop body
LE: loop exit
PB: predicated region body
PF: predicated region fallthrough
CT: control target
= control target key end

     0   :  { %s1152_s12 = smov 0   ;;  %s1154_s13 = smov 0   ;;  %s1272_s0 = inlined_call_operand.vmem [shape: bf16[32,1024], index: 0, kind: input, shape index: {}]   ;;  %s1273_s1 = inlined_call_operand.vmem [shape: bf16[1024,128], index: 1, kind: input, shape index: {}]   ;;  %s1274_s2 = inlined_call_operand.vmem [shape: f32[1,128], index: 2, kind: input, shape index: {}]   ;;  %s1275_s3 = inlined_call_operand.vmem [shape: bf16[32,128], index: 3, kind: output, shape index: {}]  }
   0x1   :  { %s1156_s14 = smov 0   ;;  %s1158_s15 = smov 0  }
   0x2   :  { %s1160_s16 = smov 0  }
   0x3 LB: > { %s25_s17 = sadd.s32 1, %s1125_s15  ;;  %p48_p1 = scmp.ne.s32.totalorder %s1117_s13, %s1113_s12  ;;  %s1129_s16 = sphi %s1160_s16, %s13_s16   ;;  %s1125_s15 = sphi %s1158_s15, %s1279_s15   ;;  %s1121_s14 = sphi %s1156_s14, %s1278_s14   ;;  %s1117_s13 = sphi %s1154_s13, %s1277_s13   ;;  %s1113_s12 = sphi %s1152_s12, %s1276_s12  }
   0x4   : > { %p26_p0 = scmp.ge.s32.totalorder %s25_s17, 2  ;;  %p49_p2 = scmp.eq.s32.totalorder %s1129_s16, 0 }
   0x5   : > { %s41_s19 = sadd.s32 1, %s1117_s13  ;;  %p875_p5 = scmp.ge.s32.totalorder %s1129_s16, 2 }
   0x6   : > { %s1281_s17 = smov (%p26_p0, %s25_s17), 0  ;;  %p50_p3 = por %p49_p2, %p48_p1 }
   0x7   : > { %s37_s18 = ssub.s32 %s1125_s15, %s1281_s17  ;;  %162 = sbr.rel (%p875_p5) target bundleno = 22 (0x16), region = 20 }
   0x8   : > { %p39_p4 = scmp.eq.s32.totalorder %s37_s18, 0 }
   0xa   : > { %s1187_s20 = scalar_select %p39_p4, %s1117_s13, %s41_s19  }
   0xe   : > { %165 = sbr.rel (!%p50_p3) target bundleno = 22 (0x16), region = 24  ;;  %s167_s21 = sand.u32 (%p50_p3), 1, %s1117_s13  }
   0xf   : > { %s934_s22 = sshll.u32 (%p50_p3), %s1125_s15, 4  ;;  %s876_s23 = sshll.u32 (%p50_p3), %s167_s21, 6 }
  0x10   : > { %s175_s26 = scalar_lea.vmem (%p50_p3), %s1272_s0, %s934_s22  ;;  %s169_s27 = scalar_lea.vmem (%p50_p3), [#allocation3], %s876_s23 }
  0x11   : > { %v188_v0 = vld [vmem:[%s175_s26] sm:$0xff] (%p50_p3)  ;;  %v190_v1 = vld [vmem:[%s175_s26 + $0x8] sm:$0xff] (%p50_p3) }
  0x12   : > { %v192_v2 = vld [vmem:[%s175_s26 + $0x20] sm:$0xff] (%p50_p3)  ;;  %189 = vst [vmem:[%s169_s27] sm:$0xff] (%p50_p3), %v188_v0  ;;  %191 = vst [vmem:[%s169_s27 + $0x8] sm:$0xff] (%p50_p3), %v190_v1  ;;  %v194_v3 = vld [vmem:[%s175_s26 + $0x28] sm:$0xff] (%p50_p3) }
  0x13   : > { %193 = vst [vmem:[%s169_s27 + $0x10] sm:$0xff] (%p50_p3), %v192_v2  ;;  %v196_v4 = vld [vmem:[%s175_s26 + $0x40] sm:$0xff] (%p50_p3)  ;;  %v198_v5 = vld [vmem:[%s175_s26 + $0x48] sm:$0xff] (%p50_p3)  ;;  %195 = vst [vmem:[%s169_s27 + $0x18] sm:$0xff] (%p50_p3), %v194_v3 }
  0x14   : > { %197 = vst [vmem:[%s169_s27 + $0x20] sm:$0xff] (%p50_p3), %v196_v4  ;;  %199 = vst [vmem:[%s169_s27 + $0x28] sm:$0xff] (%p50_p3), %v198_v5  ;;  %v200_v6 = vld [vmem:[%s175_s26 + $0x60] sm:$0xff] (%p50_p3)  ;;  %v202_v7 = vld [vmem:[%s175_s26 + $0x68] sm:$0xff] (%p50_p3) }
  0x15   : > { %201 = vst [vmem:[%s169_s27 + $0x30] sm:$0xff] %v200_v6  ;;  %203 = vst [vmem:[%s169_s27 + $0x38] sm:$0xff] %v202_v7 }
  0x16 PF: > { %p879_p6 = scmp.ge.s32.totalorder %s1129_s16, 1  ;;  %p220_p7 = scmp.lt.s32.totalorder %s1129_s16, 3 }
  0x18   : > { %p221_p8 = pnand %p879_p6, %p220_p7 }
  0x19   : > { %s227_s28 = sand.u32 (!%p221_p8), 1, %s1113_s12   ;;  %s881_s29 = sshll.u32 (!%p221_p8), %s1121_s14, 6 }
  0x1a   : > { %224 = sbr.rel (%p221_p8) target bundleno = 320 (0x140), region = 51  ;;  %s880_s30 = sshll.u32 (!%p221_p8), %s227_s28, 6 }
  0x1b   : > { %p267_p9 = scmp.lt.s32.totalorder (!%p221_p8), %s881_s29, 127  ;;  %s1204_s8 = scalar_lea.vmem (!%p221_p8), [#allocation3], %s880_s30 }
  0x1c   : > { %p883_p10 = scmp.ne.s32.totalorder (!%p221_p8), %s1121_s14, 0 }
  0x21   : > { %s1283_s29 = smov (!%p267_p9, %s881_s29), 127  ;;  %291 = sbr.rel (%p883_p10) target bundleno = 40 (0x28), region = 59 }
  0x22   : > { %s882_s4 = sshll.u32 %s1283_s29, 2  ;;  %v1131_v8 = vmov (!%p883_p10), 0.0  }
  0x23   : > { %s1202_s7 = scalar_lea.vmem %s1273_s1, %s882_s4  ;;  %292 = vst [vmem:[#allocation2] sm:$0xff] (!%p883_p10), %v1131_v8  ;;  %293 = vst [vmem:[#allocation2 + $0x8] sm:$0xff] (!%p883_p10), %v1131_v8 }
  0x24   : > { %294 = vst [vmem:[#allocation2 + $0x10] sm:$0xff] (!%p883_p10), %v1131_v8  ;;  %295 = vst [vmem:[#allocation2 + $0x18] sm:$0xff] (!%p883_p10), %v1131_v8 }
  0x28 PF: > { %v1047_v9 = vld [vmem:[%s1202_s7 + $0x40] sm:$0xff]   ;;  %v1051_v13 = vld [vmem:[%s1202_s7 + $0x48] sm:$0xff]   ;;  %v1055_v17 = vld [vmem:[%s1202_s7 + $0x50] sm:$0xff]   ;;  %p924_p11 = scmp.ne.s32.totalorder %s1121_s14, 1 }
  0x29   : > { %v1048_v10 = vld [vmem:[%s1202_s7 + $0xc0] sm:$0xff]   ;;  %950 = vmatprep.subr.bf16.mxu0 %v1047_v9  ;;  %v1052_v14 = vld [vmem:[%s1202_s7 + $0xc8] sm:$0xff]   ;;  %v1056_v18 = vld [vmem:[%s1202_s7 + $0xd0] sm:$0xff]  }
  0x2a   : > { %v1049_v11 = vld [vmem:[%s1202_s7] sm:$0xff]   ;;  %978 = vmatprep.subr.bf16.mxu1 %v1048_v10  ;;  %v1053_v15 = vld [vmem:[%s1202_s7 + $0x8] sm:$0xff]   ;;  %v1057_v19 = vld [vmem:[%s1202_s7 + $0x10] sm:$0xff]  }
  0x2b   : > { %v1050_v12 = vld [vmem:[%s1202_s7 + $0x80] sm:$0xff]   ;;  %951 = vmatpush3.bf16.msra.mxu0 %v1049_v11  ;;  %v1054_v16 = vld [vmem:[%s1202_s7 + $0x88] sm:$0xff]   ;;  %v1058_v20 = vld [vmem:[%s1202_s7 + $0x90] sm:$0xff]  }
  0x2c   : > { %979 = vmatpush3.bf16.msra.mxu1 %v1050_v12  ;;  %952 = vmatprep.subr.bf16.mxu0 %v1051_v13  ;;  %v1059_v21 = vld [vmem:[%s1202_s7 + $0x58] sm:$0xff]   ;;  %v1063_v25 = vld [vmem:[%s1202_s7 + $0x60] sm:$0xff]   ;;  %v1067_v29 = vld [vmem:[%s1202_s7 + $0x68] sm:$0xff]  }
  0x2d   : > { %980 = vmatprep.subr.bf16.mxu1 %v1052_v14  ;;  %v1060_v22 = vld [vmem:[%s1202_s7 + $0xd8] sm:$0xff]   ;;  %v1064_v26 = vld [vmem:[%s1202_s7 + $0xe0] sm:$0xff]   ;;  %v1068_v30 = vld [vmem:[%s1202_s7 + $0xe8] sm:$0xff]  }
  0x2e   : > { %v1061_v23 = vld [vmem:[%s1202_s7 + $0x18] sm:$0xff]   ;;  %v1065_v27 = vld [vmem:[%s1202_s7 + $0x20] sm:$0xff]   ;;  %v1069_v31 = vld [vmem:[%s1202_s7 + $0x28] sm:$0xff]  }
  0x2f   : > { %953 = vmatpush3.bf16.msra.mxu0 %v1053_v15  ;;  %v1062_v24 = vld [vmem:[%s1202_s7 + $0x98] sm:$0xff]   ;;  %v1066_v28 = vld [vmem:[%s1202_s7 + $0xa0] sm:$0xff]   ;;  %v1070_v32 = vld [vmem:[%s1202_s7 + $0xa8] sm:$0xff]  }
  0x30   : > { %981 = vmatpush3.bf16.msra.mxu1 %v1054_v16  ;;  %954 = vmatprep.subr.bf16.mxu0 %v1055_v17  ;;  %v1071_v33 = vld [vmem:[%s1202_s7 + $0x70] sm:$0xff]   ;;  %v1075_v37 = vld [vmem:[%s1202_s7 + $0x78] sm:$0xff]   ;;  %v296_v58 = vld [vmem:[#allocation2] sm:$0xff] }
  0x31   : > { %982 = vmatprep.subr.bf16.mxu1 %v1056_v18  ;;  %v1072_v34 = vld [vmem:[%s1202_s7 + $0xf0] sm:$0xff]   ;;  %v1076_v38 = vld [vmem:[%s1202_s7 + $0xf8] sm:$0xff]   ;;  %v297_v63 = vld [vmem:[#allocation2 + $0x8] sm:$0xff] }
  0x32   : > { %v1073_v35 = vld [vmem:[%s1202_s7 + $0x30] sm:$0xff]   ;;  %v1077_v39 = vld [vmem:[%s1202_s7 + $0x38] sm:$0xff]  }
  0x33   : > { %955 = vmatpush3.bf16.msra.mxu0 %v1057_v19  ;;  %v1074_v36 = vld [vmem:[%s1202_s7 + $0xb0] sm:$0xff]   ;;  %v1078_v40 = vld [vmem:[%s1202_s7 + $0xb8] sm:$0xff]  }
  0x34   : > { %983 = vmatpush3.bf16.msra.mxu1 %v1058_v20  ;;  %956 = vmatprep.subr.bf16.mxu0 %v1059_v21  ;;  %v1079_v41 = vld [vmem:[%s1204_s8] ss:$16 sps:$4 sm:$0xff]   ;;  %v1081_v42 = vld [vmem:[%s1204_s8 + $0x4] ss:$16 sps:$4 sm:$0xff]   ;;  %v1082_v43 = vld [vmem:[%s1204_s8 + $0x8] ss:$16 sps:$4 sm:$0xff]  }
  0x35   : > { %984 = vmatprep.subr.bf16.mxu1 %v1060_v22  ;;  %v1084_v44 = vld [vmem:[%s1204_s8 + $0xc] ss:$16 sps:$4 sm:$0xff]   ;;  %636 = vmatprep.mubr.bf16.mxu0 %v1081_v42  ;;  %v1085_v45 = vld [vmem:[%s1204_s8 + $0x24] ss:$16 sps:$4 sm:$0xff]   ;;  %v1089_v47 = vld [vmem:[%s1204_s8 + $0x20] ss:$16 sps:$4 sm:$0xff]  }
  0x36   : > { %685 = vmatprep.mubr.bf16.mxu1 %v1084_v44  ;;  %v1087_v46 = vld [vmem:[%s1204_s8 + $0x2c] ss:$16 sps:$4 sm:$0xff]   ;;  %v1090_v48 = vld [vmem:[%s1204_s8 + $0x28] ss:$16 sps:$4 sm:$0xff]   ;;  %v298_v12 = vld [vmem:[#allocation2 + $0x10] sm:$0xff] }
  0x37   : > { %957 = vmatpush3.bf16.msra.mxu0 %v1061_v23  ;;  %v299_v17 = vld [vmem:[#allocation2 + $0x18] sm:$0xff]  ;;  %v925_v23 = vld [vmem:[%s1274_s2] ss:$0 sm:$0xff] (!%p924_p11) }
  0x38   : > { %985 = vmatpush3.bf16.msra.mxu1 %v1062_v24  ;;  %958 = vmatprep.subr.bf16.mxu0 %v1063_v25 }
  0x39   : > { %986 = vmatprep.subr.bf16.mxu1 %v1064_v26 }
  0x3b   : > { %959 = vmatpush3.bf16.msra.mxu0 %v1065_v27 }
  0x3c   : > { %987 = vmatpush3.bf16.msra.mxu1 %v1066_v28  ;;  %960 = vmatprep.subr.bf16.mxu0 %v1067_v29 }
  0x3d   : > { %988 = vmatprep.subr.bf16.mxu1 %v1068_v30 }
  0x3f   : > { %961 = vmatpush3.bf16.msra.mxu0 %v1069_v31 }
  0x40   : > { %989 = vmatpush3.bf16.msra.mxu1 %v1070_v32  ;;  %962 = vmatprep.subr.bf16.mxu0 %v1071_v33 }
  0x41   : > { %990 = vmatprep.subr.bf16.mxu1 %v1072_v34 }
  0x43   : > { %963 = vmatpush3.bf16.msra.mxu0 %v1073_v35 }
  0x44   : > { %991 = vmatpush3.bf16.msra.mxu1 %v1074_v36  ;;  %964 = vmatprep.subr.bf16.mxu0 %v1075_v37 }
  0x45   : > { %992 = vmatprep.subr.bf16.mxu1 %v1076_v38 }
  0x47   : > { %965 = vmatpush3.bf16.msra.mxu0 %v1077_v39 }
  0x48   : > { %993 = vmatpush3.bf16.msra.mxu1 %v1078_v40 }
  0x4a   : > { %637 = vmatmul.mubr.bf16.vlgmr.msra.gmra.mrb[0].mxu0 %v1079_v41 }
  0x4b   : > { %686 = vmatmul.mubr.bf16.vlgmr.msra.gmra.mrb[0].mxu1 %v1082_v43  ;;  %644 = vmatprep.mubr.bf16.mxu0 %v1085_v45 }
  0x4c   : > { %693 = vmatprep.mubr.bf16.mxu1 %v1087_v46 }
  0x52   : > { %645 = vmatmul.mubr.bf16.gmra.mrb[4].mxu0 %v1089_v47 }
  0x53   : > { %694 = vmatmul.mubr.bf16.gmra.mrb[4].mxu1 %v1090_v48 }
 0x11d   : > { %v966_v49 = vpop.f32.mrb[0].mxu0 }
 0x11e   : > { %v994_v50 = vpop.f32.mrb[0].mxu1  ;;  %v967_v51 = vpop.f32.mrb[1].mxu0 }
 0x11f   : > { %v968_v52 = vadd.f32 %v967_v51, %v966_v49  ;;  %v995_v53 = vpop.f32.mrb[1].mxu1  ;;  %v969_v54 = vpop.f32.mrb[2].mxu0 }
 0x120   : > { %v996_v55 = vadd.f32 %v995_v53, %v994_v50  ;;  %v997_v56 = vpop.f32.mrb[2].mxu1  ;;  %v970_v57 = vpop.f32.mrb[3].mxu0 }
 0x121   : > { %v971_v59 = vadd.f32 %v970_v57, %v969_v54  ;;  %v998_v60 = vpop.f32.mrb[3].mxu1 }
 0x122   : > { %v688_v61 = vadd.f32 %v996_v55, %v968_v52  ;;  %v999_v62 = vadd.f32 %v998_v60, %v997_v56 }
 0x124   : > { %v702_v0 = vadd.f32 %v688_v61, %v296_v58  ;;  %v691_v1 = vadd.f32 %v999_v62, %v971_v59 }
 0x125   : > { %v972_v2 = vpop.f32.mrb[4].mxu0 }
 0x126   : > { %706 = vst [vmem:[#allocation2] sm:$0xff] %v702_v0  ;;  %v703_v3 = vadd.f32 %v691_v1, %v297_v63  ;;  %v1000_v4 = vpop.f32.mrb[4].mxu1  ;;  %v973_v5 = vpop.f32.mrb[5].mxu0 }
 0x127   : > { %v974_v6 = vadd.f32 %v973_v5, %v972_v2  ;;  %v1001_v7 = vpop.f32.mrb[5].mxu1  ;;  %v975_v8 = vpop.f32.mrb[6].mxu0 }
 0x128   : > { %707 = vst [vmem:[#allocation2 + $0x8] sm:$0xff] %v703_v3  ;;  %v1002_v9 = vadd.f32 %v1001_v7, %v1000_v4  ;;  %v1003_v10 = vpop.f32.mrb[6].mxu1  ;;  %v976_v11 = vpop.f32.mrb[7].mxu0 }
 0x129   : > { %v977_v13 = vadd.f32 %v976_v11, %v975_v8  ;;  %v1004_v14 = vpop.f32.mrb[7].mxu1 }
 0x12a   : > { %v696_v15 = vadd.f32 %v1002_v9, %v974_v6  ;;  %v1005_v16 = vadd.f32 %v1004_v14, %v1003_v10  ;;  %713 = sbr.rel (%p924_p11) target bundleno = 320 (0x140), region = 63 }
 0x12c   : > { %v704_v18 = vadd.f32 %v696_v15, %v298_v12  ;;  %v699_v19 = vadd.f32 %v1005_v16, %v977_v13 }
 0x12d   : > { %v714_v21 = vld [vmem:[#allocation2] sm:$0xff] (!%p924_p11) }
 0x12e   : > { %708 = vst [vmem:[#allocation2 + $0x10] sm:$0xff] %v704_v18  ;;  %v705_v20 = vadd.f32 %v699_v19, %v299_v17  ;;  %v725_v24 = vadd.f32 (!%p924_p11), %v925_v23, %v714_v21 }
 0x12f   : > { %v715_v22 = vld [vmem:[#allocation2 + $0x8] sm:$0xff] (!%p924_p11) }
 0x130   : > { %709 = vst [vmem:[#allocation2 + $0x18] sm:$0xff] %v705_v20  ;;  %v726_v25 = vadd.f32 (!%p924_p11), %v925_v23, %v715_v22  ;;  %vm729_vm0 = vcmp.ge.f32.partialorder (!%p924_p11), %v725_v24, 0.0  ;;  %v733_v30 = vmul.f32 (!%p924_p11), 0.01, %v725_v24 }
 0x132   : > { %vm730_vm1 = vcmp.ge.f32.partialorder %v726_v25, 0.0  ;;  %v734_v31 = vmul.f32 0.01, %v726_v25  ;;  %v737_v34 = vsel %vm729_vm0, %v725_v24, %v733_v30 }
 0x134   : > { %v738_v35 = vsel %vm730_vm1, %v726_v25, %v734_v31 }
 0x135   : > { %v716_v26 = vld [vmem:[#allocation2 + $0x10] sm:$0xff]  ;;  %v942_v36 = vpack.c.bf16 %v738_v35, %v737_v34 }
 0x136   : > { %v727_v28 = vadd.f32 %v925_v23, %v716_v26 }
 0x137   : > { %v717_v27 = vld [vmem:[#allocation2 + $0x18] sm:$0xff]  ;;  %943 = vst [vmem:[%s1275_s3] sm:$0xff] %v942_v36  }
 0x138   : > { %v728_v29 = vadd.f32 %v925_v23, %v717_v27  ;;  %vm731_vm2 = vcmp.ge.f32.partialorder %v727_v28, 0.0  ;;  %v735_v32 = vmul.f32 0.01, %v727_v28 }
 0x13a   : > { %vm732_vm3 = vcmp.ge.f32.partialorder %v728_v29, 0.0  ;;  %v736_v33 = vmul.f32 0.01, %v728_v29  ;;  %v739_v37 = vsel %vm731_vm2, %v727_v28, %v735_v32 }
 0x13c   : > { %v740_v38 = vsel %vm732_vm3, %v728_v29, %v736_v33 }
 0x13d   : > { %v947_v39 = vpack.c.bf16 %v740_v38, %v739_v37 }
 0x13f   : > { %949 = vst [vmem:[%s1275_s3 + $0x8] sm:$0xff] %v947_v39  }
 0x140 PF: > { %s13_s16 = sadd.s32 1, %s1129_s16   ;;  %s1276_s12 = smov %s1117_s13 }
 0x141   : > { %p10_p12 = scmp.ge.s32.totalorder %s13_s16, 4   ;;  %s1277_s13 = smov %s1187_s20 }
 0x142   : > { %s1278_s14 = smov %s1125_s15  ;;  %s1279_s15 = smov %s1281_s17 }
 0x143   :  { %12 = sbr.rel (!%p10_p12) target bundleno = 3 (0x3), region = 104 }

// kernel: model_forward.13
= control target key start
LH: loop header
LB: loop body
LE: loop exit
PB: predicated region body
PF: predicated region fallthrough
CT: control target
= control target key end

     0   :  { %s1527_s12 = smov 0   ;;  %s1529_s13 = smov 0   ;;  %s1838_s0 = inlined_call_operand.vmem [shape: bf16[8,1024], index: 0, kind: input, shape index: {}]   ;;  %s1839_s1 = inlined_call_operand.vmem [shape: bf16[1024,1024], index: 1, kind: input, shape index: {}]   ;;  %s1840_s2 = inlined_call_operand.vmem [shape: f32[1,1024], index: 2, kind: input, shape index: {}]   ;;  %s1841_s3 = inlined_call_operand.vmem [shape: bf16[8,1024], index: 3, kind: output, shape index: {}]  }
   0x1   :  { %s1531_s14 = smov 0   ;;  %s1533_s15 = smov 0  }
   0x2   :  { %s1535_s16 = smov 0   ;;  %s1537_s17 = smov 0  }
   0x3   :  { %s1539_s18 = smov 0  }
   0x4 LB: > { %s25_s19 = sadd.s32 1, %s1496_s16  ;;  %s28_s20 = sadd.s32 1, %s1500_s17  ;;  %s1504_s18 = sphi %s1539_s18, %s13_s18   ;;  %s1500_s17 = sphi %s1537_s17, %s1847_s17   ;;  %s1496_s16 = sphi %s1535_s16, %s1846_s16   ;;  %s1492_s15 = sphi %s1533_s15, %s1845_s15   ;;  %s1488_s14 = sphi %s1531_s14, %s1844_s14   ;;  %s1484_s13 = sphi %s1529_s13, %s1843_s13   ;;  %s1480_s12 = sphi %s1527_s12, %s1842_s12  }
   0x5   : > { %p26_p0 = scmp.ge.s32.totalorder %s25_s19, 2  ;;  %p76_p1 = scmp.ne.s32.totalorder %s1484_s13, %s1480_s12 }
   0x6   : > { %p77_p2 = scmp.eq.s32.totalorder %s1504_s18, 0  ;;  %s69_s24 = sadd.s32 1, %s1484_s13 }
   0x7   : > { %s1849_s19 = smov (%p26_p0, %s25_s19), 0  ;;  %s1851_s20 = smov (!%p26_p0, %s28_s20), %s1500_s17 }
   0x8   : > { %p78_p3 = por %p77_p2, %p76_p1  ;;  %p30_p4 = scmp.ge.s32.totalorder %s1851_s20, 4 }
   0x9   : > { %s64_s21 = ssub.s32 %s1496_s16, %s1849_s19  ;;  %p1205_p6 = scmp.ge.s32.totalorder %s1504_s18, 8 }
   0xa   : > { %s1853_s20 = smov (%p30_p4, %s1851_s20), 0 }
   0xb   : > { %s65_s22 = ssub.s32 %s1500_s17, %s1853_s20  ;;  %156 = sbr.rel (%p1205_p6) target bundleno = 89 (0x59), region = 16 }
   0xc   : > { %s66_s23 = sor.u32 %s65_s22, %s64_s21 }
   0xd   : > { %p67_p5 = scmp.eq.s32.totalorder %s66_s23, 0 }
   0xf   : > { %s1578_s25 = scalar_select %p67_p5, %s1484_s13, %s69_s24  }
  0x12   : > { %172 = sbr.rel (!%p78_p3) target bundleno = 89 (0x59), region = 24  ;;  %s174_s26 = sand.u32 (%p78_p3), 1, %s1484_s13  }
  0x13   : > { %s1208_s27 = sshll.u32 (%p78_p3), %s1500_s17, 1  ;;  %s1206_s28 = sshll.u32 (%p78_p3), %s174_s26, 9 }
  0x14   : > { %s1291_s29 = sshll.u32 (%p78_p3), %s1496_s16, 9  ;;  %s1592_s8 = scalar_lea.vmem (%p78_p3), [#allocation3], %s1206_s28 }
  0x15   : > { %s180_s30 = sadd.s32 (%p78_p3), %s1291_s29, %s1208_s27 }
  0x16   : > { %s1210_s4 = sshll.u32 (%p78_p3), %s180_s30, 2 }
  0x17   : > { %s1587_s7 = scalar_lea.vmem (%p78_p3), %s1839_s1, %s1210_s4 }
  0x18   : > { %v336_v0 = vld [vmem:[%s1587_s7] sm:$0xff] (%p78_p3) }
  0x19   : > { %v338_v1 = vld [vmem:[%s1587_s7 + $0x20] sm:$0xff]  ;;  %337 = vst [vmem:[%s1592_s8] sm:$0xff] %v336_v0 }
  0x1a   : > { %v340_v2 = vld [vmem:[%s1587_s7 + $0x40] sm:$0xff]  ;;  %339 = vst [vmem:[%s1592_s8 + $0x8] sm:$0xff] %v338_v1 }
  0x1b   : > { %341 = vst [vmem:[%s1592_s8 + $0x10] sm:$0xff] %v340_v2  ;;  %v342_v3 = vld [vmem:[%s1587_s7 + $0x60] sm:$0xff] }
  0x1c   : > { %v344_v4 = vld [vmem:[%s1587_s7 + $0x80] sm:$0xff]  ;;  %343 = vst [vmem:[%s1592_s8 + $0x18] sm:$0xff] %v342_v3 }
  0x1d   : > { %v346_v5 = vld [vmem:[%s1587_s7 + $0xa0] sm:$0xff]  ;;  %345 = vst [vmem:[%s1592_s8 + $0x20] sm:$0xff] %v344_v4 }
  0x1e   : > { %347 = vst [vmem:[%s1592_s8 + $0x28] sm:$0xff] %v346_v5  ;;  %v348_v6 = vld [vmem:[%s1587_s7 + $0xc0] sm:$0xff] }
  0x1f   : > { %v350_v7 = vld [vmem:[%s1587_s7 + $0xe0] sm:$0xff]  ;;  %349 = vst [vmem:[%s1592_s8 + $0x30] sm:$0xff] %v348_v6 }
  0x20   : > { %v352_v8 = vld [vmem:[%s1587_s7 + $0x100] sm:$0xff]  ;;  %351 = vst [vmem:[%s1592_s8 + $0x38] sm:$0xff] %v350_v7 }
  0x21   : > { %353 = vst [vmem:[%s1592_s8 + $0x40] sm:$0xff] %v352_v8  ;;  %v354_v9 = vld [vmem:[%s1587_s7 + $0x120] sm:$0xff] }
  0x22   : > { %v356_v10 = vld [vmem:[%s1587_s7 + $0x140] sm:$0xff]  ;;  %355 = vst [vmem:[%s1592_s8 + $0x48] sm:$0xff] %v354_v9 }
  0x23   : > { %v358_v11 = vld [vmem:[%s1587_s7 + $0x160] sm:$0xff]  ;;  %357 = vst [vmem:[%s1592_s8 + $0x50] sm:$0xff] %v356_v10 }
  0x24   : > { %359 = vst [vmem:[%s1592_s8 + $0x58] sm:$0xff] %v358_v11  ;;  %v360_v12 = vld [vmem:[%s1587_s7 + $0x180] sm:$0xff] }
  0x25   : > { %v362_v13 = vld [vmem:[%s1587_s7 + $0x1a0] sm:$0xff]  ;;  %361 = vst [vmem:[%s1592_s8 + $0x60] sm:$0xff] %v360_v12 }
  0x26   : > { %v364_v14 = vld [vmem:[%s1587_s7 + $0x1c0] sm:$0xff]  ;;  %363 = vst [vmem:[%s1592_s8 + $0x68] sm:$0xff] %v362_v13 }
  0x27   : > { %365 = vst [vmem:[%s1592_s8 + $0x70] sm:$0xff] %v364_v14  ;;  %v366_v15 = vld [vmem:[%s1587_s7 + $0x1e0] sm:$0xff] }
  0x28   : > { %v368_v16 = vld [vmem:[%s1587_s7 + $0x200] sm:$0xff]  ;;  %367 = vst [vmem:[%s1592_s8 + $0x78] sm:$0xff] %v366_v15 }
  0x29   : > { %v370_v17 = vld [vmem:[%s1587_s7 + $0x220] sm:$0xff]  ;;  %369 = vst [vmem:[%s1592_s8 + $0x80] sm:$0xff] %v368_v16 }
  0x2a   : > { %371 = vst [vmem:[%s1592_s8 + $0x88] sm:$0xff] %v370_v17  ;;  %v372_v18 = vld [vmem:[%s1587_s7 + $0x240] sm:$0xff] }
  0x2b   : > { %v374_v19 = vld [vmem:[%s1587_s7 + $0x260] sm:$0xff]  ;;  %373 = vst [vmem:[%s1592_s8 + $0x90] sm:$0xff] %v372_v18 }
  0x2c   : > { %v376_v20 = vld [vmem:[%s1587_s7 + $0x280] sm:$0xff]  ;;  %375 = vst [vmem:[%s1592_s8 + $0x98] sm:$0xff] %v374_v19 }
  0x2d   : > { %377 = vst [vmem:[%s1592_s8 + $0xa0] sm:$0xff] %v376_v20  ;;  %v378_v21 = vld [vmem:[%s1587_s7 + $0x2a0] sm:$0xff] }
  0x2e   : > { %v380_v22 = vld [vmem:[%s1587_s7 + $0x2c0] sm:$0xff]  ;;  %379 = vst [vmem:[%s1592_s8 + $0xa8] sm:$0xff] %v378_v21 }
  0x2f   : > { %v382_v23 = vld [vmem:[%s1587_s7 + $0x2e0] sm:$0xff]  ;;  %381 = vst [vmem:[%s1592_s8 + $0xb0] sm:$0xff] %v380_v22 }
  0x30   : > { %383 = vst [vmem:[%s1592_s8 + $0xb8] sm:$0xff] %v382_v23  ;;  %v384_v24 = vld [vmem:[%s1587_s7 + $0x300] sm:$0xff] }
  0x31   : > { %v386_v25 = vld [vmem:[%s1587_s7 + $0x320] sm:$0xff]  ;;  %385 = vst [vmem:[%s1592_s8 + $0xc0] sm:$0xff] %v384_v24 }
  0x32   : > { %v388_v26 = vld [vmem:[%s1587_s7 + $0x340] sm:$0xff]  ;;  %387 = vst [vmem:[%s1592_s8 + $0xc8] sm:$0xff] %v386_v25 }
  0x33   : > { %389 = vst [vmem:[%s1592_s8 + $0xd0] sm:$0xff] %v388_v26  ;;  %v390_v27 = vld [vmem:[%s1587_s7 + $0x360] sm:$0xff] }
  0x34   : > { %v392_v28 = vld [vmem:[%s1587_s7 + $0x380] sm:$0xff]  ;;  %391 = vst [vmem:[%s1592_s8 + $0xd8] sm:$0xff] %v390_v27 }
  0x35   : > { %v394_v29 = vld [vmem:[%s1587_s7 + $0x3a0] sm:$0xff]  ;;  %393 = vst [vmem:[%s1592_s8 + $0xe0] sm:$0xff] %v392_v28 }
  0x36   : > { %395 = vst [vmem:[%s1592_s8 + $0xe8] sm:$0xff] %v394_v29  ;;  %v396_v30 = vld [vmem:[%s1587_s7 + $0x3c0] sm:$0xff] }
  0x37   : > { %v398_v31 = vld [vmem:[%s1587_s7 + $0x3e0] sm:$0xff]  ;;  %397 = vst [vmem:[%s1592_s8 + $0xf0] sm:$0xff] %v396_v30 }
  0x38   : > { %v400_v32 = vld [vmem:[%s1587_s7 + $0x400] sm:$0xff]  ;;  %399 = vst [vmem:[%s1592_s8 + $0xf8] sm:$0xff] %v398_v31 }
  0x39   : > { %401 = vst [vmem:[%s1592_s8 + $0x100] sm:$0xff] %v400_v32  ;;  %v402_v33 = vld [vmem:[%s1587_s7 + $0x420] sm:$0xff] }
  0x3a   : > { %v404_v34 = vld [vmem:[%s1587_s7 + $0x440] sm:$0xff]  ;;  %403 = vst [vmem:[%s1592_s8 + $0x108] sm:$0xff] %v402_v33 }
  0x3b   : > { %v406_v35 = vld [vmem:[%s1587_s7 + $0x460] sm:$0xff]  ;;  %405 = vst [vmem:[%s1592_s8 + $0x110] sm:$0xff] %v404_v34 }
  0x3c   : > { %407 = vst [vmem:[%s1592_s8 + $0x118] sm:$0xff] %v406_v35  ;;  %v408_v36 = vld [vmem:[%s1587_s7 + $0x480] sm:$0xff] }
  0x3d   : > { %v410_v37 = vld [vmem:[%s1587_s7 + $0x4a0] sm:$0xff]  ;;  %409 = vst [vmem:[%s1592_s8 + $0x120] sm:$0xff] %v408_v36 }
  0x3e   : > { %v412_v38 = vld [vmem:[%s1587_s7 + $0x4c0] sm:$0xff]  ;;  %411 = vst [vmem:[%s1592_s8 + $0x128] sm:$0xff] %v410_v37 }
  0x3f   : > { %413 = vst [vmem:[%s1592_s8 + $0x130] sm:$0xff] %v412_v38  ;;  %v414_v39 = vld [vmem:[%s1587_s7 + $0x4e0] sm:$0xff] }
  0x40   : > { %v416_v40 = vld [vmem:[%s1587_s7 + $0x500] sm:$0xff]  ;;  %415 = vst [vmem:[%s1592_s8 + $0x138] sm:$0xff] %v414_v39 }
  0x41   : > { %v418_v41 = vld [vmem:[%s1587_s7 + $0x520] sm:$0xff]  ;;  %417 = vst [vmem:[%s1592_s8 + $0x140] sm:$0xff] %v416_v40 }
  0x42   : > { %419 = vst [vmem:[%s1592_s8 + $0x148] sm:$0xff] %v418_v41  ;;  %v420_v42 = vld [vmem:[%s1587_s7 + $0x540] sm:$0xff] }
  0x43   : > { %v422_v43 = vld [vmem:[%s1587_s7 + $0x560] sm:$0xff]  ;;  %421 = vst [vmem:[%s1592_s8 + $0x150] sm:$0xff] %v420_v42 }
  0x44   : > { %v424_v44 = vld [vmem:[%s1587_s7 + $0x580] sm:$0xff]  ;;  %423 = vst [vmem:[%s1592_s8 + $0x158] sm:$0xff] %v422_v43 }
  0x45   : > { %425 = vst [vmem:[%s1592_s8 + $0x160] sm:$0xff] %v424_v44  ;;  %v426_v45 = vld [vmem:[%s1587_s7 + $0x5a0] sm:$0xff] }
  0x46   : > { %v428_v46 = vld [vmem:[%s1587_s7 + $0x5c0] sm:$0xff]  ;;  %427 = vst [vmem:[%s1592_s8 + $0x168] sm:$0xff] %v426_v45 }
  0x47   : > { %v430_v47 = vld [vmem:[%s1587_s7 + $0x5e0] sm:$0xff]  ;;  %429 = vst [vmem:[%s1592_s8 + $0x170] sm:$0xff] %v428_v46 }
  0x48   : > { %431 = vst [vmem:[%s1592_s8 + $0x178] sm:$0xff] %v430_v47  ;;  %v432_v48 = vld [vmem:[%s1587_s7 + $0x600] sm:$0xff] }
  0x49   : > { %v434_v49 = vld [vmem:[%s1587_s7 + $0x620] sm:$0xff]  ;;  %433 = vst [vmem:[%s1592_s8 + $0x180] sm:$0xff] %v432_v48 }
  0x4a   : > { %v436_v50 = vld [vmem:[%s1587_s7 + $0x640] sm:$0xff]  ;;  %435 = vst [vmem:[%s1592_s8 + $0x188] sm:$0xff] %v434_v49 }
  0x4b   : > { %437 = vst [vmem:[%s1592_s8 + $0x190] sm:$0xff] %v436_v50  ;;  %v438_v51 = vld [vmem:[%s1587_s7 + $0x660] sm:$0xff] }
  0x4c   : > { %v440_v52 = vld [vmem:[%s1587_s7 + $0x680] sm:$0xff]  ;;  %439 = vst [vmem:[%s1592_s8 + $0x198] sm:$0xff] %v438_v51 }
  0x4d   : > { %v442_v53 = vld [vmem:[%s1587_s7 + $0x6a0] sm:$0xff]  ;;  %441 = vst [vmem:[%s1592_s8 + $0x1a0] sm:$0xff] %v440_v52 }
  0x4e   : > { %443 = vst [vmem:[%s1592_s8 + $0x1a8] sm:$0xff] %v442_v53  ;;  %v444_v54 = vld [vmem:[%s1587_s7 + $0x6c0] sm:$0xff] }
  0x4f   : > { %v446_v55 = vld [vmem:[%s1587_s7 + $0x6e0] sm:$0xff]  ;;  %445 = vst [vmem:[%s1592_s8 + $0x1b0] sm:$0xff] %v444_v54 }
  0x50   : > { %v448_v56 = vld [vmem:[%s1587_s7 + $0x700] sm:$0xff]  ;;  %447 = vst [vmem:[%s1592_s8 + $0x1b8] sm:$0xff] %v446_v55 }
  0x51   : > { %449 = vst [vmem:[%s1592_s8 + $0x1c0] sm:$0xff] %v448_v56  ;;  %v450_v57 = vld [vmem:[%s1587_s7 + $0x720] sm:$0xff] }
  0x52   : > { %v452_v58 = vld [vmem:[%s1587_s7 + $0x740] sm:$0xff]  ;;  %451 = vst [vmem:[%s1592_s8 + $0x1c8] sm:$0xff] %v450_v57 }
  0x53   : > { %v454_v59 = vld [vmem:[%s1587_s7 + $0x760] sm:$0xff]  ;;  %453 = vst [vmem:[%s1592_s8 + $0x1d0] sm:$0xff] %v452_v58 }
  0x54   : > { %455 = vst [vmem:[%s1592_s8 + $0x1d8] sm:$0xff] %v454_v59  ;;  %v456_v60 = vld [vmem:[%s1587_s7 + $0x780] sm:$0xff] }
  0x55   : > { %v458_v61 = vld [vmem:[%s1587_s7 + $0x7a0] sm:$0xff]  ;;  %457 = vst [vmem:[%s1592_s8 + $0x1e0] sm:$0xff] %v456_v60 }
  0x56   : > { %v460_v62 = vld [vmem:[%s1587_s7 + $0x7c0] sm:$0xff]  ;;  %459 = vst [vmem:[%s1592_s8 + $0x1e8] sm:$0xff] %v458_v61 }
  0x57   : > { %461 = vst [vmem:[%s1592_s8 + $0x1f0] sm:$0xff] %v460_v62  ;;  %v462_v63 = vld [vmem:[%s1587_s7 + $0x7e0] sm:$0xff] }
  0x58   : > { %463 = vst [vmem:[%s1592_s8 + $0x1f8] sm:$0xff] %v462_v63 }
  0x59 PF: > { %p1211_p7 = scmp.ge.s32.totalorder %s1504_s18, 1  ;;  %p476_p8 = scmp.lt.s32.totalorder %s1504_s18, 9 }
  0x5b   : > { %p477_p9 = pnand %p1211_p7, %p476_p8 }
  0x5c   : > { %s483_s9 = sand.u32 (!%p477_p9), 1, %s1480_s12   ;;  %s1213_s10 = sshll.u32 (!%p477_p9), %s1488_s14, 2 }
  0x5d   : > { %480 = sbr.rel (%p477_p9) target bundleno = 409 (0x199), region = 66  ;;  %s1212_s11 = sshll.u32 (!%p477_p9), %s483_s9, 9 }
  0x5e   : > { %p526_p10 = scmp.lt.s32.totalorder (!%p477_p9), %s1213_s10, 7  ;;  %s1215_s21 = sshll.u32 (!%p477_p9), %s1492_s15, 1 }
  0x5f   : > { %p536_p11 = scmp.lt.s32.totalorder (!%p477_p9), %s1215_s21, 7  ;;  %s1741_s5 = scalar_lea.vmem (!%p477_p9), [#allocation3], %s1212_s11 }
  0x60   : > { %p1218_p12 = scmp.ne.s32.totalorder (!%p477_p9), %s1488_s14, 0 }
  0x64   : > { %s1855_s10 = smov (!%p526_p10, %s1213_s10), 7  ;;  %s1857_s21 = smov (!%p536_p11, %s1215_s21), 7 }
  0x65   : > { %s1214_s22 = sshll.u32 %s1855_s10, 2  ;;  %s538_s12 = scalar_lea.vmem %s1840_s2, %s1857_s21  ;;  %v1506_v0 = vmov (!%p1218_p12), 0.0  }
  0x66   : > { %s1727_s26 = scalar_lea.vmem %s1838_s0, %s1214_s22  ;;  %s1217_s29 = sshll.u32 %s1857_s21, 2  ;;  %554 = vst [vmem:[#allocation2] sm:$0xff] (!%p1218_p12), %v1506_v0  ;;  %555 = vst [vmem:[#allocation2 + $0x8] sm:$0xff] (!%p1218_p12), %v1506_v0 }
  0x67   : > { %s1739_s15 = scalar_lea.vmem %s1841_s3, %s1217_s29  ;;  %553 = sbr.rel (%p1218_p12) target bundleno = 110 (0x6e), region = 74 }
  0x6e PF: > { %v1350_v1 = vld [vmem:[%s1741_s5 + $0x4] ss:$8 sps:$4 sm:$0xff]   ;;  %v1354_v3 = vld [vmem:[%s1741_s5] ss:$8 sps:$4 sm:$0xff]   ;;  %v1356_v5 = vld [vmem:[%s1741_s5 + $0x14] ss:$8 sps:$4 sm:$0xff]  }
  0x6f   : > { %v1352_v2 = vld [vmem:[%s1741_s5 + $0x104] ss:$8 sps:$4 sm:$0xff]   ;;  %958 = vmatprep.subr.bf16.mxu0 %v1350_v1  ;;  %v1355_v4 = vld [vmem:[%s1741_s5 + $0x100] ss:$8 sps:$4 sm:$0xff]   ;;  %v1358_v6 = vld [vmem:[%s1741_s5 + $0x114] ss:$8 sps:$4 sm:$0xff]  }
  0x70   : > { %999 = vmatprep.subr.bf16.mxu1 %v1352_v2  ;;  %959 = vmatpush1.bf16.msra.mxu0 %v1354_v3  ;;  %v1360_v7 = vld [vmem:[%s1741_s5 + $0x10] ss:$8 sps:$4 sm:$0xff]   ;;  %v1362_v9 = vld [vmem:[%s1741_s5 + $0x24] ss:$8 sps:$4 sm:$0xff]   ;;  %v1366_v11 = vld [vmem:[%s1741_s5 + $0x20] ss:$8 sps:$4 sm:$0xff]  }
  0x71   : > { %1000 = vmatpush1.bf16.msra.mxu1 %v1355_v4  ;;  %960 = vmatprep.subr.bf16.mxu0 %v1356_v5  ;;  %v1361_v8 = vld [vmem:[%s1741_s5 + $0x110] ss:$8 sps:$4 sm:$0xff]   ;;  %v1364_v10 = vld [vmem:[%s1741_s5 + $0x124] ss:$8 sps:$4 sm:$0xff]   ;;  %v1367_v12 = vld [vmem:[%s1741_s5 + $0x120] ss:$8 sps:$4 sm:$0xff]  }
  0x72   : > { %1001 = vmatprep.subr.bf16.mxu1 %v1358_v6  ;;  %v1368_v13 = vld [vmem:[%s1741_s5 + $0x34] ss:$8 sps:$4 sm:$0xff]   ;;  %v1372_v15 = vld [vmem:[%s1741_s5 + $0x30] ss:$8 sps:$4 sm:$0xff]   ;;  %v1374_v17 = vld [vmem:[%s1741_s5 + $0x44] ss:$8 sps:$4 sm:$0xff]  }
  0x73   : > { %v1370_v14 = vld [vmem:[%s1741_s5 + $0x134] ss:$8 sps:$4 sm:$0xff]   ;;  %v1373_v16 = vld [vmem:[%s1741_s5 + $0x130] ss:$8 sps:$4 sm:$0xff]   ;;  %v1376_v18 = vld [vmem:[%s1741_s5 + $0x144] ss:$8 sps:$4 sm:$0xff]  }
  0x74   : > { %961 = vmatpush1.bf16.msra.mxu0 %v1360_v7  ;;  %v1378_v19 = vld [vmem:[%s1741_s5 + $0x40] ss:$8 sps:$4 sm:$0xff]   ;;  %v1380_v21 = vld [vmem:[%s1741_s5 + $0x54] ss:$8 sps:$4 sm:$0xff]   ;;  %v1384_v23 = vld [vmem:[%s1741_s5 + $0x50] ss:$8 sps:$4 sm:$0xff]  }
  0x75   : > { %1002 = vmatpush1.bf16.msra.mxu1 %v1361_v8  ;;  %962 = vmatprep.subr.bf16.mxu0 %v1362_v9  ;;  %v1379_v20 = vld [vmem:[%s1741_s5 + $0x140] ss:$8 sps:$4 sm:$0xff]   ;;  %v1382_v22 = vld [vmem:[%s1741_s5 + $0x154] ss:$8 sps:$4 sm:$0xff]   ;;  %v1385_v24 = vld [vmem:[%s1741_s5 + $0x150] ss:$8 sps:$4 sm:$0xff]  }
  0x76   : > { %1003 = vmatprep.subr.bf16.mxu1 %v1364_v10  ;;  %v1386_v25 = vld [vmem:[%s1741_s5 + $0x64] ss:$8 sps:$4 sm:$0xff]   ;;  %v1390_v27 = vld [vmem:[%s1741_s5 + $0x60] ss:$8 sps:$4 sm:$0xff]   ;;  %v1392_v29 = vld [vmem:[%s1741_s5 + $0x74] ss:$8 sps:$4 sm:$0xff]  }
  0x77   : > { %v1388_v26 = vld [vmem:[%s1741_s5 + $0x164] ss:$8 sps:$4 sm:$0xff]   ;;  %v1391_v28 = vld [vmem:[%s1741_s5 + $0x160] ss:$8 sps:$4 sm:$0xff]   ;;  %v1394_v30 = vld [vmem:[%s1741_s5 + $0x174] ss:$8 sps:$4 sm:$0xff]  }
  0x78   : > { %963 = vmatpush1.bf16.msra.mxu0 %v1366_v11  ;;  %v1396_v31 = vld [vmem:[%s1741_s5 + $0x70] ss:$8 sps:$4 sm:$0xff]   ;;  %v1398_v33 = vld [vmem:[%s1741_s5 + $0x84] ss:$8 sps:$4 sm:$0xff]   ;;  %v1402_v35 = vld [vmem:[%s1741_s5 + $0x80] ss:$8 sps:$4 sm:$0xff]  }
  0x79   : > { %1004 = vmatpush1.bf16.msra.mxu1 %v1367_v12  ;;  %964 = vmatprep.subr.bf16.mxu0 %v1368_v13  ;;  %v1397_v32 = vld [vmem:[%s1741_s5 + $0x170] ss:$8 sps:$4 sm:$0xff]   ;;  %v1400_v34 = vld [vmem:[%s1741_s5 + $0x184] ss:$8 sps:$4 sm:$0xff]   ;;  %v1403_v36 = vld [vmem:[%s1741_s5 + $0x180] ss:$8 sps:$4 sm:$0xff]  }
  0x7a   : > { %1005 = vmatprep.subr.bf16.mxu1 %v1370_v14  ;;  %v1404_v37 = vld [vmem:[%s1741_s5 + $0x94] ss:$8 sps:$4 sm:$0xff]   ;;  %v1408_v39 = vld [vmem:[%s1741_s5 + $0x90] ss:$8 sps:$4 sm:$0xff]   ;;  %v1410_v41 = vld [vmem:[%s1741_s5 + $0xa4] ss:$8 sps:$4 sm:$0xff]  }
  0x7b   : > { %v1406_v38 = vld [vmem:[%s1741_s5 + $0x194] ss:$8 sps:$4 sm:$0xff]   ;;  %v1409_v40 = vld [vmem:[%s1741_s5 + $0x190] ss:$8 sps:$4 sm:$0xff]   ;;  %v1412_v42 = vld [vmem:[%s1741_s5 + $0x1a4] ss:$8 sps:$4 sm:$0xff]  }
  0x7c   : > { %965 = vmatpush1.bf16.msra.mxu0 %v1372_v15  ;;  %v1414_v43 = vld [vmem:[%s1741_s5 + $0xa0] ss:$8 sps:$4 sm:$0xff]   ;;  %v1416_v45 = vld [vmem:[%s1741_s5 + $0xb4] ss:$8 sps:$4 sm:$0xff]   ;;  %v1420_v50 = vld [vmem:[%s1741_s5 + $0xb0] ss:$8 sps:$4 sm:$0xff]  }
  0x7d   : > { %1006 = vmatpush1.bf16.msra.mxu1 %v1373_v16  ;;  %966 = vmatprep.subr.bf16.mxu0 %v1374_v17  ;;  %v1415_v44 = vld [vmem:[%s1741_s5 + $0x1a0] ss:$8 sps:$4 sm:$0xff]   ;;  %v1418_v46 = vld [vmem:[%s1741_s5 + $0x1b4] ss:$8 sps:$4 sm:$0xff]   ;;  %v1421_v51 = vld [vmem:[%s1741_s5 + $0x1b0] ss:$8 sps:$4 sm:$0xff]  }
  0x7e   : > { %1007 = vmatprep.subr.bf16.mxu1 %v1376_v18  ;;  %v558_v47 = vld [vmem:[%s1727_s26] sm:$0xff]  ;;  %v559_v49 = vld [vmem:[%s1727_s26 + $0x8] sm:$0xff]  ;;  %v1422_v53 = vld [vmem:[%s1741_s5 + $0xc4] ss:$8 sps:$4 sm:$0xff]   ;;  %p1287_p13 = scmp.ne.s32.totalorder %s1488_s14, 1 }
  0x7f   : > { %v1220_v48 = vcombine.high %v558_v47, %v558_v47  ;;  %v1222_v52 = vcombine.high %v559_v49, %v559_v49  ;;  %v1424_v54 = vld [vmem:[%s1741_s5 + $0x1c4] ss:$8 sps:$4 sm:$0xff]   ;;  %v1426_v55 = vld [vmem:[%s1741_s5 + $0xc0] ss:$8 sps:$4 sm:$0xff]   ;;  %v1428_v57 = vld [vmem:[%s1741_s5 + $0xd4] ss:$8 sps:$4 sm:$0xff]   ;;  %v1219_v5 = vcombine.low %v558_v47, %v558_v47  ;;  %v1221_v6 = vcombine.low %v559_v49, %v559_v49 }
  0x80   : > { %967 = vmatpush1.bf16.msra.mxu0 %v1378_v19  ;;  %v1427_v56 = vld [vmem:[%s1741_s5 + $0x1c0] ss:$8 sps:$4 sm:$0xff]   ;;  %v1430_v58 = vld [vmem:[%s1741_s5 + $0x1d4] ss:$8 sps:$4 sm:$0xff]   ;;  %v1432_v59 = vld [vmem:[%s1741_s5 + $0xd0] ss:$8 sps:$4 sm:$0xff]  }
  0x81   : > { %1008 = vmatpush1.bf16.msra.mxu1 %v1379_v20  ;;  %968 = vmatprep.subr.bf16.mxu0 %v1380_v21  ;;  %v1433_v60 = vld [vmem:[%s1741_s5 + $0x1d0] ss:$8 sps:$4 sm:$0xff]   ;;  %v1434_v61 = vld [vmem:[%s1741_s5 + $0xe4] ss:$8 sps:$4 sm:$0xff]   ;;  %v1438_v63 = vld [vmem:[%s1741_s5 + $0xe0] ss:$8 sps:$4 sm:$0xff]   ;;  %v1052_v21 = vlaneseq (!%p1287_p13) }
  0x82   : > { %1009 = vmatprep.subr.bf16.mxu1 %v1382_v22  ;;  %990 = vmatprep.mubr.bf16.mxu0 %v1220_v48  ;;  %v1436_v62 = vld [vmem:[%s1741_s5 + $0x1e4] ss:$8 sps:$4 sm:$0xff]   ;;  %v1439_v0 = vld [vmem:[%s1741_s5 + $0x1e0] ss:$8 sps:$4 sm:$0xff]   ;;  %v1440_v1 = vld [vmem:[%s1741_s5 + $0xf4] ss:$8 sps:$4 sm:$0xff]  }
  0x83   : > { %1031 = vmatprep.mubr.bf16.mxu1 %v1222_v52  ;;  %v1442_v2 = vld [vmem:[%s1741_s5 + $0x1f4] ss:$8 sps:$4 sm:$0xff]   ;;  %v1444_v3 = vld [vmem:[%s1741_s5 + $0xf0] ss:$8 sps:$4 sm:$0xff]   ;;  %v1053_v22 = vshrl.u32 (!%p1287_p13), %v1052_v21, 7 }
  0x84   : > { %969 = vmatpush1.bf16.msra.mxu0 %v1384_v23  ;;  %v1445_v4 = vld [vmem:[%s1741_s5 + $0x1f0] ss:$8 sps:$4 sm:$0xff]  }
  0x85   : > { %1010 = vmatpush1.bf16.msra.mxu1 %v1385_v24  ;;  %970 = vmatprep.subr.bf16.mxu0 %v1386_v25  ;;  %v556_v8 = vld [vmem:[#allocation2] sm:$0xff]  ;;  %v557_v12 = vld [vmem:[#allocation2 + $0x8] sm:$0xff]  ;;  %v1054_v24 = vsub.s32 (!%p1287_p13), 0, %v1053_v22  ;;  %v1058_v25 = vsub.s32 (!%p1287_p13), 1, %v1053_v22 }
  0x86   : > { %1011 = vmatprep.subr.bf16.mxu1 %v1388_v26  ;;  %v1050_v23 = vld [vmem:[%s538_s12] sm:$0x3] (!%p1287_p13) }
  0x88   : > { %971 = vmatpush1.bf16.msra.mxu0 %v1390_v27 }
  0x89   : > { %1012 = vmatpush1.bf16.msra.mxu1 %v1391_v28  ;;  %972 = vmatprep.subr.bf16.mxu0 %v1392_v29  ;;  %v1055_v28 = vrot.slane (!%p1287_p13), %v1050_v23, %v1054_v24  ;;  %v1059_v29 = vrot.slane (!%p1287_p13), %v1050_v23, %v1058_v25 }
  0x8a   : > { %1013 = vmatprep.subr.bf16.mxu1 %v1394_v30 }
  0x8c   : > { %973 = vmatpush1.bf16.msra.mxu0 %v1396_v31 }
  0x8d   : > { %1014 = vmatpush1.bf16.msra.mxu1 %v1397_v32  ;;  %974 = vmatprep.subr.bf16.mxu0 %v1398_v33 }
  0x8e   : > { %1015 = vmatprep.subr.bf16.mxu1 %v1400_v34 }
  0x90   : > { %975 = vmatpush1.bf16.msra.mxu0 %v1402_v35 }
  0x91   : > { %1016 = vmatpush1.bf16.msra.mxu1 %v1403_v36  ;;  %976 = vmatprep.subr.bf16.mxu0 %v1404_v37 }
  0x92   : > { %1017 = vmatprep.subr.bf16.mxu1 %v1406_v38 }
  0x94   : > { %977 = vmatpush1.bf16.msra.mxu0 %v1408_v39 }
  0x95   : > { %1018 = vmatpush1.bf16.msra.mxu1 %v1409_v40  ;;  %978 = vmatprep.subr.bf16.mxu0 %v1410_v41 }
  0x96   : > { %1019 = vmatprep.subr.bf16.mxu1 %v1412_v42 }
  0x98   : > { %979 = vmatpush1.bf16.msra.mxu0 %v1414_v43 }
  0x99   : > { %1020 = vmatpush1.bf16.msra.mxu1 %v1415_v44  ;;  %980 = vmatprep.subr.bf16.mxu0 %v1416_v45 }
  0x9a   : > { %1021 = vmatprep.subr.bf16.mxu1 %v1418_v46 }
  0x9c   : > { %981 = vmatpush1.bf16.msra.mxu0 %v1420_v50 }
  0x9d   : > { %1022 = vmatpush1.bf16.msra.mxu1 %v1421_v51  ;;  %982 = vmatprep.subr.bf16.mxu0 %v1422_v53 }
  0x9e   : > { %1023 = vmatprep.subr.bf16.mxu1 %v1424_v54 }
  0xa0   : > { %983 = vmatpush1.bf16.msra.mxu0 %v1426_v55 }
  0xa1   : > { %1024 = vmatpush1.bf16.msra.mxu1 %v1427_v56  ;;  %984 = vmatprep.subr.bf16.mxu0 %v1428_v57 }
  0xa2   : > { %1025 = vmatprep.subr.bf16.mxu1 %v1430_v58 }
  0xa4   : > { %985 = vmatpush1.bf16.msra.mxu0 %v1432_v59 }
  0xa5   : > { %1026 = vmatpush1.bf16.msra.mxu1 %v1433_v60  ;;  %986 = vmatprep.subr.bf16.mxu0 %v1434_v61 }
  0xa6   : > { %1027 = vmatprep.subr.bf16.mxu1 %v1436_v62 }
  0xa8   : > { %987 = vmatpush1.bf16.msra.mxu0 %v1438_v63 }
  0xa9   : > { %1028 = vmatpush1.bf16.msra.mxu1 %v1439_v0  ;;  %988 = vmatprep.subr.bf16.mxu0 %v1440_v1 }
  0xaa   : > { %1029 = vmatprep.subr.bf16.mxu1 %v1442_v2 }
  0xac   : > { %989 = vmatpush1.bf16.msra.mxu0 %v1444_v3 }
  0xad   : > { %1030 = vmatpush1.bf16.msra.mxu1 %v1445_v4 }
  0xaf   : > { %991 = vmatmul.mubr.bf16.vlgmr.msra.gmra.mrb[0].mxu0 %v1219_v5 }
  0xb0   : > { %1032 = vmatmul.mubr.bf16.vlgmr.msra.gmra.mrb[0].mxu1 %v1221_v6 }
 0x182   : > { %v992_v7 = vpop.f32.mrb[0].mxu0 }
 0x183   : > { %v1033_v9 = vpop.f32.mrb[0].mxu1  ;;  %v994_v11 = vpop.f32.mrb[1].mxu0  ;;  %1047 = sbr.rel (%p1287_p13) target bundleno = 409 (0x199), region = 78 }
 0x184   : > { %v1034_v10 = vadd.f32 %v1033_v9, %v992_v7  ;;  %v1035_v13 = vpop.f32.mrb[1].mxu1  ;;  %v996_v15 = vpop.f32.mrb[2].mxu0 }
 0x185   : > { %v1036_v14 = vadd.f32 %v1035_v13, %v994_v11  ;;  %v1037_v16 = vpop.f32.mrb[2].mxu1  ;;  %v997_v18 = vpop.f32.mrb[3].mxu0 }
 0x186   : > { %v1040_v17 = vadd.f32 %v1034_v10, %v556_v8  ;;  %v1038_v19 = vpop.f32.mrb[3].mxu1 }
 0x187   : > { %v1041_v20 = vadd.f32 %v1036_v14, %v557_v12 }
 0x188   : > { %1042 = vst [vmem:[#allocation2] sm:$0xff] %v1040_v17 }
 0x189   : > { %1043 = vst [vmem:[#allocation2 + $0x8] sm:$0xff] %v1041_v20 }
 0x18f   : > { %v1048_v26 = vld [vmem:[#allocation2] sm:$0xff] }
 0x190   : > { %v1049_v27 = vld [vmem:[#allocation2 + $0x8] sm:$0xff]  ;;  %v1062_v30 = vadd.f32 %v1055_v28, %v1048_v26 }
 0x191   : > { %v1063_v31 = vadd.f32 %v1059_v29, %v1049_v27 }
 0x192   : > { %vm1064_vm0 = vcmp.ge.f32.partialorder %v1062_v30, 0.0  ;;  %v1066_v32 = vmul.f32 0.01, %v1062_v30 }
 0x193   : > { %vm1065_vm1 = vcmp.ge.f32.partialorder %v1063_v31, 0.0  ;;  %v1067_v33 = vmul.f32 0.01, %v1063_v31 }
 0x194   : > { %v1068_v34 = vsel %vm1064_vm0, %v1062_v30, %v1066_v32 }
 0x195   : > { %v1069_v35 = vsel %vm1065_vm1, %v1063_v31, %v1067_v33 }
 0x196   : > { %v1292_v36 = vpack.c.bf16 %v1069_v35, %v1068_v34 }
 0x198   : > { %1078 = vst [vmem:[%s1739_s15] sm:$0xff] %v1292_v36 }
 0x199 PF: > { %s13_s18 = sadd.s32 1, %s1504_s18   ;;  %s1842_s12 = smov %s1484_s13 }
 0x19a   : > { %p10_p0 = scmp.ge.s32.totalorder %s13_s18, 10   ;;  %s1843_s13 = smov %s1578_s25 }
 0x19b   : > { %s1844_s14 = smov %s1496_s16  ;;  %s1845_s15 = smov %s1500_s17 }
 0x19c   : > { %s1846_s16 = smov %s1849_s19  ;;  %s1847_s17 = smov %s1853_s20 }
 0x19d   :  { %12 = sbr.rel (!%p10_p0) target bundleno = 4 (0x4), region = 119 }

// kernel: model_forward.12
= control target key start
LH: loop header
LB: loop body
LE: loop exit
PB: predicated region body
PF: predicated region fallthrough
CT: control target
= control target key end

     0   :  { %s1180_s12 = smov 0   ;;  %s1182_s13 = smov 0   ;;  %s1295_s0 = inlined_call_operand.vmem [shape: bf16[8,2048], index: 0, kind: input, shape index: {}]   ;;  %s1296_s1 = inlined_call_operand.vmem [shape: bf16[2048,256], index: 1, kind: input, shape index: {}]   ;;  %s1297_s2 = inlined_call_operand.vmem [shape: f32[1,256], index: 2, kind: input, shape index: {}]   ;;  %s1298_s3 = inlined_call_operand.vmem [shape: bf16[8,256], index: 3, kind: output, shape index: {}]  }
   0x1   :  { %s1184_s14 = smov 0  }
   0x2 LB: > { %s25_s15 = sadd.s32 1, %s1153_s13  ;;  %p927_p0 = scmp.ge.s32.totalorder %s1157_s14, 1  ;;  %s1157_s14 = sphi %s1184_s14, %s13_s14   ;;  %s1153_s13 = sphi %s1182_s13, %s1300_s13   ;;  %s1149_s12 = sphi %s1180_s12, %s1299_s12  }
   0x3   : > { %p26_p1 = scmp.ge.s32.totalorder %s25_s15, 4  ;;  %p194_p2 = scmp.lt.s32.totalorder %s1157_s14, 5 }
   0x5   : > { %s1302_s15 = smov (%p26_p1, %s25_s15), 0  ;;  %p195_p3 = pnand %p927_p0, %p194_p2 }
   0x6   : > { %s928_s16 = sshll.u32 (!%p195_p3), %s1149_s12, 2  ;;  %s930_s17 = sshll.u32 (!%p195_p3), %s1149_s12, 6 }
   0x7   : > { %198 = sbr.rel (%p195_p3) target bundleno = 323 (0x143), region = 32  ;;  %p243_p4 = scmp.lt.s32.totalorder (!%p195_p3), %s928_s16, 15 }
   0x8   : > { %p252_p5 = scmp.lt.s32.totalorder (!%p195_p3), %s930_s17, 255  ;;  %p933_p6 = scmp.ne.s32.totalorder (!%p195_p3), %s1149_s12, 0 }
   0xe   : > { %s1304_s16 = smov (!%p243_p4, %s928_s16), 15  ;;  %s1306_s17 = smov (!%p252_p5, %s930_s17), 255 }
   0xf   : > { %s929_s18 = sshll.u32 %s1304_s16, 2  ;;  %s1008_s22 = sshll.u32 %s1306_s17, 3  ;;  %v1159_v0 = vmov (!%p933_p6), 0.0  }
  0x10   : > { %s1205_s21 = scalar_lea.vmem %s1295_s0, %s929_s18  ;;  %s1210_s25 = scalar_lea.vmem %s1296_s1, %s1008_s22  ;;  %281 = vst [vmem:[#allocation2] sm:$0xff] (!%p933_p6), %v1159_v0  ;;  %282 = vst [vmem:[#allocation2 + $0x8] sm:$0xff] (!%p933_p6), %v1159_v0 }
  0x11   : > { %280 = sbr.rel (%p933_p6) target bundleno = 24 (0x18), region = 36 }
  0x18 PF: > { %v1035_v1 = vld [vmem:[%s1210_s25 + $0x4] ss:$8 sps:$4 sm:$0xff]   ;;  %v1039_v3 = vld [vmem:[%s1210_s25] ss:$8 sps:$4 sm:$0xff]   ;;  %v1041_v5 = vld [vmem:[%s1210_s25 + $0x14] ss:$8 sps:$4 sm:$0xff]  }
  0x19   : > { %v1037_v2 = vld [vmem:[%s1210_s25 + $0x104] ss:$8 sps:$4 sm:$0xff]   ;;  %685 = vmatprep.subr.bf16.mxu0 %v1035_v1  ;;  %v1040_v4 = vld [vmem:[%s1210_s25 + $0x100] ss:$8 sps:$4 sm:$0xff]   ;;  %v1043_v6 = vld [vmem:[%s1210_s25 + $0x114] ss:$8 sps:$4 sm:$0xff]  }
  0x1a   : > { %726 = vmatprep.subr.bf16.mxu1 %v1037_v2  ;;  %686 = vmatpush1.bf16.msra.mxu0 %v1039_v3  ;;  %v1045_v7 = vld [vmem:[%s1210_s25 + $0x10] ss:$8 sps:$4 sm:$0xff]   ;;  %v1047_v9 = vld [vmem:[%s1210_s25 + $0x24] ss:$8 sps:$4 sm:$0xff]   ;;  %v1051_v11 = vld [vmem:[%s1210_s25 + $0x20] ss:$8 sps:$4 sm:$0xff]  }
  0x1b   : > { %727 = vmatpush1.bf16.msra.mxu1 %v1040_v4  ;;  %687 = vmatprep.subr.bf16.mxu0 %v1041_v5  ;;  %v1046_v8 = vld [vmem:[%s1210_s25 + $0x110] ss:$8 sps:$4 sm:$0xff]   ;;  %v1049_v10 = vld [vmem:[%s1210_s25 + $0x124] ss:$8 sps:$4 sm:$0xff]   ;;  %v1052_v12 = vld [vmem:[%s1210_s25 + $0x120] ss:$8 sps:$4 sm:$0xff]  }
  0x1c   : > { %728 = vmatprep.subr.bf16.mxu1 %v1043_v6  ;;  %v1053_v13 = vld [vmem:[%s1210_s25 + $0x34] ss:$8 sps:$4 sm:$0xff]   ;;  %v1057_v15 = vld [vmem:[%s1210_s25 + $0x30] ss:$8 sps:$4 sm:$0xff]   ;;  %v1059_v17 = vld [vmem:[%s1210_s25 + $0x44] ss:$8 sps:$4 sm:$0xff]  }
  0x1d   : > { %v1055_v14 = vld [vmem:[%s1210_s25 + $0x134] ss:$8 sps:$4 sm:$0xff]   ;;  %v1058_v16 = vld [vmem:[%s1210_s25 + $0x130] ss:$8 sps:$4 sm:$0xff]   ;;  %v1061_v18 = vld [vmem:[%s1210_s25 + $0x144] ss:$8 sps:$4 sm:$0xff]  }
  0x1e   : > { %688 = vmatpush1.bf16.msra.mxu0 %v1045_v7  ;;  %v1063_v19 = vld [vmem:[%s1210_s25 + $0x40] ss:$8 sps:$4 sm:$0xff]   ;;  %v1065_v21 = vld [vmem:[%s1210_s25 + $0x54] ss:$8 sps:$4 sm:$0xff]   ;;  %v1069_v23 = vld [vmem:[%s1210_s25 + $0x50] ss:$8 sps:$4 sm:$0xff]  }
  0x1f   : > { %729 = vmatpush1.bf16.msra.mxu1 %v1046_v8  ;;  %689 = vmatprep.subr.bf16.mxu0 %v1047_v9  ;;  %v1064_v20 = vld [vmem:[%s1210_s25 + $0x140] ss:$8 sps:$4 sm:$0xff]   ;;  %v1067_v22 = vld [vmem:[%s1210_s25 + $0x154] ss:$8 sps:$4 sm:$0xff]   ;;  %v1070_v24 = vld [vmem:[%s1210_s25 + $0x150] ss:$8 sps:$4 sm:$0xff]  }
  0x20   : > { %730 = vmatprep.subr.bf16.mxu1 %v1049_v10  ;;  %v1071_v25 = vld [vmem:[%s1210_s25 + $0x64] ss:$8 sps:$4 sm:$0xff]   ;;  %v1075_v27 = vld [vmem:[%s1210_s25 + $0x60] ss:$8 sps:$4 sm:$0xff]   ;;  %v1077_v29 = vld [vmem:[%s1210_s25 + $0x74] ss:$8 sps:$4 sm:$0xff]  }
  0x21   : > { %v1073_v26 = vld [vmem:[%s1210_s25 + $0x164] ss:$8 sps:$4 sm:$0xff]   ;;  %v1076_v28 = vld [vmem:[%s1210_s25 + $0x160] ss:$8 sps:$4 sm:$0xff]   ;;  %v1079_v30 = vld [vmem:[%s1210_s25 + $0x174] ss:$8 sps:$4 sm:$0xff]  }
  0x22   : > { %690 = vmatpush1.bf16.msra.mxu0 %v1051_v11  ;;  %v1081_v31 = vld [vmem:[%s1210_s25 + $0x70] ss:$8 sps:$4 sm:$0xff]   ;;  %v1083_v33 = vld [vmem:[%s1210_s25 + $0x84] ss:$8 sps:$4 sm:$0xff]   ;;  %v1087_v35 = vld [vmem:[%s1210_s25 + $0x80] ss:$8 sps:$4 sm:$0xff]  }
  0x23   : > { %731 = vmatpush1.bf16.msra.mxu1 %v1052_v12  ;;  %691 = vmatprep.subr.bf16.mxu0 %v1053_v13  ;;  %v1082_v32 = vld [vmem:[%s1210_s25 + $0x170] ss:$8 sps:$4 sm:$0xff]   ;;  %v1085_v34 = vld [vmem:[%s1210_s25 + $0x184] ss:$8 sps:$4 sm:$0xff]   ;;  %v1088_v36 = vld [vmem:[%s1210_s25 + $0x180] ss:$8 sps:$4 sm:$0xff]  }
  0x24   : > { %732 = vmatprep.subr.bf16.mxu1 %v1055_v14  ;;  %v1089_v37 = vld [vmem:[%s1210_s25 + $0x94] ss:$8 sps:$4 sm:$0xff]   ;;  %v1093_v39 = vld [vmem:[%s1210_s25 + $0x90] ss:$8 sps:$4 sm:$0xff]   ;;  %v1095_v41 = vld [vmem:[%s1210_s25 + $0xa4] ss:$8 sps:$4 sm:$0xff]  }
  0x25   : > { %v1091_v38 = vld [vmem:[%s1210_s25 + $0x194] ss:$8 sps:$4 sm:$0xff]   ;;  %v1094_v40 = vld [vmem:[%s1210_s25 + $0x190] ss:$8 sps:$4 sm:$0xff]   ;;  %v1097_v42 = vld [vmem:[%s1210_s25 + $0x1a4] ss:$8 sps:$4 sm:$0xff]  }
  0x26   : > { %692 = vmatpush1.bf16.msra.mxu0 %v1057_v15  ;;  %v1099_v43 = vld [vmem:[%s1210_s25 + $0xa0] ss:$8 sps:$4 sm:$0xff]   ;;  %v1101_v45 = vld [vmem:[%s1210_s25 + $0xb4] ss:$8 sps:$4 sm:$0xff]   ;;  %v1105_v50 = vld [vmem:[%s1210_s25 + $0xb0] ss:$8 sps:$4 sm:$0xff]  }
  0x27   : > { %733 = vmatpush1.bf16.msra.mxu1 %v1058_v16  ;;  %693 = vmatprep.subr.bf16.mxu0 %v1059_v17  ;;  %v1100_v44 = vld [vmem:[%s1210_s25 + $0x1a0] ss:$8 sps:$4 sm:$0xff]   ;;  %v1103_v46 = vld [vmem:[%s1210_s25 + $0x1b4] ss:$8 sps:$4 sm:$0xff]   ;;  %v1106_v51 = vld [vmem:[%s1210_s25 + $0x1b0] ss:$8 sps:$4 sm:$0xff]  }
  0x28   : > { %734 = vmatprep.subr.bf16.mxu1 %v1061_v18  ;;  %v285_v47 = vld [vmem:[%s1205_s21] sm:$0xff]  ;;  %v286_v49 = vld [vmem:[%s1205_s21 + $0x8] sm:$0xff]  ;;  %v1113_v57 = vld [vmem:[%s1210_s25 + $0xd4] ss:$8 sps:$4 sm:$0xff]   ;;  %p1002_p7 = scmp.ne.s32.totalorder %s1149_s12, 3 }
  0x29   : > { %v935_v48 = vcombine.high %v285_v47, %v285_v47  ;;  %v937_v52 = vcombine.high %v286_v49, %v286_v49  ;;  %v1107_v53 = vld [vmem:[%s1210_s25 + $0xc4] ss:$8 sps:$4 sm:$0xff]   ;;  %v1111_v55 = vld [vmem:[%s1210_s25 + $0xc0] ss:$8 sps:$4 sm:$0xff]   ;;  %v1115_v58 = vld [vmem:[%s1210_s25 + $0x1d4] ss:$8 sps:$4 sm:$0xff]   ;;  %v934_v5 = vcombine.low %v285_v47, %v285_v47  ;;  %v936_v6 = vcombine.low %v286_v49, %v286_v49 }
  0x2a   : > { %694 = vmatpush1.bf16.msra.mxu0 %v1063_v19  ;;  %v1109_v54 = vld [vmem:[%s1210_s25 + $0x1c4] ss:$8 sps:$4 sm:$0xff]   ;;  %v1112_v56 = vld [vmem:[%s1210_s25 + $0x1c0] ss:$8 sps:$4 sm:$0xff]   ;;  %v1117_v59 = vld [vmem:[%s1210_s25 + $0xd0] ss:$8 sps:$4 sm:$0xff]  }
  0x2b   : > { %735 = vmatpush1.bf16.msra.mxu1 %v1064_v20  ;;  %695 = vmatprep.subr.bf16.mxu0 %v1065_v21  ;;  %v1118_v60 = vld [vmem:[%s1210_s25 + $0x1d0] ss:$8 sps:$4 sm:$0xff]   ;;  %v1119_v61 = vld [vmem:[%s1210_s25 + $0xe4] ss:$8 sps:$4 sm:$0xff]   ;;  %v1123_v63 = vld [vmem:[%s1210_s25 + $0xe0] ss:$8 sps:$4 sm:$0xff]   ;;  %v779_v21 = vlaneseq (!%p1002_p7) }
  0x2c   : > { %736 = vmatprep.subr.bf16.mxu1 %v1067_v22  ;;  %717 = vmatprep.mubr.bf16.mxu0 %v935_v48  ;;  %v1121_v62 = vld [vmem:[%s1210_s25 + $0x1e4] ss:$8 sps:$4 sm:$0xff]   ;;  %v1124_v0 = vld [vmem:[%s1210_s25 + $0x1e0] ss:$8 sps:$4 sm:$0xff]   ;;  %v1125_v1 = vld [vmem:[%s1210_s25 + $0xf4] ss:$8 sps:$4 sm:$0xff]  }
  0x2d   : > { %758 = vmatprep.mubr.bf16.mxu1 %v937_v52  ;;  %v1127_v2 = vld [vmem:[%s1210_s25 + $0x1f4] ss:$8 sps:$4 sm:$0xff]   ;;  %v1129_v3 = vld [vmem:[%s1210_s25 + $0xf0] ss:$8 sps:$4 sm:$0xff]   ;;  %v283_v8 = vld [vmem:[#allocation2] sm:$0xff]  ;;  %v780_v22 = vshrl.u32 (!%p1002_p7), %v779_v21, 7 }
  0x2e   : > { %696 = vmatpush1.bf16.msra.mxu0 %v1069_v23  ;;  %v1130_v4 = vld [vmem:[%s1210_s25 + $0x1f0] ss:$8 sps:$4 sm:$0xff]   ;;  %v284_v12 = vld [vmem:[#allocation2 + $0x8] sm:$0xff]  ;;  %v777_v23 = vld [vmem:[%s1297_s2] sm:$0x3] (!%p1002_p7) }
  0x2f   : > { %737 = vmatpush1.bf16.msra.mxu1 %v1070_v24  ;;  %697 = vmatprep.subr.bf16.mxu0 %v1071_v25  ;;  %v781_v24 = vsub.s32 (!%p1002_p7), 0, %v780_v22  ;;  %v785_v25 = vsub.s32 (!%p1002_p7), 1, %v780_v22 }
  0x30   : > { %738 = vmatprep.subr.bf16.mxu1 %v1073_v26 }
  0x32   : > { %698 = vmatpush1.bf16.msra.mxu0 %v1075_v27 }
  0x33   : > { %739 = vmatpush1.bf16.msra.mxu1 %v1076_v28  ;;  %699 = vmatprep.subr.bf16.mxu0 %v1077_v29  ;;  %v782_v28 = vrot.slane (!%p1002_p7), %v777_v23, %v781_v24  ;;  %v786_v29 = vrot.slane (!%p1002_p7), %v777_v23, %v785_v25 }
  0x34   : > { %740 = vmatprep.subr.bf16.mxu1 %v1079_v30 }
  0x36   : > { %700 = vmatpush1.bf16.msra.mxu0 %v1081_v31 }
  0x37   : > { %741 = vmatpush1.bf16.msra.mxu1 %v1082_v32  ;;  %701 = vmatprep.subr.bf16.mxu0 %v1083_v33 }
  0x38   : > { %742 = vmatprep.subr.bf16.mxu1 %v1085_v34 }
  0x3a   : > { %702 = vmatpush1.bf16.msra.mxu0 %v1087_v35 }
  0x3b   : > { %743 = vmatpush1.bf16.msra.mxu1 %v1088_v36  ;;  %703 = vmatprep.subr.bf16.mxu0 %v1089_v37 }
  0x3c   : > { %744 = vmatprep.subr.bf16.mxu1 %v1091_v38 }
  0x3e   : > { %704 = vmatpush1.bf16.msra.mxu0 %v1093_v39 }
  0x3f   : > { %745 = vmatpush1.bf16.msra.mxu1 %v1094_v40  ;;  %705 = vmatprep.subr.bf16.mxu0 %v1095_v41 }
  0x40   : > { %746 = vmatprep.subr.bf16.mxu1 %v1097_v42 }
  0x42   : > { %706 = vmatpush1.bf16.msra.mxu0 %v1099_v43 }
  0x43   : > { %747 = vmatpush1.bf16.msra.mxu1 %v1100_v44  ;;  %707 = vmatprep.subr.bf16.mxu0 %v1101_v45 }
  0x44   : > { %748 = vmatprep.subr.bf16.mxu1 %v1103_v46 }
  0x46   : > { %708 = vmatpush1.bf16.msra.mxu0 %v1105_v50 }
  0x47   : > { %749 = vmatpush1.bf16.msra.mxu1 %v1106_v51  ;;  %709 = vmatprep.subr.bf16.mxu0 %v1107_v53 }
  0x48   : > { %750 = vmatprep.subr.bf16.mxu1 %v1109_v54 }
  0x4a   : > { %710 = vmatpush1.bf16.msra.mxu0 %v1111_v55 }
  0x4b   : > { %751 = vmatpush1.bf16.msra.mxu1 %v1112_v56  ;;  %711 = vmatprep.subr.bf16.mxu0 %v1113_v57 }
  0x4c   : > { %752 = vmatprep.subr.bf16.mxu1 %v1115_v58 }
  0x4e   : > { %712 = vmatpush1.bf16.msra.mxu0 %v1117_v59 }
  0x4f   : > { %753 = vmatpush1.bf16.msra.mxu1 %v1118_v60  ;;  %713 = vmatprep.subr.bf16.mxu0 %v1119_v61 }
  0x50   : > { %754 = vmatprep.subr.bf16.mxu1 %v1121_v62 }
  0x52   : > { %714 = vmatpush1.bf16.msra.mxu0 %v1123_v63 }
  0x53   : > { %755 = vmatpush1.bf16.msra.mxu1 %v1124_v0  ;;  %715 = vmatprep.subr.bf16.mxu0 %v1125_v1 }
  0x54   : > { %756 = vmatprep.subr.bf16.mxu1 %v1127_v2 }
  0x56   : > { %716 = vmatpush1.bf16.msra.mxu0 %v1129_v3 }
  0x57   : > { %757 = vmatpush1.bf16.msra.mxu1 %v1130_v4 }
  0x59   : > { %718 = vmatmul.mubr.bf16.vlgmr.msra.gmra.mrb[0].mxu0 %v934_v5 }
  0x5a   : > { %759 = vmatmul.mubr.bf16.vlgmr.msra.gmra.mrb[0].mxu1 %v936_v6 }
 0x12c   : > { %v719_v7 = vpop.f32.mrb[0].mxu0 }
 0x12d   : > { %v760_v9 = vpop.f32.mrb[0].mxu1  ;;  %v721_v11 = vpop.f32.mrb[1].mxu0  ;;  %774 = sbr.rel (%p1002_p7) target bundleno = 323 (0x143), region = 40 }
 0x12e   : > { %v761_v10 = vadd.f32 %v760_v9, %v719_v7  ;;  %v762_v13 = vpop.f32.mrb[1].mxu1  ;;  %v723_v15 = vpop.f32.mrb[2].mxu0 }
 0x12f   : > { %v763_v14 = vadd.f32 %v762_v13, %v721_v11  ;;  %v764_v16 = vpop.f32.mrb[2].mxu1  ;;  %v724_v18 = vpop.f32.mrb[3].mxu0 }
 0x130   : > { %v767_v17 = vadd.f32 %v761_v10, %v283_v8  ;;  %v765_v19 = vpop.f32.mrb[3].mxu1 }
 0x131   : > { %v768_v20 = vadd.f32 %v763_v14, %v284_v12 }
 0x132   : > { %769 = vst [vmem:[#allocation2] sm:$0xff] %v767_v17 }
 0x133   : > { %770 = vst [vmem:[#allocation2 + $0x8] sm:$0xff] %v768_v20 }
 0x139   : > { %v775_v26 = vld [vmem:[#allocation2] sm:$0xff] }
 0x13a   : > { %v776_v27 = vld [vmem:[#allocation2 + $0x8] sm:$0xff]  ;;  %v789_v30 = vadd.f32 %v782_v28, %v775_v26 }
 0x13b   : > { %v790_v31 = vadd.f32 %v786_v29, %v776_v27 }
 0x13c   : > { %vm791_vm0 = vcmp.ge.f32.partialorder %v789_v30, 0.0  ;;  %v793_v32 = vmul.f32 0.01, %v789_v30 }
 0x13d   : > { %vm792_vm1 = vcmp.ge.f32.partialorder %v790_v31, 0.0  ;;  %v794_v33 = vmul.f32 0.01, %v790_v31 }
 0x13e   : > { %v795_v34 = vsel %vm791_vm0, %v789_v30, %v793_v32 }
 0x13f   : > { %v796_v35 = vsel %vm792_vm1, %v790_v31, %v794_v33 }
 0x140   : > { %v1009_v36 = vpack.c.bf16 %v796_v35, %v795_v34 }
 0x142   : > { %805 = vst [vmem:[%s1298_s3] sm:$0xff] %v1009_v36 }
 0x143 PF: > { %s13_s14 = sadd.s32 1, %s1157_s14   ;;  %s1299_s12 = smov %s1153_s13 }
 0x144   : > { %p10_p8 = scmp.ge.s32.totalorder %s13_s14, 6   ;;  %s1300_s13 = smov %s1302_s15 }
 0x146   :  { %12 = sbr.rel (!%p10_p8) target bundleno = 2 (0x2), region = 76 }

// kernel: model_forward.14
= control target key start
LH: loop header
LB: loop body
LE: loop exit
PB: predicated region body
PF: predicated region fallthrough
CT: control target
= control target key end

     0   :  { %s940_s12 = smov 0   ;;  %s942_s13 = smov 0   ;;  %s1023_s0 = inlined_call_operand.vmem [shape: bf16[8,1024], index: 0, kind: input, shape index: {}]   ;;  %s1024_s1 = inlined_call_operand.vmem [shape: bf16[1024,128], index: 1, kind: input, shape index: {}]   ;;  %s1025_s2 = inlined_call_operand.vmem [shape: f32[1,128], index: 2, kind: input, shape index: {}]   ;;  %s1026_s3 = inlined_call_operand.vmem [shape: f32[8,128], index: 3, kind: output, shape index: {}]  }
   0x1   :  { %s944_s14 = smov 0  }
   0x2 LB: > { %s25_s15 = sadd.s32 1, %s913_s13  ;;  %p743_p0 = scmp.ge.s32.totalorder %s917_s14, 1  ;;  %s917_s14 = sphi %s944_s14, %s13_s14   ;;  %s913_s13 = sphi %s942_s13, %s1028_s13   ;;  %s909_s12 = sphi %s940_s12, %s1027_s12  }
   0x3   : > { %p26_p1 = scmp.ge.s32.totalorder %s25_s15, 2  ;;  %p189_p2 = scmp.lt.s32.totalorder %s917_s14, 3 }
   0x5   : > { %s1030_s15 = smov (%p26_p1, %s25_s15), 0  ;;  %p190_p3 = pnand %p743_p0, %p189_p2 }
   0x6   : > { %s744_s16 = sshll.u32 (!%p190_p3), %s909_s12, 2  ;;  %s746_s17 = sshll.u32 (!%p190_p3), %s909_s12, 6 }
   0x7   : > { %193 = sbr.rel (%p190_p3) target bundleno = 289 (0x121), region = 32  ;;  %p233_p4 = scmp.lt.s32.totalorder (!%p190_p3), %s744_s16, 7 }
   0x8   : > { %p241_p5 = scmp.lt.s32.totalorder (!%p190_p3), %s746_s17, 127  ;;  %p748_p6 = scmp.ne.s32.totalorder (!%p190_p3), %s909_s12, 0 }
   0xe   : > { %s1032_s16 = smov (!%p233_p4, %s744_s16), 7  ;;  %s1034_s17 = smov (!%p241_p5, %s746_s17), 127 }
   0xf   : > { %s745_s18 = sshll.u32 %s1032_s16, 2  ;;  %s747_s22 = sshll.u32 %s1034_s17, 2  ;;  %v919_v0 = vmov (!%p748_p6), 0.0  }
  0x10   : > { %s965_s21 = scalar_lea.vmem %s1023_s0, %s745_s18  ;;  %s970_s25 = scalar_lea.vmem %s1024_s1, %s747_s22  ;;  %264 = vst [vmem:[#allocation2] sm:$0xff] (!%p748_p6), %v919_v0 }
  0x11   : > { %263 = sbr.rel (%p748_p6) target bundleno = 24 (0x18), region = 36 }
  0x18 PF: > { %v859_v1 = vld [vmem:[%s970_s25 + $0x40] sm:$0xff]   ;;  %v863_v5 = vld [vmem:[%s970_s25 + $0x48] sm:$0xff]   ;;  %v867_v9 = vld [vmem:[%s970_s25 + $0x50] sm:$0xff]   ;;  %p785_p7 = scmp.ne.s32.totalorder %s909_s12, 1 }
  0x19   : > { %v860_v2 = vld [vmem:[%s970_s25 + $0xc0] sm:$0xff]   ;;  %790 = vmatprep.subr.bf16.mxu0 %v859_v1  ;;  %v864_v6 = vld [vmem:[%s970_s25 + $0xc8] sm:$0xff]   ;;  %v868_v10 = vld [vmem:[%s970_s25 + $0xd0] sm:$0xff]  }
  0x1a   : > { %v861_v3 = vld [vmem:[%s970_s25] sm:$0xff]   ;;  %812 = vmatprep.subr.bf16.mxu1 %v860_v2  ;;  %v865_v7 = vld [vmem:[%s970_s25 + $0x8] sm:$0xff]   ;;  %v869_v11 = vld [vmem:[%s970_s25 + $0x10] sm:$0xff]  }
  0x1b   : > { %v862_v4 = vld [vmem:[%s970_s25 + $0x80] sm:$0xff]   ;;  %791 = vmatpush3.bf16.msra.mxu0 %v861_v3  ;;  %v866_v8 = vld [vmem:[%s970_s25 + $0x88] sm:$0xff]   ;;  %v870_v12 = vld [vmem:[%s970_s25 + $0x90] sm:$0xff]  }
  0x1c   : > { %813 = vmatpush3.bf16.msra.mxu1 %v862_v4  ;;  %792 = vmatprep.subr.bf16.mxu0 %v863_v5  ;;  %v871_v13 = vld [vmem:[%s970_s25 + $0x58] sm:$0xff]   ;;  %v875_v17 = vld [vmem:[%s970_s25 + $0x60] sm:$0xff]   ;;  %v879_v21 = vld [vmem:[%s970_s25 + $0x68] sm:$0xff]  }
  0x1d   : > { %814 = vmatprep.subr.bf16.mxu1 %v864_v6  ;;  %v872_v14 = vld [vmem:[%s970_s25 + $0xd8] sm:$0xff]   ;;  %v876_v18 = vld [vmem:[%s970_s25 + $0xe0] sm:$0xff]   ;;  %v880_v22 = vld [vmem:[%s970_s25 + $0xe8] sm:$0xff]  }
  0x1e   : > { %v873_v15 = vld [vmem:[%s970_s25 + $0x18] sm:$0xff]   ;;  %v877_v19 = vld [vmem:[%s970_s25 + $0x20] sm:$0xff]   ;;  %v881_v23 = vld [vmem:[%s970_s25 + $0x28] sm:$0xff]  }
  0x1f   : > { %793 = vmatpush3.bf16.msra.mxu0 %v865_v7  ;;  %v874_v16 = vld [vmem:[%s970_s25 + $0x98] sm:$0xff]   ;;  %v878_v20 = vld [vmem:[%s970_s25 + $0xa0] sm:$0xff]   ;;  %v882_v24 = vld [vmem:[%s970_s25 + $0xa8] sm:$0xff]  }
  0x20   : > { %815 = vmatpush3.bf16.msra.mxu1 %v866_v8  ;;  %794 = vmatprep.subr.bf16.mxu0 %v867_v9  ;;  %v883_v25 = vld [vmem:[%s970_s25 + $0x70] sm:$0xff]   ;;  %v887_v29 = vld [vmem:[%s970_s25 + $0x78] sm:$0xff]   ;;  %v266_v33 = vld [vmem:[%s965_s21] sm:$0xff] }
  0x21   : > { %816 = vmatprep.subr.bf16.mxu1 %v868_v10  ;;  %v884_v26 = vld [vmem:[%s970_s25 + $0xf0] sm:$0xff]   ;;  %v888_v30 = vld [vmem:[%s970_s25 + $0xf8] sm:$0xff]   ;;  %v267_v34 = vld [vmem:[%s965_s21 + $0x8] sm:$0xff]  ;;  %v749_v35 = vcombine.low %v266_v33, %v266_v33  ;;  %v750_v36 = vcombine.high %v266_v33, %v266_v33 }
  0x22   : > { %v885_v27 = vld [vmem:[%s970_s25 + $0x30] sm:$0xff]   ;;  %v889_v31 = vld [vmem:[%s970_s25 + $0x38] sm:$0xff]   ;;  %v751_v37 = vcombine.low %v267_v34, %v267_v34  ;;  %v752_v38 = vcombine.high %v267_v34, %v267_v34  ;;  %v265_v47 = vld [vmem:[#allocation2] sm:$0xff] }
  0x23   : > { %795 = vmatpush3.bf16.msra.mxu0 %v869_v11  ;;  %v886_v28 = vld [vmem:[%s970_s25 + $0xb0] sm:$0xff]   ;;  %v890_v32 = vld [vmem:[%s970_s25 + $0xb8] sm:$0xff]   ;;  %570 = vmatprep.mubr.bf16.mxu0 %v750_v36  ;;  %v786_v53 = vld [vmem:[%s1025_s2] ss:$0 sm:$0xff] (!%p785_p7) }
  0x24   : > { %817 = vmatpush3.bf16.msra.mxu1 %v870_v12  ;;  %796 = vmatprep.subr.bf16.mxu0 %v871_v13 }
  0x25   : > { %818 = vmatprep.subr.bf16.mxu1 %v872_v14  ;;  %610 = vmatprep.mubr.bf16.mxu1 %v752_v38 }
  0x27   : > { %797 = vmatpush3.bf16.msra.mxu0 %v873_v15 }
  0x28   : > { %819 = vmatpush3.bf16.msra.mxu1 %v874_v16  ;;  %798 = vmatprep.subr.bf16.mxu0 %v875_v17 }
  0x29   : > { %820 = vmatprep.subr.bf16.mxu1 %v876_v18 }
  0x2b   : > { %799 = vmatpush3.bf16.msra.mxu0 %v877_v19 }
  0x2c   : > { %821 = vmatpush3.bf16.msra.mxu1 %v878_v20  ;;  %800 = vmatprep.subr.bf16.mxu0 %v879_v21 }
  0x2d   : > { %822 = vmatprep.subr.bf16.mxu1 %v880_v22 }
  0x2f   : > { %801 = vmatpush3.bf16.msra.mxu0 %v881_v23 }
  0x30   : > { %823 = vmatpush3.bf16.msra.mxu1 %v882_v24  ;;  %802 = vmatprep.subr.bf16.mxu0 %v883_v25 }
  0x31   : > { %824 = vmatprep.subr.bf16.mxu1 %v884_v26 }
  0x33   : > { %803 = vmatpush3.bf16.msra.mxu0 %v885_v27 }
  0x34   : > { %825 = vmatpush3.bf16.msra.mxu1 %v886_v28  ;;  %804 = vmatprep.subr.bf16.mxu0 %v887_v29 }
  0x35   : > { %826 = vmatprep.subr.bf16.mxu1 %v888_v30 }
  0x37   : > { %805 = vmatpush3.bf16.msra.mxu0 %v889_v31 }
  0x38   : > { %827 = vmatpush3.bf16.msra.mxu1 %v890_v32 }
  0x3a   : > { %571 = vmatmul.mubr.bf16.vlgmr.msra.gmra.mrb[0].mxu0 %v749_v35 }
  0x3b   : > { %611 = vmatmul.mubr.bf16.vlgmr.msra.gmra.mrb[0].mxu1 %v751_v37 }
 0x10d   : > { %v806_v39 = vpop.f32.mrb[0].mxu0 }
 0x10e   : > { %v828_v40 = vpop.f32.mrb[0].mxu1  ;;  %v807_v41 = vpop.f32.mrb[1].mxu0 }
 0x10f   : > { %v829_v42 = vpop.f32.mrb[1].mxu1  ;;  %v808_v43 = vadd.f32 %v807_v41, %v806_v39  ;;  %v809_v45 = vpop.f32.mrb[2].mxu0 }
 0x110   : > { %v830_v44 = vadd.f32 %v829_v42, %v828_v40  ;;  %v831_v46 = vpop.f32.mrb[2].mxu1  ;;  %v810_v48 = vpop.f32.mrb[3].mxu0  ;;  %623 = sbr.rel (%p785_p7) target bundleno = 289 (0x121), region = 40 }
 0x111   : > { %v832_v49 = vpop.f32.mrb[3].mxu1 }
 0x112   : > { %v613_v50 = vadd.f32 %v830_v44, %v808_v43 }
 0x114   : > { %v618_v51 = vadd.f32 %v613_v50, %v265_v47 }
 0x116   : > { %619 = vst [vmem:[#allocation2] sm:$0xff] %v618_v51 }
 0x11d   : > { %v624_v52 = vld [vmem:[#allocation2] sm:$0xff] }
 0x11e   : > { %v632_v54 = vadd.f32 %v786_v53, %v624_v52 }
 0x120   : > { %633 = vst [vmem:[%s1026_s3] sm:$0xff] %v632_v54 }
 0x121 PF: > { %s13_s14 = sadd.s32 1, %s917_s14   ;;  %s1027_s12 = smov %s913_s13 }
 0x122   : > { %p10_p8 = scmp.ge.s32.totalorder %s13_s14, 4   ;;  %s1028_s13 = smov %s1030_s15 }
 0x124   :  { %12 = sbr.rel (!%p10_p8) target bundleno = 2 (0x2), region = 76 }

// kernel: model_forward.15
= control target key start
LH: loop header
LB: loop body
LE: loop exit
PB: predicated region body
PF: predicated region fallthrough
CT: control target
= control target key end

     0   :  { %s811_s12 = smov 0   ;;  %s813_s13 = smov 0   ;;  %s900_s0 = inlined_call_operand.vmem [shape: bf16[8,128], index: 0, kind: input, shape index: {}]   ;;  %s901_s1 = inlined_call_operand.vmem [shape: bf16[128,1024], index: 1, kind: input, shape index: {}]   ;;  %s902_s2 = inlined_call_operand.vmem [shape: f32[1,1024], index: 2, kind: input, shape index: {}]   ;;  %s903_s3 = inlined_call_operand.vmem [shape: bf16[8,1024], index: 3, kind: output, shape index: {}]  }
   0x1   :  { %s815_s14 = smov 0   ;;  %s817_s15 = smov 0  }
   0x2   :  { %s819_s16 = smov 0  }
   0x3 LB: > { %s28_s17 = sadd.s32 1, %s784_s15  ;;  %p76_p1 = scmp.ne.s32.totalorder %s776_s13, %s772_s12  ;;  %s788_s16 = sphi %s819_s16, %s13_s16   ;;  %s784_s15 = sphi %s817_s15, %s907_s15   ;;  %s780_s14 = sphi %s815_s14, %s906_s14   ;;  %s776_s13 = sphi %s813_s13, %s905_s13   ;;  %s772_s12 = sphi %s811_s12, %s904_s12  }
   0x4   : > { %p30_p0 = scmp.ge.s32.totalorder %s28_s17, 4  ;;  %p77_p2 = scmp.eq.s32.totalorder %s788_s16, 0 }
   0x5   : > { %s69_s19 = sadd.s32 1, %s776_s13  ;;  %p655_p5 = scmp.ge.s32.totalorder %s788_s16, 4 }
   0x6   : > { %s909_s17 = smov (%p30_p0, %s28_s17), 0  ;;  %p78_p3 = por %p77_p2, %p76_p1 }
   0x7   : > { %s65_s18 = ssub.s32 %s784_s15, %s909_s17  ;;  %166 = sbr.rel (%p655_p5) target bundleno = 34 (0x22), region = 20 }
   0x8   : > { %p67_p4 = scmp.eq.s32.totalorder %s65_s18, 0 }
   0xa   : > { %s846_s20 = scalar_select %p67_p4, %s776_s13, %s69_s19  }
   0xe   : > { %169 = sbr.rel (!%p78_p3) target bundleno = 34 (0x22), region = 24  ;;  %s171_s21 = sand.u32 (%p78_p3), 1, %s776_s13  }
   0xf   : > { %s683_s22 = sshll.u32 (%p78_p3), %s784_s15, 3  ;;  %s656_s23 = sshll.u32 (%p78_p3), %s171_s21, 7 }
  0x10   : > { %s854_s26 = scalar_lea.vmem (%p78_p3), %s901_s1, %s683_s22  ;;  %s173_s27 = scalar_lea.vmem (%p78_p3), [#allocation3], %s656_s23 }
  0x11   : > { %v237_v0 = vld [vmem:[%s854_s26] sm:$0xff] (%p78_p3) }
  0x12   : > { %v239_v1 = vld [vmem:[%s854_s26 + $0x20] sm:$0xff] (%p78_p3)  ;;  %238 = vst [vmem:[%s173_s27] sm:$0xff] (%p78_p3), %v237_v0 }
  0x13   : > { %v241_v2 = vld [vmem:[%s854_s26 + $0x40] sm:$0xff] (%p78_p3)  ;;  %240 = vst [vmem:[%s173_s27 + $0x8] sm:$0xff] (%p78_p3), %v239_v1 }
  0x14   : > { %242 = vst [vmem:[%s173_s27 + $0x10] sm:$0xff] (%p78_p3), %v241_v2  ;;  %v243_v3 = vld [vmem:[%s854_s26 + $0x60] sm:$0xff] (%p78_p3) }
  0x15   : > { %v245_v4 = vld [vmem:[%s854_s26 + $0x80] sm:$0xff]  ;;  %244 = vst [vmem:[%s173_s27 + $0x18] sm:$0xff] %v243_v3 }
  0x16   : > { %v247_v5 = vld [vmem:[%s854_s26 + $0xa0] sm:$0xff]  ;;  %246 = vst [vmem:[%s173_s27 + $0x20] sm:$0xff] %v245_v4 }
  0x17   : > { %248 = vst [vmem:[%s173_s27 + $0x28] sm:$0xff] %v247_v5  ;;  %v249_v6 = vld [vmem:[%s854_s26 + $0xc0] sm:$0xff] }
  0x18   : > { %v251_v7 = vld [vmem:[%s854_s26 + $0xe0] sm:$0xff]  ;;  %250 = vst [vmem:[%s173_s27 + $0x30] sm:$0xff] %v249_v6 }
  0x19   : > { %v253_v8 = vld [vmem:[%s854_s26 + $0x100] sm:$0xff]  ;;  %252 = vst [vmem:[%s173_s27 + $0x38] sm:$0xff] %v251_v7 }
  0x1a   : > { %254 = vst [vmem:[%s173_s27 + $0x40] sm:$0xff] %v253_v8  ;;  %v255_v9 = vld [vmem:[%s854_s26 + $0x120] sm:$0xff] }
  0x1b   : > { %v257_v10 = vld [vmem:[%s854_s26 + $0x140] sm:$0xff]  ;;  %256 = vst [vmem:[%s173_s27 + $0x48] sm:$0xff] %v255_v9 }
  0x1c   : > { %v259_v11 = vld [vmem:[%s854_s26 + $0x160] sm:$0xff]  ;;  %258 = vst [vmem:[%s173_s27 + $0x50] sm:$0xff] %v257_v10 }
  0x1d   : > { %260 = vst [vmem:[%s173_s27 + $0x58] sm:$0xff] %v259_v11  ;;  %v261_v12 = vld [vmem:[%s854_s26 + $0x180] sm:$0xff] }
  0x1e   : > { %v263_v13 = vld [vmem:[%s854_s26 + $0x1a0] sm:$0xff]  ;;  %262 = vst [vmem:[%s173_s27 + $0x60] sm:$0xff] %v261_v12 }
  0x1f   : > { %v265_v14 = vld [vmem:[%s854_s26 + $0x1c0] sm:$0xff]  ;;  %264 = vst [vmem:[%s173_s27 + $0x68] sm:$0xff] %v263_v13 }
  0x20   : > { %266 = vst [vmem:[%s173_s27 + $0x70] sm:$0xff] %v265_v14  ;;  %v267_v15 = vld [vmem:[%s854_s26 + $0x1e0] sm:$0xff] }
  0x21   : > { %268 = vst [vmem:[%s173_s27 + $0x78] sm:$0xff] %v267_v15 }
  0x22 PF: > { %p659_p6 = scmp.ge.s32.totalorder %s788_s16, 1  ;;  %p281_p7 = scmp.lt.s32.totalorder %s788_s16, 5 }
  0x24   : > { %p282_p8 = pnand %p659_p6, %p281_p7 }
  0x25   : > { %s288_s28 = sand.u32 (!%p282_p8), 1, %s772_s12   ;;  %v790_v16 = vmov (!%p282_p8), 0   ;;  %v359_v33 = vld [vmem:[%s900_s0] sm:$0xf] (!%p282_p8)  ;;  %s661_s6 = sshll.u32 (!%p282_p8), %s780_s14, 1  ;;  %v508_v34 = vlaneseq (!%p282_p8) }
  0x26   : > { %285 = sbr.rel (%p282_p8) target bundleno = 293 (0x125), region = 66  ;;  %s660_s29 = sshll.u32 (!%p282_p8), %s288_s28, 7  ;;  %488 = vmatprep.mubr.bf16.mxu0 (!%p282_p8), %v790_v16 }
  0x27   : > { %s290_s30 = scalar_lea.vmem (!%p282_p8), [#allocation3], %s660_s29  ;;  %p336_p9 = scmp.lt.s32.totalorder (!%p282_p8), %s661_s6, 7  ;;  %v509_v35 = vshrl.u32 (!%p282_p8), %v508_v34, 7 }
  0x28   : > { %v726_v17 = vld [vmem:[%s290_s30 + $0x4] ss:$8 sps:$4 sm:$0xff] (!%p282_p8)   ;;  %v728_v18 = vld [vmem:[%s290_s30] ss:$8 sps:$4 sm:$0xff] (!%p282_p8)   ;;  %v729_v19 = vld [vmem:[%s290_s30 + $0x14] ss:$8 sps:$4 sm:$0xff] (!%p282_p8)  }
  0x29   : > { %456 = vmatprep.subr.bf16.mxu0 (!%p282_p8), %v726_v17  ;;  %v731_v20 = vld [vmem:[%s290_s30 + $0x10] ss:$8 sps:$4 sm:$0xff] (!%p282_p8)   ;;  %v732_v21 = vld [vmem:[%s290_s30 + $0x24] ss:$8 sps:$4 sm:$0xff] (!%p282_p8)   ;;  %v734_v22 = vld [vmem:[%s290_s30 + $0x20] ss:$8 sps:$4 sm:$0xff] (!%p282_p8)  }
  0x2a   : > { %457 = vmatpush1.bf16.msra.mxu0 (!%p282_p8), %v728_v18  ;;  %v735_v23 = vld [vmem:[%s290_s30 + $0x34] ss:$8 sps:$4 sm:$0xff] (!%p282_p8)   ;;  %v737_v24 = vld [vmem:[%s290_s30 + $0x30] ss:$8 sps:$4 sm:$0xff] (!%p282_p8)   ;;  %v738_v25 = vld [vmem:[%s290_s30 + $0x44] ss:$8 sps:$4 sm:$0xff] (!%p282_p8)  }
  0x2b   : > { %458 = vmatprep.subr.bf16.mxu0 (!%p282_p8), %v729_v19  ;;  %v740_v26 = vld [vmem:[%s290_s30 + $0x40] ss:$8 sps:$4 sm:$0xff] (!%p282_p8)   ;;  %v741_v27 = vld [vmem:[%s290_s30 + $0x54] ss:$8 sps:$4 sm:$0xff] (!%p282_p8)   ;;  %v743_v28 = vld [vmem:[%s290_s30 + $0x50] ss:$8 sps:$4 sm:$0xff] (!%p282_p8)  }
  0x2c   : > { %v744_v29 = vld [vmem:[%s290_s30 + $0x64] ss:$8 sps:$4 sm:$0xff] (!%p282_p8)   ;;  %v746_v30 = vld [vmem:[%s290_s30 + $0x60] ss:$8 sps:$4 sm:$0xff] (!%p282_p8)   ;;  %v747_v31 = vld [vmem:[%s290_s30 + $0x74] ss:$8 sps:$4 sm:$0xff] (!%p282_p8)  }
  0x2d   : > { %v749_v32 = vld [vmem:[%s290_s30 + $0x70] ss:$8 sps:$4 sm:$0xff]   ;;  %s911_s6 = smov (!%p336_p9, %s661_s6), 7  ;;  %v510_v36 = vsub.s32 0, %v509_v35  ;;  %v514_v38 = vsub.s32 1, %v509_v35 }
  0x2e   : > { %459 = vmatpush1.bf16.msra.mxu0 %v731_v20  ;;  %s338_s9 = scalar_lea.vmem %s902_s2, %s911_s6  ;;  %s663_s10 = sshll.u32 %s911_s6, 2 }
  0x2f   : > { %460 = vmatprep.subr.bf16.mxu0 %v732_v21  ;;  %v506_v37 = vld [vmem:[%s338_s9] sm:$0x3]  ;;  %s348_s14 = scalar_lea.vmem %s903_s3, %s663_s10 }
  0x30   : > { %v511_v39 = vrot.slane %v506_v37, %v510_v36  ;;  %v515_v40 = vrot.slane %v506_v37, %v514_v38 }
  0x32   : > { %461 = vmatpush1.bf16.msra.mxu0 %v734_v22 }
  0x33   : > { %462 = vmatprep.subr.bf16.mxu0 %v735_v23 }
  0x36   : > { %463 = vmatpush1.bf16.msra.mxu0 %v737_v24 }
  0x37   : > { %464 = vmatprep.subr.bf16.mxu0 %v738_v25 }
  0x3a   : > { %465 = vmatpush1.bf16.msra.mxu0 %v740_v26 }
  0x3b   : > { %466 = vmatprep.subr.bf16.mxu0 %v741_v27 }
  0x3e   : > { %467 = vmatpush1.bf16.msra.mxu0 %v743_v28 }
  0x3f   : > { %468 = vmatprep.subr.bf16.mxu0 %v744_v29 }
  0x42   : > { %469 = vmatpush1.bf16.msra.mxu0 %v746_v30 }
  0x43   : > { %470 = vmatprep.subr.bf16.mxu0 %v747_v31 }
  0x46   : > { %471 = vmatpush1.bf16.msra.mxu0 %v749_v32 }
  0x49   : > { %489 = vmatmul.mubr.bf16.vlgmr.msra.gmra.mrb[0].mxu0 %v359_v33 }
 0x11c   : > { %v490_v41 = vpop.f32.mrb[0].mxu0 }
 0x11d   : > { %v518_v42 = vadd.f32 %v511_v39, %v490_v41  ;;  %v492_v43 = vpop.f32.mrb[1].mxu0 }
 0x11e   : > { %v519_v44 = vadd.f32 %v515_v40, %v492_v43  ;;  %v494_v45 = vpop.f32.mrb[2].mxu0 }
 0x11f   : > { %v520_v46 = vmax.f32 %v518_v42, 0.0  ;;  %v495_v47 = vpop.f32.mrb[3].mxu0 }
 0x120   : > { %v521_v48 = vmax.f32 %v519_v44, 0.0 }
 0x122   : > { %v684_v49 = vpack.c.bf16 %v521_v48, %v520_v46 }
 0x124   : > { %530 = vst [vmem:[%s348_s14] sm:$0xff] %v684_v49 }
 0x125 PF: > { %s13_s16 = sadd.s32 1, %s788_s16   ;;  %s904_s12 = smov %s776_s13 }
 0x126   : > { %p10_p10 = scmp.ge.s32.totalorder %s13_s16, 6   ;;  %s905_s13 = smov %s846_s20 }
 0x127   : > { %s906_s14 = smov %s784_s15  ;;  %s907_s15 = smov %s909_s17 }
 0x128   :  { %12 = sbr.rel (!%p10_p10) target bundleno = 3 (0x3), region = 119 }

// kernel: model_forward.16
= control target key start
LH: loop header
LB: loop body
LE: loop exit
PB: predicated region body
PF: predicated region fallthrough
CT: control target
= control target key end

     0   :  { %s1523_s12 = smov 0   ;;  %s1525_s13 = smov 0   ;;  %s1834_s0 = inlined_call_operand.vmem [shape: bf16[8,1024], index: 0, kind: input, shape index: {}]   ;;  %s1835_s1 = inlined_call_operand.vmem [shape: bf16[1024,1024], index: 1, kind: input, shape index: {}]   ;;  %s1836_s2 = inlined_call_operand.vmem [shape: f32[1,1024], index: 2, kind: input, shape index: {}]   ;;  %s1837_s3 = inlined_call_operand.vmem [shape: bf16[8,1024], index: 3, kind: output, shape index: {}]  }
   0x1   :  { %s1527_s14 = smov 0   ;;  %s1529_s15 = smov 0  }
   0x2   :  { %s1531_s16 = smov 0   ;;  %s1533_s17 = smov 0  }
   0x3   :  { %s1535_s18 = smov 0  }
   0x4 LB: > { %s25_s19 = sadd.s32 1, %s1492_s16  ;;  %s28_s20 = sadd.s32 1, %s1496_s17  ;;  %s1500_s18 = sphi %s1535_s18, %s13_s18   ;;  %s1496_s17 = sphi %s1533_s17, %s1843_s17   ;;  %s1492_s16 = sphi %s1531_s16, %s1842_s16   ;;  %s1488_s15 = sphi %s1529_s15, %s1841_s15   ;;  %s1484_s14 = sphi %s1527_s14, %s1840_s14   ;;  %s1480_s13 = sphi %s1525_s13, %s1839_s13   ;;  %s1476_s12 = sphi %s1523_s12, %s1838_s12  }
   0x5   : > { %p26_p0 = scmp.ge.s32.totalorder %s25_s19, 2  ;;  %p76_p1 = scmp.ne.s32.totalorder %s1480_s13, %s1476_s12 }
   0x6   : > { %p77_p2 = scmp.eq.s32.totalorder %s1500_s18, 0  ;;  %s69_s24 = sadd.s32 1, %s1480_s13 }
   0x7   : > { %s1845_s19 = smov (%p26_p0, %s25_s19), 0  ;;  %s1847_s20 = smov (!%p26_p0, %s28_s20), %s1496_s17 }
   0x8   : > { %p78_p3 = por %p77_p2, %p76_p1  ;;  %p30_p4 = scmp.ge.s32.totalorder %s1847_s20, 4 }
   0x9   : > { %s64_s21 = ssub.s32 %s1492_s16, %s1845_s19  ;;  %p1201_p6 = scmp.ge.s32.totalorder %s1500_s18, 8 }
   0xa   : > { %s1849_s20 = smov (%p30_p4, %s1847_s20), 0 }
   0xb   : > { %s65_s22 = ssub.s32 %s1496_s17, %s1849_s20  ;;  %156 = sbr.rel (%p1201_p6) target bundleno = 89 (0x59), region = 16 }
   0xc   : > { %s66_s23 = sor.u32 %s65_s22, %s64_s21 }
   0xd   : > { %p67_p5 = scmp.eq.s32.totalorder %s66_s23, 0 }
   0xf   : > { %s1574_s25 = scalar_select %p67_p5, %s1480_s13, %s69_s24  }
  0x12   : > { %172 = sbr.rel (!%p78_p3) target bundleno = 89 (0x59), region = 24  ;;  %s174_s26 = sand.u32 (%p78_p3), 1, %s1480_s13  }
  0x13   : > { %s1204_s27 = sshll.u32 (%p78_p3), %s1496_s17, 1  ;;  %s1202_s28 = sshll.u32 (%p78_p3), %s174_s26, 9 }
  0x14   : > { %s1287_s29 = sshll.u32 (%p78_p3), %s1492_s16, 9  ;;  %s1588_s8 = scalar_lea.vmem (%p78_p3), [#allocation3], %s1202_s28 }
  0x15   : > { %s180_s30 = sadd.s32 (%p78_p3), %s1287_s29, %s1204_s27 }
  0x16   : > { %s1206_s4 = sshll.u32 (%p78_p3), %s180_s30, 2 }
  0x17   : > { %s1583_s7 = scalar_lea.vmem (%p78_p3), %s1835_s1, %s1206_s4 }
  0x18   : > { %v336_v0 = vld [vmem:[%s1583_s7] sm:$0xff] (%p78_p3) }
  0x19   : > { %v338_v1 = vld [vmem:[%s1583_s7 + $0x20] sm:$0xff]  ;;  %337 = vst [vmem:[%s1588_s8] sm:$0xff] %v336_v0 }
  0x1a   : > { %v340_v2 = vld [vmem:[%s1583_s7 + $0x40] sm:$0xff]  ;;  %339 = vst [vmem:[%s1588_s8 + $0x8] sm:$0xff] %v338_v1 }
  0x1b   : > { %341 = vst [vmem:[%s1588_s8 + $0x10] sm:$0xff] %v340_v2  ;;  %v342_v3 = vld [vmem:[%s1583_s7 + $0x60] sm:$0xff] }
  0x1c   : > { %v344_v4 = vld [vmem:[%s1583_s7 + $0x80] sm:$0xff]  ;;  %343 = vst [vmem:[%s1588_s8 + $0x18] sm:$0xff] %v342_v3 }
  0x1d   : > { %v346_v5 = vld [vmem:[%s1583_s7 + $0xa0] sm:$0xff]  ;;  %345 = vst [vmem:[%s1588_s8 + $0x20] sm:$0xff] %v344_v4 }
  0x1e   : > { %347 = vst [vmem:[%s1588_s8 + $0x28] sm:$0xff] %v346_v5  ;;  %v348_v6 = vld [vmem:[%s1583_s7 + $0xc0] sm:$0xff] }
  0x1f   : > { %v350_v7 = vld [vmem:[%s1583_s7 + $0xe0] sm:$0xff]  ;;  %349 = vst [vmem:[%s1588_s8 + $0x30] sm:$0xff] %v348_v6 }
  0x20   : > { %v352_v8 = vld [vmem:[%s1583_s7 + $0x100] sm:$0xff]  ;;  %351 = vst [vmem:[%s1588_s8 + $0x38] sm:$0xff] %v350_v7 }
  0x21   : > { %353 = vst [vmem:[%s1588_s8 + $0x40] sm:$0xff] %v352_v8  ;;  %v354_v9 = vld [vmem:[%s1583_s7 + $0x120] sm:$0xff] }
  0x22   : > { %v356_v10 = vld [vmem:[%s1583_s7 + $0x140] sm:$0xff]  ;;  %355 = vst [vmem:[%s1588_s8 + $0x48] sm:$0xff] %v354_v9 }
  0x23   : > { %v358_v11 = vld [vmem:[%s1583_s7 + $0x160] sm:$0xff]  ;;  %357 = vst [vmem:[%s1588_s8 + $0x50] sm:$0xff] %v356_v10 }
  0x24   : > { %359 = vst [vmem:[%s1588_s8 + $0x58] sm:$0xff] %v358_v11  ;;  %v360_v12 = vld [vmem:[%s1583_s7 + $0x180] sm:$0xff] }
  0x25   : > { %v362_v13 = vld [vmem:[%s1583_s7 + $0x1a0] sm:$0xff]  ;;  %361 = vst [vmem:[%s1588_s8 + $0x60] sm:$0xff] %v360_v12 }
  0x26   : > { %v364_v14 = vld [vmem:[%s1583_s7 + $0x1c0] sm:$0xff]  ;;  %363 = vst [vmem:[%s1588_s8 + $0x68] sm:$0xff] %v362_v13 }
  0x27   : > { %365 = vst [vmem:[%s1588_s8 + $0x70] sm:$0xff] %v364_v14  ;;  %v366_v15 = vld [vmem:[%s1583_s7 + $0x1e0] sm:$0xff] }
  0x28   : > { %v368_v16 = vld [vmem:[%s1583_s7 + $0x200] sm:$0xff]  ;;  %367 = vst [vmem:[%s1588_s8 + $0x78] sm:$0xff] %v366_v15 }
  0x29   : > { %v370_v17 = vld [vmem:[%s1583_s7 + $0x220] sm:$0xff]  ;;  %369 = vst [vmem:[%s1588_s8 + $0x80] sm:$0xff] %v368_v16 }
  0x2a   : > { %371 = vst [vmem:[%s1588_s8 + $0x88] sm:$0xff] %v370_v17  ;;  %v372_v18 = vld [vmem:[%s1583_s7 + $0x240] sm:$0xff] }
  0x2b   : > { %v374_v19 = vld [vmem:[%s1583_s7 + $0x260] sm:$0xff]  ;;  %373 = vst [vmem:[%s1588_s8 + $0x90] sm:$0xff] %v372_v18 }
  0x2c   : > { %v376_v20 = vld [vmem:[%s1583_s7 + $0x280] sm:$0xff]  ;;  %375 = vst [vmem:[%s1588_s8 + $0x98] sm:$0xff] %v374_v19 }
  0x2d   : > { %377 = vst [vmem:[%s1588_s8 + $0xa0] sm:$0xff] %v376_v20  ;;  %v378_v21 = vld [vmem:[%s1583_s7 + $0x2a0] sm:$0xff] }
  0x2e   : > { %v380_v22 = vld [vmem:[%s1583_s7 + $0x2c0] sm:$0xff]  ;;  %379 = vst [vmem:[%s1588_s8 + $0xa8] sm:$0xff] %v378_v21 }
  0x2f   : > { %v382_v23 = vld [vmem:[%s1583_s7 + $0x2e0] sm:$0xff]  ;;  %381 = vst [vmem:[%s1588_s8 + $0xb0] sm:$0xff] %v380_v22 }
  0x30   : > { %383 = vst [vmem:[%s1588_s8 + $0xb8] sm:$0xff] %v382_v23  ;;  %v384_v24 = vld [vmem:[%s1583_s7 + $0x300] sm:$0xff] }
  0x31   : > { %v386_v25 = vld [vmem:[%s1583_s7 + $0x320] sm:$0xff]  ;;  %385 = vst [vmem:[%s1588_s8 + $0xc0] sm:$0xff] %v384_v24 }
  0x32   : > { %v388_v26 = vld [vmem:[%s1583_s7 + $0x340] sm:$0xff]  ;;  %387 = vst [vmem:[%s1588_s8 + $0xc8] sm:$0xff] %v386_v25 }
  0x33   : > { %389 = vst [vmem:[%s1588_s8 + $0xd0] sm:$0xff] %v388_v26  ;;  %v390_v27 = vld [vmem:[%s1583_s7 + $0x360] sm:$0xff] }
  0x34   : > { %v392_v28 = vld [vmem:[%s1583_s7 + $0x380] sm:$0xff]  ;;  %391 = vst [vmem:[%s1588_s8 + $0xd8] sm:$0xff] %v390_v27 }
  0x35   : > { %v394_v29 = vld [vmem:[%s1583_s7 + $0x3a0] sm:$0xff]  ;;  %393 = vst [vmem:[%s1588_s8 + $0xe0] sm:$0xff] %v392_v28 }
  0x36   : > { %395 = vst [vmem:[%s1588_s8 + $0xe8] sm:$0xff] %v394_v29  ;;  %v396_v30 = vld [vmem:[%s1583_s7 + $0x3c0] sm:$0xff] }
  0x37   : > { %v398_v31 = vld [vmem:[%s1583_s7 + $0x3e0] sm:$0xff]  ;;  %397 = vst [vmem:[%s1588_s8 + $0xf0] sm:$0xff] %v396_v30 }
  0x38   : > { %v400_v32 = vld [vmem:[%s1583_s7 + $0x400] sm:$0xff]  ;;  %399 = vst [vmem:[%s1588_s8 + $0xf8] sm:$0xff] %v398_v31 }
  0x39   : > { %401 = vst [vmem:[%s1588_s8 + $0x100] sm:$0xff] %v400_v32  ;;  %v402_v33 = vld [vmem:[%s1583_s7 + $0x420] sm:$0xff] }
  0x3a   : > { %v404_v34 = vld [vmem:[%s1583_s7 + $0x440] sm:$0xff]  ;;  %403 = vst [vmem:[%s1588_s8 + $0x108] sm:$0xff] %v402_v33 }
  0x3b   : > { %v406_v35 = vld [vmem:[%s1583_s7 + $0x460] sm:$0xff]  ;;  %405 = vst [vmem:[%s1588_s8 + $0x110] sm:$0xff] %v404_v34 }
  0x3c   : > { %407 = vst [vmem:[%s1588_s8 + $0x118] sm:$0xff] %v406_v35  ;;  %v408_v36 = vld [vmem:[%s1583_s7 + $0x480] sm:$0xff] }
  0x3d   : > { %v410_v37 = vld [vmem:[%s1583_s7 + $0x4a0] sm:$0xff]  ;;  %409 = vst [vmem:[%s1588_s8 + $0x120] sm:$0xff] %v408_v36 }
  0x3e   : > { %v412_v38 = vld [vmem:[%s1583_s7 + $0x4c0] sm:$0xff]  ;;  %411 = vst [vmem:[%s1588_s8 + $0x128] sm:$0xff] %v410_v37 }
  0x3f   : > { %413 = vst [vmem:[%s1588_s8 + $0x130] sm:$0xff] %v412_v38  ;;  %v414_v39 = vld [vmem:[%s1583_s7 + $0x4e0] sm:$0xff] }
  0x40   : > { %v416_v40 = vld [vmem:[%s1583_s7 + $0x500] sm:$0xff]  ;;  %415 = vst [vmem:[%s1588_s8 + $0x138] sm:$0xff] %v414_v39 }
  0x41   : > { %v418_v41 = vld [vmem:[%s1583_s7 + $0x520] sm:$0xff]  ;;  %417 = vst [vmem:[%s1588_s8 + $0x140] sm:$0xff] %v416_v40 }
  0x42   : > { %419 = vst [vmem:[%s1588_s8 + $0x148] sm:$0xff] %v418_v41  ;;  %v420_v42 = vld [vmem:[%s1583_s7 + $0x540] sm:$0xff] }
  0x43   : > { %v422_v43 = vld [vmem:[%s1583_s7 + $0x560] sm:$0xff]  ;;  %421 = vst [vmem:[%s1588_s8 + $0x150] sm:$0xff] %v420_v42 }
  0x44   : > { %v424_v44 = vld [vmem:[%s1583_s7 + $0x580] sm:$0xff]  ;;  %423 = vst [vmem:[%s1588_s8 + $0x158] sm:$0xff] %v422_v43 }
  0x45   : > { %425 = vst [vmem:[%s1588_s8 + $0x160] sm:$0xff] %v424_v44  ;;  %v426_v45 = vld [vmem:[%s1583_s7 + $0x5a0] sm:$0xff] }
  0x46   : > { %v428_v46 = vld [vmem:[%s1583_s7 + $0x5c0] sm:$0xff]  ;;  %427 = vst [vmem:[%s1588_s8 + $0x168] sm:$0xff] %v426_v45 }
  0x47   : > { %v430_v47 = vld [vmem:[%s1583_s7 + $0x5e0] sm:$0xff]  ;;  %429 = vst [vmem:[%s1588_s8 + $0x170] sm:$0xff] %v428_v46 }
  0x48   : > { %431 = vst [vmem:[%s1588_s8 + $0x178] sm:$0xff] %v430_v47  ;;  %v432_v48 = vld [vmem:[%s1583_s7 + $0x600] sm:$0xff] }
  0x49   : > { %v434_v49 = vld [vmem:[%s1583_s7 + $0x620] sm:$0xff]  ;;  %433 = vst [vmem:[%s1588_s8 + $0x180] sm:$0xff] %v432_v48 }
  0x4a   : > { %v436_v50 = vld [vmem:[%s1583_s7 + $0x640] sm:$0xff]  ;;  %435 = vst [vmem:[%s1588_s8 + $0x188] sm:$0xff] %v434_v49 }
  0x4b   : > { %437 = vst [vmem:[%s1588_s8 + $0x190] sm:$0xff] %v436_v50  ;;  %v438_v51 = vld [vmem:[%s1583_s7 + $0x660] sm:$0xff] }
  0x4c   : > { %v440_v52 = vld [vmem:[%s1583_s7 + $0x680] sm:$0xff]  ;;  %439 = vst [vmem:[%s1588_s8 + $0x198] sm:$0xff] %v438_v51 }
  0x4d   : > { %v442_v53 = vld [vmem:[%s1583_s7 + $0x6a0] sm:$0xff]  ;;  %441 = vst [vmem:[%s1588_s8 + $0x1a0] sm:$0xff] %v440_v52 }
  0x4e   : > { %443 = vst [vmem:[%s1588_s8 + $0x1a8] sm:$0xff] %v442_v53  ;;  %v444_v54 = vld [vmem:[%s1583_s7 + $0x6c0] sm:$0xff] }
  0x4f   : > { %v446_v55 = vld [vmem:[%s1583_s7 + $0x6e0] sm:$0xff]  ;;  %445 = vst [vmem:[%s1588_s8 + $0x1b0] sm:$0xff] %v444_v54 }
  0x50   : > { %v448_v56 = vld [vmem:[%s1583_s7 + $0x700] sm:$0xff]  ;;  %447 = vst [vmem:[%s1588_s8 + $0x1b8] sm:$0xff] %v446_v55 }
  0x51   : > { %449 = vst [vmem:[%s1588_s8 + $0x1c0] sm:$0xff] %v448_v56  ;;  %v450_v57 = vld [vmem:[%s1583_s7 + $0x720] sm:$0xff] }
  0x52   : > { %v452_v58 = vld [vmem:[%s1583_s7 + $0x740] sm:$0xff]  ;;  %451 = vst [vmem:[%s1588_s8 + $0x1c8] sm:$0xff] %v450_v57 }
  0x53   : > { %v454_v59 = vld [vmem:[%s1583_s7 + $0x760] sm:$0xff]  ;;  %453 = vst [vmem:[%s1588_s8 + $0x1d0] sm:$0xff] %v452_v58 }
  0x54   : > { %455 = vst [vmem:[%s1588_s8 + $0x1d8] sm:$0xff] %v454_v59  ;;  %v456_v60 = vld [vmem:[%s1583_s7 + $0x780] sm:$0xff] }
  0x55   : > { %v458_v61 = vld [vmem:[%s1583_s7 + $0x7a0] sm:$0xff]  ;;  %457 = vst [vmem:[%s1588_s8 + $0x1e0] sm:$0xff] %v456_v60 }
  0x56   : > { %v460_v62 = vld [vmem:[%s1583_s7 + $0x7c0] sm:$0xff]  ;;  %459 = vst [vmem:[%s1588_s8 + $0x1e8] sm:$0xff] %v458_v61 }
  0x57   : > { %461 = vst [vmem:[%s1588_s8 + $0x1f0] sm:$0xff] %v460_v62  ;;  %v462_v63 = vld [vmem:[%s1583_s7 + $0x7e0] sm:$0xff] }
  0x58   : > { %463 = vst [vmem:[%s1588_s8 + $0x1f8] sm:$0xff] %v462_v63 }
  0x59 PF: > { %p1207_p7 = scmp.ge.s32.totalorder %s1500_s18, 1  ;;  %p476_p8 = scmp.lt.s32.totalorder %s1500_s18, 9 }
  0x5b   : > { %p477_p9 = pnand %p1207_p7, %p476_p8 }
  0x5c   : > { %s483_s9 = sand.u32 (!%p477_p9), 1, %s1476_s12   ;;  %s1209_s10 = sshll.u32 (!%p477_p9), %s1484_s14, 2 }
  0x5d   : > { %480 = sbr.rel (%p477_p9) target bundleno = 408 (0x198), region = 66  ;;  %s1208_s11 = sshll.u32 (!%p477_p9), %s483_s9, 9 }
  0x5e   : > { %p526_p10 = scmp.lt.s32.totalorder (!%p477_p9), %s1209_s10, 7  ;;  %s1211_s21 = sshll.u32 (!%p477_p9), %s1488_s15, 1 }
  0x5f   : > { %p536_p11 = scmp.lt.s32.totalorder (!%p477_p9), %s1211_s21, 7  ;;  %s1737_s5 = scalar_lea.vmem (!%p477_p9), [#allocation3], %s1208_s11 }
  0x60   : > { %p1214_p12 = scmp.ne.s32.totalorder (!%p477_p9), %s1484_s14, 0 }
  0x64   : > { %s1851_s10 = smov (!%p526_p10, %s1209_s10), 7  ;;  %s1853_s21 = smov (!%p536_p11, %s1211_s21), 7 }
  0x65   : > { %s1210_s22 = sshll.u32 %s1851_s10, 2  ;;  %s538_s12 = scalar_lea.vmem %s1836_s2, %s1853_s21  ;;  %v1502_v0 = vmov (!%p1214_p12), 0.0  }
  0x66   : > { %s1723_s26 = scalar_lea.vmem %s1834_s0, %s1210_s22  ;;  %s1213_s29 = sshll.u32 %s1853_s21, 2  ;;  %554 = vst [vmem:[#allocation2] sm:$0xff] (!%p1214_p12), %v1502_v0  ;;  %555 = vst [vmem:[#allocation2 + $0x8] sm:$0xff] (!%p1214_p12), %v1502_v0 }
  0x67   : > { %s1735_s15 = scalar_lea.vmem %s1837_s3, %s1213_s29  ;;  %553 = sbr.rel (%p1214_p12) target bundleno = 110 (0x6e), region = 74 }
  0x6e PF: > { %v1346_v1 = vld [vmem:[%s1737_s5 + $0x4] ss:$8 sps:$4 sm:$0xff]   ;;  %v1350_v3 = vld [vmem:[%s1737_s5] ss:$8 sps:$4 sm:$0xff]   ;;  %v1352_v5 = vld [vmem:[%s1737_s5 + $0x14] ss:$8 sps:$4 sm:$0xff]  }
  0x6f   : > { %v1348_v2 = vld [vmem:[%s1737_s5 + $0x104] ss:$8 sps:$4 sm:$0xff]   ;;  %958 = vmatprep.subr.bf16.mxu0 %v1346_v1  ;;  %v1351_v4 = vld [vmem:[%s1737_s5 + $0x100] ss:$8 sps:$4 sm:$0xff]   ;;  %v1354_v6 = vld [vmem:[%s1737_s5 + $0x114] ss:$8 sps:$4 sm:$0xff]  }
  0x70   : > { %999 = vmatprep.subr.bf16.mxu1 %v1348_v2  ;;  %959 = vmatpush1.bf16.msra.mxu0 %v1350_v3  ;;  %v1356_v7 = vld [vmem:[%s1737_s5 + $0x10] ss:$8 sps:$4 sm:$0xff]   ;;  %v1358_v9 = vld [vmem:[%s1737_s5 + $0x24] ss:$8 sps:$4 sm:$0xff]   ;;  %v1362_v11 = vld [vmem:[%s1737_s5 + $0x20] ss:$8 sps:$4 sm:$0xff]  }
  0x71   : > { %1000 = vmatpush1.bf16.msra.mxu1 %v1351_v4  ;;  %960 = vmatprep.subr.bf16.mxu0 %v1352_v5  ;;  %v1357_v8 = vld [vmem:[%s1737_s5 + $0x110] ss:$8 sps:$4 sm:$0xff]   ;;  %v1360_v10 = vld [vmem:[%s1737_s5 + $0x124] ss:$8 sps:$4 sm:$0xff]   ;;  %v1363_v12 = vld [vmem:[%s1737_s5 + $0x120] ss:$8 sps:$4 sm:$0xff]  }
  0x72   : > { %1001 = vmatprep.subr.bf16.mxu1 %v1354_v6  ;;  %v1364_v13 = vld [vmem:[%s1737_s5 + $0x34] ss:$8 sps:$4 sm:$0xff]   ;;  %v1368_v15 = vld [vmem:[%s1737_s5 + $0x30] ss:$8 sps:$4 sm:$0xff]   ;;  %v1370_v17 = vld [vmem:[%s1737_s5 + $0x44] ss:$8 sps:$4 sm:$0xff]  }
  0x73   : > { %v1366_v14 = vld [vmem:[%s1737_s5 + $0x134] ss:$8 sps:$4 sm:$0xff]   ;;  %v1369_v16 = vld [vmem:[%s1737_s5 + $0x130] ss:$8 sps:$4 sm:$0xff]   ;;  %v1372_v18 = vld [vmem:[%s1737_s5 + $0x144] ss:$8 sps:$4 sm:$0xff]  }
  0x74   : > { %961 = vmatpush1.bf16.msra.mxu0 %v1356_v7  ;;  %v1374_v19 = vld [vmem:[%s1737_s5 + $0x40] ss:$8 sps:$4 sm:$0xff]   ;;  %v1376_v21 = vld [vmem:[%s1737_s5 + $0x54] ss:$8 sps:$4 sm:$0xff]   ;;  %v1380_v23 = vld [vmem:[%s1737_s5 + $0x50] ss:$8 sps:$4 sm:$0xff]  }
  0x75   : > { %1002 = vmatpush1.bf16.msra.mxu1 %v1357_v8  ;;  %962 = vmatprep.subr.bf16.mxu0 %v1358_v9  ;;  %v1375_v20 = vld [vmem:[%s1737_s5 + $0x140] ss:$8 sps:$4 sm:$0xff]   ;;  %v1378_v22 = vld [vmem:[%s1737_s5 + $0x154] ss:$8 sps:$4 sm:$0xff]   ;;  %v1381_v24 = vld [vmem:[%s1737_s5 + $0x150] ss:$8 sps:$4 sm:$0xff]  }
  0x76   : > { %1003 = vmatprep.subr.bf16.mxu1 %v1360_v10  ;;  %v1382_v25 = vld [vmem:[%s1737_s5 + $0x64] ss:$8 sps:$4 sm:$0xff]   ;;  %v1386_v27 = vld [vmem:[%s1737_s5 + $0x60] ss:$8 sps:$4 sm:$0xff]   ;;  %v1388_v29 = vld [vmem:[%s1737_s5 + $0x74] ss:$8 sps:$4 sm:$0xff]  }
  0x77   : > { %v1384_v26 = vld [vmem:[%s1737_s5 + $0x164] ss:$8 sps:$4 sm:$0xff]   ;;  %v1387_v28 = vld [vmem:[%s1737_s5 + $0x160] ss:$8 sps:$4 sm:$0xff]   ;;  %v1390_v30 = vld [vmem:[%s1737_s5 + $0x174] ss:$8 sps:$4 sm:$0xff]  }
  0x78   : > { %963 = vmatpush1.bf16.msra.mxu0 %v1362_v11  ;;  %v1392_v31 = vld [vmem:[%s1737_s5 + $0x70] ss:$8 sps:$4 sm:$0xff]   ;;  %v1394_v33 = vld [vmem:[%s1737_s5 + $0x84] ss:$8 sps:$4 sm:$0xff]   ;;  %v1398_v35 = vld [vmem:[%s1737_s5 + $0x80] ss:$8 sps:$4 sm:$0xff]  }
  0x79   : > { %1004 = vmatpush1.bf16.msra.mxu1 %v1363_v12  ;;  %964 = vmatprep.subr.bf16.mxu0 %v1364_v13  ;;  %v1393_v32 = vld [vmem:[%s1737_s5 + $0x170] ss:$8 sps:$4 sm:$0xff]   ;;  %v1396_v34 = vld [vmem:[%s1737_s5 + $0x184] ss:$8 sps:$4 sm:$0xff]   ;;  %v1399_v36 = vld [vmem:[%s1737_s5 + $0x180] ss:$8 sps:$4 sm:$0xff]  }
  0x7a   : > { %1005 = vmatprep.subr.bf16.mxu1 %v1366_v14  ;;  %v1400_v37 = vld [vmem:[%s1737_s5 + $0x94] ss:$8 sps:$4 sm:$0xff]   ;;  %v1404_v39 = vld [vmem:[%s1737_s5 + $0x90] ss:$8 sps:$4 sm:$0xff]   ;;  %v1406_v41 = vld [vmem:[%s1737_s5 + $0xa4] ss:$8 sps:$4 sm:$0xff]  }
  0x7b   : > { %v1402_v38 = vld [vmem:[%s1737_s5 + $0x194] ss:$8 sps:$4 sm:$0xff]   ;;  %v1405_v40 = vld [vmem:[%s1737_s5 + $0x190] ss:$8 sps:$4 sm:$0xff]   ;;  %v1408_v42 = vld [vmem:[%s1737_s5 + $0x1a4] ss:$8 sps:$4 sm:$0xff]  }
  0x7c   : > { %965 = vmatpush1.bf16.msra.mxu0 %v1368_v15  ;;  %v1410_v43 = vld [vmem:[%s1737_s5 + $0xa0] ss:$8 sps:$4 sm:$0xff]   ;;  %v1412_v45 = vld [vmem:[%s1737_s5 + $0xb4] ss:$8 sps:$4 sm:$0xff]   ;;  %v1416_v50 = vld [vmem:[%s1737_s5 + $0xb0] ss:$8 sps:$4 sm:$0xff]  }
  0x7d   : > { %1006 = vmatpush1.bf16.msra.mxu1 %v1369_v16  ;;  %966 = vmatprep.subr.bf16.mxu0 %v1370_v17  ;;  %v1411_v44 = vld [vmem:[%s1737_s5 + $0x1a0] ss:$8 sps:$4 sm:$0xff]   ;;  %v1414_v46 = vld [vmem:[%s1737_s5 + $0x1b4] ss:$8 sps:$4 sm:$0xff]   ;;  %v1417_v51 = vld [vmem:[%s1737_s5 + $0x1b0] ss:$8 sps:$4 sm:$0xff]  }
  0x7e   : > { %1007 = vmatprep.subr.bf16.mxu1 %v1372_v18  ;;  %v558_v47 = vld [vmem:[%s1723_s26] sm:$0xff]  ;;  %v559_v49 = vld [vmem:[%s1723_s26 + $0x8] sm:$0xff]  ;;  %v1418_v53 = vld [vmem:[%s1737_s5 + $0xc4] ss:$8 sps:$4 sm:$0xff]   ;;  %p1283_p13 = scmp.ne.s32.totalorder %s1484_s14, 1 }
  0x7f   : > { %v1216_v48 = vcombine.high %v558_v47, %v558_v47  ;;  %v1218_v52 = vcombine.high %v559_v49, %v559_v49  ;;  %v1420_v54 = vld [vmem:[%s1737_s5 + $0x1c4] ss:$8 sps:$4 sm:$0xff]   ;;  %v1422_v55 = vld [vmem:[%s1737_s5 + $0xc0] ss:$8 sps:$4 sm:$0xff]   ;;  %v1424_v57 = vld [vmem:[%s1737_s5 + $0xd4] ss:$8 sps:$4 sm:$0xff]   ;;  %v1215_v5 = vcombine.low %v558_v47, %v558_v47  ;;  %v1217_v6 = vcombine.low %v559_v49, %v559_v49 }
  0x80   : > { %967 = vmatpush1.bf16.msra.mxu0 %v1374_v19  ;;  %v1423_v56 = vld [vmem:[%s1737_s5 + $0x1c0] ss:$8 sps:$4 sm:$0xff]   ;;  %v1426_v58 = vld [vmem:[%s1737_s5 + $0x1d4] ss:$8 sps:$4 sm:$0xff]   ;;  %v1428_v59 = vld [vmem:[%s1737_s5 + $0xd0] ss:$8 sps:$4 sm:$0xff]  }
  0x81   : > { %1008 = vmatpush1.bf16.msra.mxu1 %v1375_v20  ;;  %968 = vmatprep.subr.bf16.mxu0 %v1376_v21  ;;  %v1429_v60 = vld [vmem:[%s1737_s5 + $0x1d0] ss:$8 sps:$4 sm:$0xff]   ;;  %v1430_v61 = vld [vmem:[%s1737_s5 + $0xe4] ss:$8 sps:$4 sm:$0xff]   ;;  %v1434_v63 = vld [vmem:[%s1737_s5 + $0xe0] ss:$8 sps:$4 sm:$0xff]   ;;  %v1052_v21 = vlaneseq (!%p1283_p13) }
  0x82   : > { %1009 = vmatprep.subr.bf16.mxu1 %v1378_v22  ;;  %990 = vmatprep.mubr.bf16.mxu0 %v1216_v48  ;;  %v1432_v62 = vld [vmem:[%s1737_s5 + $0x1e4] ss:$8 sps:$4 sm:$0xff]   ;;  %v1435_v0 = vld [vmem:[%s1737_s5 + $0x1e0] ss:$8 sps:$4 sm:$0xff]   ;;  %v1436_v1 = vld [vmem:[%s1737_s5 + $0xf4] ss:$8 sps:$4 sm:$0xff]  }
  0x83   : > { %1031 = vmatprep.mubr.bf16.mxu1 %v1218_v52  ;;  %v1438_v2 = vld [vmem:[%s1737_s5 + $0x1f4] ss:$8 sps:$4 sm:$0xff]   ;;  %v1440_v3 = vld [vmem:[%s1737_s5 + $0xf0] ss:$8 sps:$4 sm:$0xff]   ;;  %v1053_v22 = vshrl.u32 (!%p1283_p13), %v1052_v21, 7 }
  0x84   : > { %969 = vmatpush1.bf16.msra.mxu0 %v1380_v23  ;;  %v1441_v4 = vld [vmem:[%s1737_s5 + $0x1f0] ss:$8 sps:$4 sm:$0xff]  }
  0x85   : > { %1010 = vmatpush1.bf16.msra.mxu1 %v1381_v24  ;;  %970 = vmatprep.subr.bf16.mxu0 %v1382_v25  ;;  %v556_v8 = vld [vmem:[#allocation2] sm:$0xff]  ;;  %v557_v12 = vld [vmem:[#allocation2 + $0x8] sm:$0xff]  ;;  %v1054_v24 = vsub.s32 (!%p1283_p13), 0, %v1053_v22  ;;  %v1058_v25 = vsub.s32 (!%p1283_p13), 1, %v1053_v22 }
  0x86   : > { %1011 = vmatprep.subr.bf16.mxu1 %v1384_v26  ;;  %v1050_v23 = vld [vmem:[%s538_s12] sm:$0x3] (!%p1283_p13) }
  0x88   : > { %971 = vmatpush1.bf16.msra.mxu0 %v1386_v27 }
  0x89   : > { %1012 = vmatpush1.bf16.msra.mxu1 %v1387_v28  ;;  %972 = vmatprep.subr.bf16.mxu0 %v1388_v29  ;;  %v1055_v28 = vrot.slane (!%p1283_p13), %v1050_v23, %v1054_v24  ;;  %v1059_v29 = vrot.slane (!%p1283_p13), %v1050_v23, %v1058_v25 }
  0x8a   : > { %1013 = vmatprep.subr.bf16.mxu1 %v1390_v30 }
  0x8c   : > { %973 = vmatpush1.bf16.msra.mxu0 %v1392_v31 }
  0x8d   : > { %1014 = vmatpush1.bf16.msra.mxu1 %v1393_v32  ;;  %974 = vmatprep.subr.bf16.mxu0 %v1394_v33 }
  0x8e   : > { %1015 = vmatprep.subr.bf16.mxu1 %v1396_v34 }
  0x90   : > { %975 = vmatpush1.bf16.msra.mxu0 %v1398_v35 }
  0x91   : > { %1016 = vmatpush1.bf16.msra.mxu1 %v1399_v36  ;;  %976 = vmatprep.subr.bf16.mxu0 %v1400_v37 }
  0x92   : > { %1017 = vmatprep.subr.bf16.mxu1 %v1402_v38 }
  0x94   : > { %977 = vmatpush1.bf16.msra.mxu0 %v1404_v39 }
  0x95   : > { %1018 = vmatpush1.bf16.msra.mxu1 %v1405_v40  ;;  %978 = vmatprep.subr.bf16.mxu0 %v1406_v41 }
  0x96   : > { %1019 = vmatprep.subr.bf16.mxu1 %v1408_v42 }
  0x98   : > { %979 = vmatpush1.bf16.msra.mxu0 %v1410_v43 }
  0x99   : > { %1020 = vmatpush1.bf16.msra.mxu1 %v1411_v44  ;;  %980 = vmatprep.subr.bf16.mxu0 %v1412_v45 }
  0x9a   : > { %1021 = vmatprep.subr.bf16.mxu1 %v1414_v46 }
  0x9c   : > { %981 = vmatpush1.bf16.msra.mxu0 %v1416_v50 }
  0x9d   : > { %1022 = vmatpush1.bf16.msra.mxu1 %v1417_v51  ;;  %982 = vmatprep.subr.bf16.mxu0 %v1418_v53 }
  0x9e   : > { %1023 = vmatprep.subr.bf16.mxu1 %v1420_v54 }
  0xa0   : > { %983 = vmatpush1.bf16.msra.mxu0 %v1422_v55 }
  0xa1   : > { %1024 = vmatpush1.bf16.msra.mxu1 %v1423_v56  ;;  %984 = vmatprep.subr.bf16.mxu0 %v1424_v57 }
  0xa2   : > { %1025 = vmatprep.subr.bf16.mxu1 %v1426_v58 }
  0xa4   : > { %985 = vmatpush1.bf16.msra.mxu0 %v1428_v59 }
  0xa5   : > { %1026 = vmatpush1.bf16.msra.mxu1 %v1429_v60  ;;  %986 = vmatprep.subr.bf16.mxu0 %v1430_v61 }
  0xa6   : > { %1027 = vmatprep.subr.bf16.mxu1 %v1432_v62 }
  0xa8   : > { %987 = vmatpush1.bf16.msra.mxu0 %v1434_v63 }
  0xa9   : > { %1028 = vmatpush1.bf16.msra.mxu1 %v1435_v0  ;;  %988 = vmatprep.subr.bf16.mxu0 %v1436_v1 }
  0xaa   : > { %1029 = vmatprep.subr.bf16.mxu1 %v1438_v2 }
  0xac   : > { %989 = vmatpush1.bf16.msra.mxu0 %v1440_v3 }
  0xad   : > { %1030 = vmatpush1.bf16.msra.mxu1 %v1441_v4 }
  0xaf   : > { %991 = vmatmul.mubr.bf16.vlgmr.msra.gmra.mrb[0].mxu0 %v1215_v5 }
  0xb0   : > { %1032 = vmatmul.mubr.bf16.vlgmr.msra.gmra.mrb[0].mxu1 %v1217_v6 }
 0x182   : > { %v992_v7 = vpop.f32.mrb[0].mxu0 }
 0x183   : > { %v1033_v9 = vpop.f32.mrb[0].mxu1  ;;  %v994_v11 = vpop.f32.mrb[1].mxu0  ;;  %1047 = sbr.rel (%p1283_p13) target bundleno = 408 (0x198), region = 78 }
 0x184   : > { %v1034_v10 = vadd.f32 %v1033_v9, %v992_v7  ;;  %v1035_v13 = vpop.f32.mrb[1].mxu1  ;;  %v996_v15 = vpop.f32.mrb[2].mxu0 }
 0x185   : > { %v1036_v14 = vadd.f32 %v1035_v13, %v994_v11  ;;  %v1037_v16 = vpop.f32.mrb[2].mxu1  ;;  %v997_v18 = vpop.f32.mrb[3].mxu0 }
 0x186   : > { %v1040_v17 = vadd.f32 %v1034_v10, %v556_v8  ;;  %v1038_v19 = vpop.f32.mrb[3].mxu1 }
 0x187   : > { %v1041_v20 = vadd.f32 %v1036_v14, %v557_v12 }
 0x188   : > { %1042 = vst [vmem:[#allocation2] sm:$0xff] %v1040_v17 }
 0x189   : > { %1043 = vst [vmem:[#allocation2 + $0x8] sm:$0xff] %v1041_v20 }
 0x18f   : > { %v1048_v26 = vld [vmem:[#allocation2] sm:$0xff] }
 0x190   : > { %v1049_v27 = vld [vmem:[#allocation2 + $0x8] sm:$0xff]  ;;  %v1062_v30 = vadd.f32 %v1055_v28, %v1048_v26 }
 0x191   : > { %v1063_v31 = vadd.f32 %v1059_v29, %v1049_v27 }
 0x192   : > { %v1064_v32 = vmax.f32 %v1062_v30, 0.0 }
 0x193   : > { %v1065_v33 = vmax.f32 %v1063_v31, 0.0 }
 0x195   : > { %v1288_v34 = vpack.c.bf16 %v1065_v33, %v1064_v32 }
 0x197   : > { %1074 = vst [vmem:[%s1735_s15] sm:$0xff] %v1288_v34 }
 0x198 PF: > { %s13_s18 = sadd.s32 1, %s1500_s18   ;;  %s1838_s12 = smov %s1480_s13 }
 0x199   : > { %p10_p0 = scmp.ge.s32.totalorder %s13_s18, 10   ;;  %s1839_s13 = smov %s1574_s25 }
 0x19a   : > { %s1840_s14 = smov %s1492_s16  ;;  %s1841_s15 = smov %s1496_s17 }
 0x19b   : > { %s1842_s16 = smov %s1845_s19  ;;  %s1843_s17 = smov %s1849_s20 }
 0x19c   :  { %12 = sbr.rel (!%p10_p0) target bundleno = 4 (0x4), region = 119 }

// kernel: model_forward.17
= control target key start
LH: loop header
LB: loop body
LE: loop exit
PB: predicated region body
PF: predicated region fallthrough
CT: control target
= control target key end

     0   :  { %s1523_s12 = smov 0   ;;  %s1525_s13 = smov 0   ;;  %s1834_s0 = inlined_call_operand.vmem [shape: bf16[8,2560], index: 0, kind: input, shape index: {}]   ;;  %s1835_s1 = inlined_call_operand.vmem [shape: bf16[2560,512], index: 1, kind: input, shape index: {}]   ;;  %s1836_s2 = inlined_call_operand.vmem [shape: f32[1,512], index: 2, kind: input, shape index: {}]   ;;  %s1837_s3 = inlined_call_operand.vmem [shape: bf16[8,512], index: 3, kind: output, shape index: {}]  }
   0x1   :  { %s1527_s14 = smov 0   ;;  %s1529_s15 = smov 0  }
   0x2   :  { %s1531_s16 = smov 0   ;;  %s1533_s17 = smov 0  }
   0x3   :  { %s1535_s18 = smov 0  }
   0x4 LB: > { %s25_s19 = sadd.s32 1, %s1492_s16  ;;  %s28_s20 = sadd.s32 1, %s1496_s17  ;;  %s1500_s18 = sphi %s1535_s18, %s13_s18   ;;  %s1496_s17 = sphi %s1533_s17, %s1843_s17   ;;  %s1492_s16 = sphi %s1531_s16, %s1842_s16   ;;  %s1488_s15 = sphi %s1529_s15, %s1841_s15   ;;  %s1484_s14 = sphi %s1527_s14, %s1840_s14   ;;  %s1480_s13 = sphi %s1525_s13, %s1839_s13   ;;  %s1476_s12 = sphi %s1523_s12, %s1838_s12  }
   0x5   : > { %p26_p0 = scmp.ge.s32.totalorder %s25_s19, 5  ;;  %p76_p1 = scmp.ne.s32.totalorder %s1480_s13, %s1476_s12 }
   0x6   : > { %p77_p2 = scmp.eq.s32.totalorder %s1500_s18, 0  ;;  %s69_s24 = sadd.s32 1, %s1480_s13 }
   0x7   : > { %s1845_s19 = smov (%p26_p0, %s25_s19), 0  ;;  %s1847_s20 = smov (!%p26_p0, %s28_s20), %s1496_s17 }
   0x8   : > { %p78_p3 = por %p77_p2, %p76_p1  ;;  %p30_p4 = scmp.ge.s32.totalorder %s1847_s20, 2 }
   0x9   : > { %s64_s21 = ssub.s32 %s1492_s16, %s1845_s19  ;;  %p1201_p6 = scmp.ge.s32.totalorder %s1500_s18, 10 }
   0xa   : > { %s1849_s20 = smov (%p30_p4, %s1847_s20), 0 }
   0xb   : > { %s65_s22 = ssub.s32 %s1496_s17, %s1849_s20  ;;  %156 = sbr.rel (%p1201_p6) target bundleno = 57 (0x39), region = 16 }
   0xc   : > { %s66_s23 = sor.u32 %s65_s22, %s64_s21 }
   0xd   : > { %p67_p5 = scmp.eq.s32.totalorder %s66_s23, 0 }
   0xf   : > { %s1574_s25 = scalar_select %p67_p5, %s1480_s13, %s69_s24  }
  0x12   : > { %172 = sbr.rel (!%p78_p3) target bundleno = 57 (0x39), region = 24  ;;  %s174_s26 = sand.u32 (%p78_p3), 1, %s1480_s13  }
  0x13   : > { %s1204_s27 = sshll.u32 (%p78_p3), %s1496_s17, 1  ;;  %s1202_s28 = sshll.u32 (%p78_p3), %s174_s26, 9 }
  0x14   : > { %s1287_s29 = sshll.u32 (%p78_p3), %s1492_s16, 8  ;;  %s1588_s8 = scalar_lea.vmem (%p78_p3), [#allocation3], %s1202_s28 }
  0x15   : > { %s180_s30 = sadd.s32 (%p78_p3), %s1287_s29, %s1204_s27 }
  0x16   : > { %s1206_s4 = sshll.u32 (%p78_p3), %s180_s30, 2 }
  0x17   : > { %s1583_s7 = scalar_lea.vmem (%p78_p3), %s1835_s1, %s1206_s4 }
  0x18   : > { %v336_v0 = vld [vmem:[%s1583_s7] sm:$0xff] (%p78_p3)  ;;  %v338_v1 = vld [vmem:[%s1583_s7 + $0x10] sm:$0xff] (%p78_p3) }
  0x19   : > { %v340_v2 = vld [vmem:[%s1583_s7 + $0x20] sm:$0xff]  ;;  %337 = vst [vmem:[%s1588_s8] sm:$0xff] %v336_v0  ;;  %339 = vst [vmem:[%s1588_s8 + $0x8] sm:$0xff] %v338_v1  ;;  %v342_v3 = vld [vmem:[%s1583_s7 + $0x30] sm:$0xff] }
  0x1a   : > { %341 = vst [vmem:[%s1588_s8 + $0x10] sm:$0xff] %v340_v2  ;;  %v344_v4 = vld [vmem:[%s1583_s7 + $0x40] sm:$0xff]  ;;  %v346_v5 = vld [vmem:[%s1583_s7 + $0x50] sm:$0xff]  ;;  %343 = vst [vmem:[%s1588_s8 + $0x18] sm:$0xff] %v342_v3 }
  0x1b   : > { %345 = vst [vmem:[%s1588_s8 + $0x20] sm:$0xff] %v344_v4  ;;  %347 = vst [vmem:[%s1588_s8 + $0x28] sm:$0xff] %v346_v5  ;;  %v348_v6 = vld [vmem:[%s1583_s7 + $0x60] sm:$0xff]  ;;  %v350_v7 = vld [vmem:[%s1583_s7 + $0x70] sm:$0xff] }
  0x1c   : > { %v352_v8 = vld [vmem:[%s1583_s7 + $0x80] sm:$0xff]  ;;  %349 = vst [vmem:[%s1588_s8 + $0x30] sm:$0xff] %v348_v6  ;;  %351 = vst [vmem:[%s1588_s8 + $0x38] sm:$0xff] %v350_v7  ;;  %v354_v9 = vld [vmem:[%s1583_s7 + $0x90] sm:$0xff] }
  0x1d   : > { %353 = vst [vmem:[%s1588_s8 + $0x40] sm:$0xff] %v352_v8  ;;  %v356_v10 = vld [vmem:[%s1583_s7 + $0xa0] sm:$0xff]  ;;  %v358_v11 = vld [vmem:[%s1583_s7 + $0xb0] sm:$0xff]  ;;  %355 = vst [vmem:[%s1588_s8 + $0x48] sm:$0xff] %v354_v9 }
  0x1e   : > { %357 = vst [vmem:[%s1588_s8 + $0x50] sm:$0xff] %v356_v10  ;;  %359 = vst [vmem:[%s1588_s8 + $0x58] sm:$0xff] %v358_v11  ;;  %v360_v12 = vld [vmem:[%s1583_s7 + $0xc0] sm:$0xff]  ;;  %v362_v13 = vld [vmem:[%s1583_s7 + $0xd0] sm:$0xff] }
  0x1f   : > { %v364_v14 = vld [vmem:[%s1583_s7 + $0xe0] sm:$0xff]  ;;  %361 = vst [vmem:[%s1588_s8 + $0x60] sm:$0xff] %v360_v12  ;;  %363 = vst [vmem:[%s1588_s8 + $0x68] sm:$0xff] %v362_v13  ;;  %v366_v15 = vld [vmem:[%s1583_s7 + $0xf0] sm:$0xff] }
  0x20   : > { %365 = vst [vmem:[%s1588_s8 + $0x70] sm:$0xff] %v364_v14  ;;  %v368_v16 = vld [vmem:[%s1583_s7 + $0x100] sm:$0xff]  ;;  %v370_v17 = vld [vmem:[%s1583_s7 + $0x110] sm:$0xff]  ;;  %367 = vst [vmem:[%s1588_s8 + $0x78] sm:$0xff] %v366_v15 }
  0x21   : > { %369 = vst [vmem:[%s1588_s8 + $0x80] sm:$0xff] %v368_v16  ;;  %371 = vst [vmem:[%s1588_s8 + $0x88] sm:$0xff] %v370_v17  ;;  %v372_v18 = vld [vmem:[%s1583_s7 + $0x120] sm:$0xff]  ;;  %v374_v19 = vld [vmem:[%s1583_s7 + $0x130] sm:$0xff] }
  0x22   : > { %v376_v20 = vld [vmem:[%s1583_s7 + $0x140] sm:$0xff]  ;;  %373 = vst [vmem:[%s1588_s8 + $0x90] sm:$0xff] %v372_v18  ;;  %375 = vst [vmem:[%s1588_s8 + $0x98] sm:$0xff] %v374_v19  ;;  %v378_v21 = vld [vmem:[%s1583_s7 + $0x150] sm:$0xff] }
  0x23   : > { %377 = vst [vmem:[%s1588_s8 + $0xa0] sm:$0xff] %v376_v20  ;;  %v380_v22 = vld [vmem:[%s1583_s7 + $0x160] sm:$0xff]  ;;  %v382_v23 = vld [vmem:[%s1583_s7 + $0x170] sm:$0xff]  ;;  %379 = vst [vmem:[%s1588_s8 + $0xa8] sm:$0xff] %v378_v21 }
  0x24   : > { %381 = vst [vmem:[%s1588_s8 + $0xb0] sm:$0xff] %v380_v22  ;;  %383 = vst [vmem:[%s1588_s8 + $0xb8] sm:$0xff] %v382_v23  ;;  %v384_v24 = vld [vmem:[%s1583_s7 + $0x180] sm:$0xff]  ;;  %v386_v25 = vld [vmem:[%s1583_s7 + $0x190] sm:$0xff] }
  0x25   : > { %v388_v26 = vld [vmem:[%s1583_s7 + $0x1a0] sm:$0xff]  ;;  %385 = vst [vmem:[%s1588_s8 + $0xc0] sm:$0xff] %v384_v24  ;;  %387 = vst [vmem:[%s1588_s8 + $0xc8] sm:$0xff] %v386_v25  ;;  %v390_v27 = vld [vmem:[%s1583_s7 + $0x1b0] sm:$0xff] }
  0x26   : > { %389 = vst [vmem:[%s1588_s8 + $0xd0] sm:$0xff] %v388_v26  ;;  %v392_v28 = vld [vmem:[%s1583_s7 + $0x1c0] sm:$0xff]  ;;  %v394_v29 = vld [vmem:[%s1583_s7 + $0x1d0] sm:$0xff]  ;;  %391 = vst [vmem:[%s1588_s8 + $0xd8] sm:$0xff] %v390_v27 }
  0x27   : > { %393 = vst [vmem:[%s1588_s8 + $0xe0] sm:$0xff] %v392_v28  ;;  %395 = vst [vmem:[%s1588_s8 + $0xe8] sm:$0xff] %v394_v29  ;;  %v396_v30 = vld [vmem:[%s1583_s7 + $0x1e0] sm:$0xff]  ;;  %v398_v31 = vld [vmem:[%s1583_s7 + $0x1f0] sm:$0xff] }
  0x28   : > { %v400_v32 = vld [vmem:[%s1583_s7 + $0x200] sm:$0xff]  ;;  %397 = vst [vmem:[%s1588_s8 + $0xf0] sm:$0xff] %v396_v30  ;;  %399 = vst [vmem:[%s1588_s8 + $0xf8] sm:$0xff] %v398_v31  ;;  %v402_v33 = vld [vmem:[%s1583_s7 + $0x210] sm:$0xff] }
  0x29   : > { %401 = vst [vmem:[%s1588_s8 + $0x100] sm:$0xff] %v400_v32  ;;  %v404_v34 = vld [vmem:[%s1583_s7 + $0x220] sm:$0xff]  ;;  %v406_v35 = vld [vmem:[%s1583_s7 + $0x230] sm:$0xff]  ;;  %403 = vst [vmem:[%s1588_s8 + $0x108] sm:$0xff] %v402_v33 }
  0x2a   : > { %405 = vst [vmem:[%s1588_s8 + $0x110] sm:$0xff] %v404_v34  ;;  %407 = vst [vmem:[%s1588_s8 + $0x118] sm:$0xff] %v406_v35  ;;  %v408_v36 = vld [vmem:[%s1583_s7 + $0x240] sm:$0xff]  ;;  %v410_v37 = vld [vmem:[%s1583_s7 + $0x250] sm:$0xff] }
  0x2b   : > { %v412_v38 = vld [vmem:[%s1583_s7 + $0x260] sm:$0xff]  ;;  %409 = vst [vmem:[%s1588_s8 + $0x120] sm:$0xff] %v408_v36  ;;  %411 = vst [vmem:[%s1588_s8 + $0x128] sm:$0xff] %v410_v37  ;;  %v414_v39 = vld [vmem:[%s1583_s7 + $0x270] sm:$0xff] }
  0x2c   : > { %413 = vst [vmem:[%s1588_s8 + $0x130] sm:$0xff] %v412_v38  ;;  %v416_v40 = vld [vmem:[%s1583_s7 + $0x280] sm:$0xff]  ;;  %v418_v41 = vld [vmem:[%s1583_s7 + $0x290] sm:$0xff]  ;;  %415 = vst [vmem:[%s1588_s8 + $0x138] sm:$0xff] %v414_v39 }
  0x2d   : > { %417 = vst [vmem:[%s1588_s8 + $0x140] sm:$0xff] %v416_v40  ;;  %419 = vst [vmem:[%s1588_s8 + $0x148] sm:$0xff] %v418_v41  ;;  %v420_v42 = vld [vmem:[%s1583_s7 + $0x2a0] sm:$0xff]  ;;  %v422_v43 = vld [vmem:[%s1583_s7 + $0x2b0] sm:$0xff] }
  0x2e   : > { %v424_v44 = vld [vmem:[%s1583_s7 + $0x2c0] sm:$0xff]  ;;  %421 = vst [vmem:[%s1588_s8 + $0x150] sm:$0xff] %v420_v42  ;;  %423 = vst [vmem:[%s1588_s8 + $0x158] sm:$0xff] %v422_v43  ;;  %v426_v45 = vld [vmem:[%s1583_s7 + $0x2d0] sm:$0xff] }
  0x2f   : > { %425 = vst [vmem:[%s1588_s8 + $0x160] sm:$0xff] %v424_v44  ;;  %v428_v46 = vld [vmem:[%s1583_s7 + $0x2e0] sm:$0xff]  ;;  %v430_v47 = vld [vmem:[%s1583_s7 + $0x2f0] sm:$0xff]  ;;  %427 = vst [vmem:[%s1588_s8 + $0x168] sm:$0xff] %v426_v45 }
  0x30   : > { %429 = vst [vmem:[%s1588_s8 + $0x170] sm:$0xff] %v428_v46  ;;  %431 = vst [vmem:[%s1588_s8 + $0x178] sm:$0xff] %v430_v47  ;;  %v432_v48 = vld [vmem:[%s1583_s7 + $0x300] sm:$0xff]  ;;  %v434_v49 = vld [vmem:[%s1583_s7 + $0x310] sm:$0xff] }
  0x31   : > { %v436_v50 = vld [vmem:[%s1583_s7 + $0x320] sm:$0xff]  ;;  %433 = vst [vmem:[%s1588_s8 + $0x180] sm:$0xff] %v432_v48  ;;  %435 = vst [vmem:[%s1588_s8 + $0x188] sm:$0xff] %v434_v49  ;;  %v438_v51 = vld [vmem:[%s1583_s7 + $0x330] sm:$0xff] }
  0x32   : > { %437 = vst [vmem:[%s1588_s8 + $0x190] sm:$0xff] %v436_v50  ;;  %v440_v52 = vld [vmem:[%s1583_s7 + $0x340] sm:$0xff]  ;;  %v442_v53 = vld [vmem:[%s1583_s7 + $0x350] sm:$0xff]  ;;  %439 = vst [vmem:[%s1588_s8 + $0x198] sm:$0xff] %v438_v51 }
  0x33   : > { %441 = vst [vmem:[%s1588_s8 + $0x1a0] sm:$0xff] %v440_v52  ;;  %443 = vst [vmem:[%s1588_s8 + $0x1a8] sm:$0xff] %v442_v53  ;;  %v444_v54 = vld [vmem:[%s1583_s7 + $0x360] sm:$0xff]  ;;  %v446_v55 = vld [vmem:[%s1583_s7 + $0x370] sm:$0xff] }
  0x34   : > { %v448_v56 = vld [vmem:[%s1583_s7 + $0x380] sm:$0xff]  ;;  %445 = vst [vmem:[%s1588_s8 + $0x1b0] sm:$0xff] %v444_v54  ;;  %447 = vst [vmem:[%s1588_s8 + $0x1b8] sm:$0xff] %v446_v55  ;;  %v450_v57 = vld [vmem:[%s1583_s7 + $0x390] sm:$0xff] }
  0x35   : > { %449 = vst [vmem:[%s1588_s8 + $0x1c0] sm:$0xff] %v448_v56  ;;  %v452_v58 = vld [vmem:[%s1583_s7 + $0x3a0] sm:$0xff]  ;;  %v454_v59 = vld [vmem:[%s1583_s7 + $0x3b0] sm:$0xff]  ;;  %451 = vst [vmem:[%s1588_s8 + $0x1c8] sm:$0xff] %v450_v57 }
  0x36   : > { %453 = vst [vmem:[%s1588_s8 + $0x1d0] sm:$0xff] %v452_v58  ;;  %455 = vst [vmem:[%s1588_s8 + $0x1d8] sm:$0xff] %v454_v59  ;;  %v456_v60 = vld [vmem:[%s1583_s7 + $0x3c0] sm:$0xff]  ;;  %v458_v61 = vld [vmem:[%s1583_s7 + $0x3d0] sm:$0xff] }
  0x37   : > { %v460_v62 = vld [vmem:[%s1583_s7 + $0x3e0] sm:$0xff]  ;;  %457 = vst [vmem:[%s1588_s8 + $0x1e0] sm:$0xff] %v456_v60  ;;  %459 = vst [vmem:[%s1588_s8 + $0x1e8] sm:$0xff] %v458_v61  ;;  %v462_v63 = vld [vmem:[%s1583_s7 + $0x3f0] sm:$0xff] }
  0x38   : > { %461 = vst [vmem:[%s1588_s8 + $0x1f0] sm:$0xff] %v460_v62  ;;  %463 = vst [vmem:[%s1588_s8 + $0x1f8] sm:$0xff] %v462_v63 }
  0x39 PF: > { %p1207_p7 = scmp.ge.s32.totalorder %s1500_s18, 1  ;;  %p476_p8 = scmp.lt.s32.totalorder %s1500_s18, 11 }
  0x3b   : > { %p477_p9 = pnand %p1207_p7, %p476_p8 }
  0x3c   : > { %s483_s9 = sand.u32 (!%p477_p9), 1, %s1476_s12   ;;  %s1209_s10 = sshll.u32 (!%p477_p9), %s1484_s14, 2 }
  0x3d   : > { %480 = sbr.rel (%p477_p9) target bundleno = 376 (0x178), region = 66  ;;  %s1208_s11 = sshll.u32 (!%p477_p9), %s483_s9, 9 }
  0x3e   : > { %p526_p10 = scmp.lt.s32.totalorder (!%p477_p9), %s1209_s10, 19  ;;  %s1211_s21 = sshll.u32 (!%p477_p9), %s1488_s15, 1 }
  0x3f   : > { %p536_p11 = scmp.lt.s32.totalorder (!%p477_p9), %s1211_s21, 3  ;;  %s1737_s5 = scalar_lea.vmem (!%p477_p9), [#allocation3], %s1208_s11 }
  0x40   : > { %p1214_p12 = scmp.ne.s32.totalorder (!%p477_p9), %s1484_s14, 0 }
  0x44   : > { %s1851_s10 = smov (!%p526_p10, %s1209_s10), 19  ;;  %s1853_s21 = smov (!%p536_p11, %s1211_s21), 3 }
  0x45   : > { %s1210_s22 = sshll.u32 %s1851_s10, 2  ;;  %s538_s12 = scalar_lea.vmem %s1836_s2, %s1853_s21  ;;  %v1502_v0 = vmov (!%p1214_p12), 0.0  }
  0x46   : > { %s1723_s26 = scalar_lea.vmem %s1834_s0, %s1210_s22  ;;  %s1213_s29 = sshll.u32 %s1853_s21, 2  ;;  %554 = vst [vmem:[#allocation2] sm:$0xff] (!%p1214_p12), %v1502_v0  ;;  %555 = vst [vmem:[#allocation2 + $0x8] sm:$0xff] (!%p1214_p12), %v1502_v0 }
  0x47   : > { %s1735_s15 = scalar_lea.vmem %s1837_s3, %s1213_s29  ;;  %553 = sbr.rel (%p1214_p12) target bundleno = 78 (0x4e), region = 74 }
  0x4e PF: > { %v1346_v1 = vld [vmem:[%s1737_s5 + $0x4] ss:$8 sps:$4 sm:$0xff]   ;;  %v1350_v3 = vld [vmem:[%s1737_s5] ss:$8 sps:$4 sm:$0xff]   ;;  %v1352_v5 = vld [vmem:[%s1737_s5 + $0x14] ss:$8 sps:$4 sm:$0xff]  }
  0x4f   : > { %v1348_v2 = vld [vmem:[%s1737_s5 + $0x104] ss:$8 sps:$4 sm:$0xff]   ;;  %958 = vmatprep.subr.bf16.mxu0 %v1346_v1  ;;  %v1351_v4 = vld [vmem:[%s1737_s5 + $0x100] ss:$8 sps:$4 sm:$0xff]   ;;  %v1354_v6 = vld [vmem:[%s1737_s5 + $0x114] ss:$8 sps:$4 sm:$0xff]  }
  0x50   : > { %999 = vmatprep.subr.bf16.mxu1 %v1348_v2  ;;  %959 = vmatpush1.bf16.msra.mxu0 %v1350_v3  ;;  %v1356_v7 = vld [vmem:[%s1737_s5 + $0x10] ss:$8 sps:$4 sm:$0xff]   ;;  %v1358_v9 = vld [vmem:[%s1737_s5 + $0x24] ss:$8 sps:$4 sm:$0xff]   ;;  %v1362_v11 = vld [vmem:[%s1737_s5 + $0x20] ss:$8 sps:$4 sm:$0xff]  }
  0x51   : > { %1000 = vmatpush1.bf16.msra.mxu1 %v1351_v4  ;;  %960 = vmatprep.subr.bf16.mxu0 %v1352_v5  ;;  %v1357_v8 = vld [vmem:[%s1737_s5 + $0x110] ss:$8 sps:$4 sm:$0xff]   ;;  %v1360_v10 = vld [vmem:[%s1737_s5 + $0x124] ss:$8 sps:$4 sm:$0xff]   ;;  %v1363_v12 = vld [vmem:[%s1737_s5 + $0x120] ss:$8 sps:$4 sm:$0xff]  }
  0x52   : > { %1001 = vmatprep.subr.bf16.mxu1 %v1354_v6  ;;  %v1364_v13 = vld [vmem:[%s1737_s5 + $0x34] ss:$8 sps:$4 sm:$0xff]   ;;  %v1368_v15 = vld [vmem:[%s1737_s5 + $0x30] ss:$8 sps:$4 sm:$0xff]   ;;  %v1370_v17 = vld [vmem:[%s1737_s5 + $0x44] ss:$8 sps:$4 sm:$0xff]  }
  0x53   : > { %v1366_v14 = vld [vmem:[%s1737_s5 + $0x134] ss:$8 sps:$4 sm:$0xff]   ;;  %v1369_v16 = vld [vmem:[%s1737_s5 + $0x130] ss:$8 sps:$4 sm:$0xff]   ;;  %v1372_v18 = vld [vmem:[%s1737_s5 + $0x144] ss:$8 sps:$4 sm:$0xff]  }
  0x54   : > { %961 = vmatpush1.bf16.msra.mxu0 %v1356_v7  ;;  %v1374_v19 = vld [vmem:[%s1737_s5 + $0x40] ss:$8 sps:$4 sm:$0xff]   ;;  %v1376_v21 = vld [vmem:[%s1737_s5 + $0x54] ss:$8 sps:$4 sm:$0xff]   ;;  %v1380_v23 = vld [vmem:[%s1737_s5 + $0x50] ss:$8 sps:$4 sm:$0xff]  }
  0x55   : > { %1002 = vmatpush1.bf16.msra.mxu1 %v1357_v8  ;;  %962 = vmatprep.subr.bf16.mxu0 %v1358_v9  ;;  %v1375_v20 = vld [vmem:[%s1737_s5 + $0x140] ss:$8 sps:$4 sm:$0xff]   ;;  %v1378_v22 = vld [vmem:[%s1737_s5 + $0x154] ss:$8 sps:$4 sm:$0xff]   ;;  %v1381_v24 = vld [vmem:[%s1737_s5 + $0x150] ss:$8 sps:$4 sm:$0xff]  }
  0x56   : > { %1003 = vmatprep.subr.bf16.mxu1 %v1360_v10  ;;  %v1382_v25 = vld [vmem:[%s1737_s5 + $0x64] ss:$8 sps:$4 sm:$0xff]   ;;  %v1386_v27 = vld [vmem:[%s1737_s5 + $0x60] ss:$8 sps:$4 sm:$0xff]   ;;  %v1388_v29 = vld [vmem:[%s1737_s5 + $0x74] ss:$8 sps:$4 sm:$0xff]  }
  0x57   : > { %v1384_v26 = vld [vmem:[%s1737_s5 + $0x164] ss:$8 sps:$4 sm:$0xff]   ;;  %v1387_v28 = vld [vmem:[%s1737_s5 + $0x160] ss:$8 sps:$4 sm:$0xff]   ;;  %v1390_v30 = vld [vmem:[%s1737_s5 + $0x174] ss:$8 sps:$4 sm:$0xff]  }
  0x58   : > { %963 = vmatpush1.bf16.msra.mxu0 %v1362_v11  ;;  %v1392_v31 = vld [vmem:[%s1737_s5 + $0x70] ss:$8 sps:$4 sm:$0xff]   ;;  %v1394_v33 = vld [vmem:[%s1737_s5 + $0x84] ss:$8 sps:$4 sm:$0xff]   ;;  %v1398_v35 = vld [vmem:[%s1737_s5 + $0x80] ss:$8 sps:$4 sm:$0xff]  }
  0x59   : > { %1004 = vmatpush1.bf16.msra.mxu1 %v1363_v12  ;;  %964 = vmatprep.subr.bf16.mxu0 %v1364_v13  ;;  %v1393_v32 = vld [vmem:[%s1737_s5 + $0x170] ss:$8 sps:$4 sm:$0xff]   ;;  %v1396_v34 = vld [vmem:[%s1737_s5 + $0x184] ss:$8 sps:$4 sm:$0xff]   ;;  %v1399_v36 = vld [vmem:[%s1737_s5 + $0x180] ss:$8 sps:$4 sm:$0xff]  }
  0x5a   : > { %1005 = vmatprep.subr.bf16.mxu1 %v1366_v14  ;;  %v1400_v37 = vld [vmem:[%s1737_s5 + $0x94] ss:$8 sps:$4 sm:$0xff]   ;;  %v1404_v39 = vld [vmem:[%s1737_s5 + $0x90] ss:$8 sps:$4 sm:$0xff]   ;;  %v1406_v41 = vld [vmem:[%s1737_s5 + $0xa4] ss:$8 sps:$4 sm:$0xff]  }
  0x5b   : > { %v1402_v38 = vld [vmem:[%s1737_s5 + $0x194] ss:$8 sps:$4 sm:$0xff]   ;;  %v1405_v40 = vld [vmem:[%s1737_s5 + $0x190] ss:$8 sps:$4 sm:$0xff]   ;;  %v1408_v42 = vld [vmem:[%s1737_s5 + $0x1a4] ss:$8 sps:$4 sm:$0xff]  }
  0x5c   : > { %965 = vmatpush1.bf16.msra.mxu0 %v1368_v15  ;;  %v1410_v43 = vld [vmem:[%s1737_s5 + $0xa0] ss:$8 sps:$4 sm:$0xff]   ;;  %v1412_v45 = vld [vmem:[%s1737_s5 + $0xb4] ss:$8 sps:$4 sm:$0xff]   ;;  %v1416_v50 = vld [vmem:[%s1737_s5 + $0xb0] ss:$8 sps:$4 sm:$0xff]  }
  0x5d   : > { %1006 = vmatpush1.bf16.msra.mxu1 %v1369_v16  ;;  %966 = vmatprep.subr.bf16.mxu0 %v1370_v17  ;;  %v1411_v44 = vld [vmem:[%s1737_s5 + $0x1a0] ss:$8 sps:$4 sm:$0xff]   ;;  %v1414_v46 = vld [vmem:[%s1737_s5 + $0x1b4] ss:$8 sps:$4 sm:$0xff]   ;;  %v1417_v51 = vld [vmem:[%s1737_s5 + $0x1b0] ss:$8 sps:$4 sm:$0xff]  }
  0x5e   : > { %1007 = vmatprep.subr.bf16.mxu1 %v1372_v18  ;;  %v558_v47 = vld [vmem:[%s1723_s26] sm:$0xff]  ;;  %v559_v49 = vld [vmem:[%s1723_s26 + $0x8] sm:$0xff]  ;;  %v1418_v53 = vld [vmem:[%s1737_s5 + $0xc4] ss:$8 sps:$4 sm:$0xff]   ;;  %p1283_p13 = scmp.ne.s32.totalorder %s1484_s14, 4 }
  0x5f   : > { %v1216_v48 = vcombine.high %v558_v47, %v558_v47  ;;  %v1218_v52 = vcombine.high %v559_v49, %v559_v49  ;;  %v1420_v54 = vld [vmem:[%s1737_s5 + $0x1c4] ss:$8 sps:$4 sm:$0xff]   ;;  %v1422_v55 = vld [vmem:[%s1737_s5 + $0xc0] ss:$8 sps:$4 sm:$0xff]   ;;  %v1424_v57 = vld [vmem:[%s1737_s5 + $0xd4] ss:$8 sps:$4 sm:$0xff]   ;;  %v1215_v5 = vcombine.low %v558_v47, %v558_v47  ;;  %v1217_v6 = vcombine.low %v559_v49, %v559_v49 }
  0x60   : > { %967 = vmatpush1.bf16.msra.mxu0 %v1374_v19  ;;  %v1423_v56 = vld [vmem:[%s1737_s5 + $0x1c0] ss:$8 sps:$4 sm:$0xff]   ;;  %v1426_v58 = vld [vmem:[%s1737_s5 + $0x1d4] ss:$8 sps:$4 sm:$0xff]   ;;  %v1428_v59 = vld [vmem:[%s1737_s5 + $0xd0] ss:$8 sps:$4 sm:$0xff]  }
  0x61   : > { %1008 = vmatpush1.bf16.msra.mxu1 %v1375_v20  ;;  %968 = vmatprep.subr.bf16.mxu0 %v1376_v21  ;;  %v1429_v60 = vld [vmem:[%s1737_s5 + $0x1d0] ss:$8 sps:$4 sm:$0xff]   ;;  %v1430_v61 = vld [vmem:[%s1737_s5 + $0xe4] ss:$8 sps:$4 sm:$0xff]   ;;  %v1434_v63 = vld [vmem:[%s1737_s5 + $0xe0] ss:$8 sps:$4 sm:$0xff]   ;;  %v1052_v21 = vlaneseq (!%p1283_p13) }
  0x62   : > { %1009 = vmatprep.subr.bf16.mxu1 %v1378_v22  ;;  %990 = vmatprep.mubr.bf16.mxu0 %v1216_v48  ;;  %v1432_v62 = vld [vmem:[%s1737_s5 + $0x1e4] ss:$8 sps:$4 sm:$0xff]   ;;  %v1435_v0 = vld [vmem:[%s1737_s5 + $0x1e0] ss:$8 sps:$4 sm:$0xff]   ;;  %v1436_v1 = vld [vmem:[%s1737_s5 + $0xf4] ss:$8 sps:$4 sm:$0xff]  }
  0x63   : > { %1031 = vmatprep.mubr.bf16.mxu1 %v1218_v52  ;;  %v1438_v2 = vld [vmem:[%s1737_s5 + $0x1f4] ss:$8 sps:$4 sm:$0xff]   ;;  %v1440_v3 = vld [vmem:[%s1737_s5 + $0xf0] ss:$8 sps:$4 sm:$0xff]   ;;  %v1053_v22 = vshrl.u32 (!%p1283_p13), %v1052_v21, 7 }
  0x64   : > { %969 = vmatpush1.bf16.msra.mxu0 %v1380_v23  ;;  %v1441_v4 = vld [vmem:[%s1737_s5 + $0x1f0] ss:$8 sps:$4 sm:$0xff]  }
  0x65   : > { %1010 = vmatpush1.bf16.msra.mxu1 %v1381_v24  ;;  %970 = vmatprep.subr.bf16.mxu0 %v1382_v25  ;;  %v556_v8 = vld [vmem:[#allocation2] sm:$0xff]  ;;  %v557_v12 = vld [vmem:[#allocation2 + $0x8] sm:$0xff]  ;;  %v1054_v24 = vsub.s32 (!%p1283_p13), 0, %v1053_v22  ;;  %v1058_v25 = vsub.s32 (!%p1283_p13), 1, %v1053_v22 }
  0x66   : > { %1011 = vmatprep.subr.bf16.mxu1 %v1384_v26  ;;  %v1050_v23 = vld [vmem:[%s538_s12] sm:$0x3] (!%p1283_p13) }
  0x68   : > { %971 = vmatpush1.bf16.msra.mxu0 %v1386_v27 }
  0x69   : > { %1012 = vmatpush1.bf16.msra.mxu1 %v1387_v28  ;;  %972 = vmatprep.subr.bf16.mxu0 %v1388_v29  ;;  %v1055_v28 = vrot.slane (!%p1283_p13), %v1050_v23, %v1054_v24  ;;  %v1059_v29 = vrot.slane (!%p1283_p13), %v1050_v23, %v1058_v25 }
  0x6a   : > { %1013 = vmatprep.subr.bf16.mxu1 %v1390_v30 }
  0x6c   : > { %973 = vmatpush1.bf16.msra.mxu0 %v1392_v31 }
  0x6d   : > { %1014 = vmatpush1.bf16.msra.mxu1 %v1393_v32  ;;  %974 = vmatprep.subr.bf16.mxu0 %v1394_v33 }
  0x6e   : > { %1015 = vmatprep.subr.bf16.mxu1 %v1396_v34 }
  0x70   : > { %975 = vmatpush1.bf16.msra.mxu0 %v1398_v35 }
  0x71   : > { %1016 = vmatpush1.bf16.msra.mxu1 %v1399_v36  ;;  %976 = vmatprep.subr.bf16.mxu0 %v1400_v37 }
  0x72   : > { %1017 = vmatprep.subr.bf16.mxu1 %v1402_v38 }
  0x74   : > { %977 = vmatpush1.bf16.msra.mxu0 %v1404_v39 }
  0x75   : > { %1018 = vmatpush1.bf16.msra.mxu1 %v1405_v40  ;;  %978 = vmatprep.subr.bf16.mxu0 %v1406_v41 }
  0x76   : > { %1019 = vmatprep.subr.bf16.mxu1 %v1408_v42 }
  0x78   : > { %979 = vmatpush1.bf16.msra.mxu0 %v1410_v43 }
  0x79   : > { %1020 = vmatpush1.bf16.msra.mxu1 %v1411_v44  ;;  %980 = vmatprep.subr.bf16.mxu0 %v1412_v45 }
  0x7a   : > { %1021 = vmatprep.subr.bf16.mxu1 %v1414_v46 }
  0x7c   : > { %981 = vmatpush1.bf16.msra.mxu0 %v1416_v50 }
  0x7d   : > { %1022 = vmatpush1.bf16.msra.mxu1 %v1417_v51  ;;  %982 = vmatprep.subr.bf16.mxu0 %v1418_v53 }
  0x7e   : > { %1023 = vmatprep.subr.bf16.mxu1 %v1420_v54 }
  0x80   : > { %983 = vmatpush1.bf16.msra.mxu0 %v1422_v55 }
  0x81   : > { %1024 = vmatpush1.bf16.msra.mxu1 %v1423_v56  ;;  %984 = vmatprep.subr.bf16.mxu0 %v1424_v57 }
  0x82   : > { %1025 = vmatprep.subr.bf16.mxu1 %v1426_v58 }
  0x84   : > { %985 = vmatpush1.bf16.msra.mxu0 %v1428_v59 }
  0x85   : > { %1026 = vmatpush1.bf16.msra.mxu1 %v1429_v60  ;;  %986 = vmatprep.subr.bf16.mxu0 %v1430_v61 }
  0x86   : > { %1027 = vmatprep.subr.bf16.mxu1 %v1432_v62 }
  0x88   : > { %987 = vmatpush1.bf16.msra.mxu0 %v1434_v63 }
  0x89   : > { %1028 = vmatpush1.bf16.msra.mxu1 %v1435_v0  ;;  %988 = vmatprep.subr.bf16.mxu0 %v1436_v1 }
  0x8a   : > { %1029 = vmatprep.subr.bf16.mxu1 %v1438_v2 }
  0x8c   : > { %989 = vmatpush1.bf16.msra.mxu0 %v1440_v3 }
  0x8d   : > { %1030 = vmatpush1.bf16.msra.mxu1 %v1441_v4 }
  0x8f   : > { %991 = vmatmul.mubr.bf16.vlgmr.msra.gmra.mrb[0].mxu0 %v1215_v5 }
  0x90   : > { %1032 = vmatmul.mubr.bf16.vlgmr.msra.gmra.mrb[0].mxu1 %v1217_v6 }
 0x162   : > { %v992_v7 = vpop.f32.mrb[0].mxu0 }
 0x163   : > { %v1033_v9 = vpop.f32.mrb[0].mxu1  ;;  %v994_v11 = vpop.f32.mrb[1].mxu0  ;;  %1047 = sbr.rel (%p1283_p13) target bundleno = 376 (0x178), region = 78 }
 0x164   : > { %v1034_v10 = vadd.f32 %v1033_v9, %v992_v7  ;;  %v1035_v13 = vpop.f32.mrb[1].mxu1  ;;  %v996_v15 = vpop.f32.mrb[2].mxu0 }
 0x165   : > { %v1036_v14 = vadd.f32 %v1035_v13, %v994_v11  ;;  %v1037_v16 = vpop.f32.mrb[2].mxu1  ;;  %v997_v18 = vpop.f32.mrb[3].mxu0 }
 0x166   : > { %v1040_v17 = vadd.f32 %v1034_v10, %v556_v8  ;;  %v1038_v19 = vpop.f32.mrb[3].mxu1 }
 0x167   : > { %v1041_v20 = vadd.f32 %v1036_v14, %v557_v12 }
 0x168   : > { %1042 = vst [vmem:[#allocation2] sm:$0xff] %v1040_v17 }
 0x169   : > { %1043 = vst [vmem:[#allocation2 + $0x8] sm:$0xff] %v1041_v20 }
 0x16f   : > { %v1048_v26 = vld [vmem:[#allocation2] sm:$0xff] }
 0x170   : > { %v1049_v27 = vld [vmem:[#allocation2 + $0x8] sm:$0xff]  ;;  %v1062_v30 = vadd.f32 %v1055_v28, %v1048_v26 }
 0x171   : > { %v1063_v31 = vadd.f32 %v1059_v29, %v1049_v27 }
 0x172   : > { %v1064_v32 = vmax.f32 %v1062_v30, 0.0 }
 0x173   : > { %v1065_v33 = vmax.f32 %v1063_v31, 0.0 }
 0x175   : > { %v1288_v34 = vpack.c.bf16 %v1065_v33, %v1064_v32 }
 0x177   : > { %1074 = vst [vmem:[%s1735_s15] sm:$0xff] %v1288_v34 }
 0x178 PF: > { %s13_s18 = sadd.s32 1, %s1500_s18   ;;  %s1838_s12 = smov %s1480_s13 }
 0x179   : > { %p10_p0 = scmp.ge.s32.totalorder %s13_s18, 12   ;;  %s1839_s13 = smov %s1574_s25 }
 0x17a   : > { %s1840_s14 = smov %s1492_s16  ;;  %s1841_s15 = smov %s1496_s17 }
 0x17b   : > { %s1842_s16 = smov %s1845_s19  ;;  %s1843_s17 = smov %s1849_s20 }
 0x17c   :  { %12 = sbr.rel (!%p10_p0) target bundleno = 4 (0x4), region = 119 }

// kernel: model_forward.18
= control target key start
LH: loop header
LB: loop body
LE: loop exit
PB: predicated region body
PF: predicated region fallthrough
CT: control target
= control target key end

     0   :  { %s1388_s12 = smov 0   ;;  %s1390_s13 = smov 0   ;;  %s1546_s0 = inlined_call_operand.vmem [shape: bf16[32,1536], index: 0, kind: input, shape index: {}]   ;;  %s1547_s1 = inlined_call_operand.vmem [shape: bf16[1536,256], index: 1, kind: input, shape index: {}]   ;;  %s1548_s2 = inlined_call_operand.vmem [shape: f32[1,256], index: 2, kind: input, shape index: {}]   ;;  %s1549_s3 = inlined_call_operand.vmem [shape: bf16[32,256], index: 3, kind: output, shape index: {}]  }
   0x1   :  { %s1392_s14 = smov 0   ;;  %s1394_s15 = smov 0  }
   0x2   :  { %s1396_s16 = smov 0  }
   0x3 LB: > { %s25_s17 = sadd.s32 1, %s1361_s15  ;;  %p48_p1 = scmp.ne.s32.totalorder %s1353_s13, %s1349_s12  ;;  %s1365_s16 = sphi %s1396_s16, %s13_s16   ;;  %s1361_s15 = sphi %s1394_s15, %s1553_s15   ;;  %s1357_s14 = sphi %s1392_s14, %s1552_s14   ;;  %s1353_s13 = sphi %s1390_s13, %s1551_s13   ;;  %s1349_s12 = sphi %s1388_s12, %s1550_s12  }
   0x4   : > { %p26_p0 = scmp.ge.s32.totalorder %s25_s17, 3  ;;  %p49_p2 = scmp.eq.s32.totalorder %s1365_s16, 0 }
   0x5   : > { %s41_s19 = sadd.s32 1, %s1353_s13  ;;  %p1073_p5 = scmp.ge.s32.totalorder %s1365_s16, 3 }
   0x6   : > { %s1555_s17 = smov (%p26_p0, %s25_s17), 0  ;;  %p50_p3 = por %p49_p2, %p48_p1 }
   0x7   : > { %s37_s18 = ssub.s32 %s1361_s15, %s1555_s17  ;;  %164 = sbr.rel (%p1073_p5) target bundleno = 22 (0x16), region = 20 }
   0x8   : > { %p39_p4 = scmp.eq.s32.totalorder %s37_s18, 0 }
   0xa   : > { %s1423_s20 = scalar_select %p39_p4, %s1353_s13, %s41_s19  }
   0xe   : > { %167 = sbr.rel (!%p50_p3) target bundleno = 22 (0x16), region = 24  ;;  %s169_s21 = sand.u32 (%p50_p3), 1, %s1353_s13  }
   0xf   : > { %s1164_s22 = sshll.u32 (%p50_p3), %s1361_s15, 4  ;;  %s1074_s23 = sshll.u32 (%p50_p3), %s169_s21, 6 }
  0x10   : > { %s177_s26 = scalar_lea.vmem (%p50_p3), %s1546_s0, %s1164_s22  ;;  %s171_s27 = scalar_lea.vmem (%p50_p3), [#allocation3], %s1074_s23 }
  0x11   : > { %v190_v0 = vld [vmem:[%s177_s26] sm:$0xff] (%p50_p3)  ;;  %v192_v1 = vld [vmem:[%s177_s26 + $0x8] sm:$0xff] (%p50_p3)  ;;  %v194_v2 = vld [vmem:[%s177_s26 + $0x30] sm:$0xff] (%p50_p3) }
  0x12   : > { %191 = vst [vmem:[%s171_s27] sm:$0xff] (%p50_p3), %v190_v0  ;;  %193 = vst [vmem:[%s171_s27 + $0x8] sm:$0xff] (%p50_p3), %v192_v1  ;;  %v196_v3 = vld [vmem:[%s177_s26 + $0x38] sm:$0xff] (%p50_p3)  ;;  %v198_v4 = vld [vmem:[%s177_s26 + $0x60] sm:$0xff] (%p50_p3) }
  0x13   : > { %195 = vst [vmem:[%s171_s27 + $0x10] sm:$0xff] (%p50_p3), %v194_v2  ;;  %v200_v5 = vld [vmem:[%s177_s26 + $0x68] sm:$0xff] (%p50_p3)  ;;  %197 = vst [vmem:[%s171_s27 + $0x18] sm:$0xff] (%p50_p3), %v196_v3  ;;  %v202_v6 = vld [vmem:[%s177_s26 + $0x90] sm:$0xff] (%p50_p3) }
  0x14   : > { %199 = vst [vmem:[%s171_s27 + $0x20] sm:$0xff] (%p50_p3), %v198_v4  ;;  %201 = vst [vmem:[%s171_s27 + $0x28] sm:$0xff] (%p50_p3), %v200_v5  ;;  %v204_v7 = vld [vmem:[%s177_s26 + $0x98] sm:$0xff] (%p50_p3) }
  0x15   : > { %203 = vst [vmem:[%s171_s27 + $0x30] sm:$0xff] %v202_v6  ;;  %205 = vst [vmem:[%s171_s27 + $0x38] sm:$0xff] %v204_v7 }
  0x16 PF: > { %p1077_p6 = scmp.ge.s32.totalorder %s1365_s16, 1  ;;  %p225_p7 = scmp.lt.s32.totalorder %s1365_s16, 4 }
  0x18   : > { %p226_p8 = pnand %p1077_p6, %p225_p7 }
  0x19   : > { %s232_s28 = sand.u32 (!%p226_p8), 1, %s1349_s12   ;;  %s1079_s29 = sshll.u32 (!%p226_p8), %s1357_s14, 6 }
  0x1a   : > { %229 = sbr.rel (%p226_p8) target bundleno = 348 (0x15c), region = 51  ;;  %s1078_s30 = sshll.u32 (!%p226_p8), %s232_s28, 6 }
  0x1b   : > { %p278_p9 = scmp.lt.s32.totalorder (!%p226_p8), %s1079_s29, 191  ;;  %s1440_s8 = scalar_lea.vmem (!%p226_p8), [#allocation3], %s1078_s30 }
  0x1c   : > { %p1082_p10 = scmp.ne.s32.totalorder (!%p226_p8), %s1357_s14, 0 }
  0x21   : > { %s1557_s29 = smov (!%p278_p9, %s1079_s29), 191  ;;  %308 = sbr.rel (%p1082_p10) target bundleno = 40 (0x28), region = 59 }
  0x22   : > { %s1165_s4 = sshll.u32 %s1557_s29, 3  ;;  %v1367_v8 = vmov (!%p1082_p10), 0.0  }
  0x23   : > { %s1438_s7 = scalar_lea.vmem %s1547_s1, %s1165_s4  ;;  %309 = vst [vmem:[#allocation2] sm:$0xff] (!%p1082_p10), %v1367_v8  ;;  %310 = vst [vmem:[#allocation2 + $0x8] sm:$0xff] (!%p1082_p10), %v1367_v8 }
  0x24   : > { %311 = vst [vmem:[#allocation2 + $0x10] sm:$0xff] (!%p1082_p10), %v1367_v8  ;;  %312 = vst [vmem:[#allocation2 + $0x18] sm:$0xff] (!%p1082_p10), %v1367_v8 }
  0x25   : > { %313 = vst [vmem:[#allocation2 + $0x20] sm:$0xff] (!%p1082_p10), %v1367_v8  ;;  %314 = vst [vmem:[#allocation2 + $0x28] sm:$0xff] (!%p1082_p10), %v1367_v8 }
  0x26   : > { %315 = vst [vmem:[#allocation2 + $0x30] sm:$0xff] (!%p1082_p10), %v1367_v8  ;;  %316 = vst [vmem:[#allocation2 + $0x38] sm:$0xff] (!%p1082_p10), %v1367_v8 }
  0x28 PF: > { %v1219_v9 = vld [vmem:[%s1438_s7 + $0x4] ss:$8 sps:$4 sm:$0xff]   ;;  %v1223_v11 = vld [vmem:[%s1438_s7] ss:$8 sps:$4 sm:$0xff]   ;;  %v1225_v13 = vld [vmem:[%s1438_s7 + $0x14] ss:$8 sps:$4 sm:$0xff]  }
  0x29   : > { %v1221_v10 = vld [vmem:[%s1438_s7 + $0x104] ss:$8 sps:$4 sm:$0xff]   ;;  %757 = vmatprep.subr.bf16.mxu1 %v1219_v9  ;;  %v1224_v12 = vld [vmem:[%s1438_s7 + $0x100] ss:$8 sps:$4 sm:$0xff]   ;;  %v1227_v14 = vld [vmem:[%s1438_s7 + $0x114] ss:$8 sps:$4 sm:$0xff]  }
  0x2a   : > { %810 = vmatprep.subr.bf16.mxu0 %v1221_v10  ;;  %758 = vmatpush1.bf16.msra.mxu1 %v1223_v11  ;;  %v1229_v15 = vld [vmem:[%s1438_s7 + $0x10] ss:$8 sps:$4 sm:$0xff]   ;;  %v1231_v17 = vld [vmem:[%s1438_s7 + $0x24] ss:$8 sps:$4 sm:$0xff]   ;;  %v1235_v19 = vld [vmem:[%s1438_s7 + $0x20] ss:$8 sps:$4 sm:$0xff]  }
  0x2b   : > { %811 = vmatpush1.bf16.msra.mxu0 %v1224_v12  ;;  %759 = vmatprep.subr.bf16.mxu1 %v1225_v13  ;;  %v1230_v16 = vld [vmem:[%s1438_s7 + $0x110] ss:$8 sps:$4 sm:$0xff]   ;;  %v1233_v18 = vld [vmem:[%s1438_s7 + $0x124] ss:$8 sps:$4 sm:$0xff]   ;;  %v1236_v20 = vld [vmem:[%s1438_s7 + $0x120] ss:$8 sps:$4 sm:$0xff]  }
  0x2c   : > { %812 = vmatprep.subr.bf16.mxu0 %v1227_v14  ;;  %v1237_v21 = vld [vmem:[%s1438_s7 + $0x34] ss:$8 sps:$4 sm:$0xff]   ;;  %v1241_v23 = vld [vmem:[%s1438_s7 + $0x30] ss:$8 sps:$4 sm:$0xff]   ;;  %v1243_v25 = vld [vmem:[%s1438_s7 + $0x44] ss:$8 sps:$4 sm:$0xff]  }
  0x2d   : > { %v1239_v22 = vld [vmem:[%s1438_s7 + $0x134] ss:$8 sps:$4 sm:$0xff]   ;;  %v1242_v24 = vld [vmem:[%s1438_s7 + $0x130] ss:$8 sps:$4 sm:$0xff]   ;;  %v1245_v26 = vld [vmem:[%s1438_s7 + $0x144] ss:$8 sps:$4 sm:$0xff]  }
  0x2e   : > { %760 = vmatpush1.bf16.msra.mxu1 %v1229_v15  ;;  %v1247_v27 = vld [vmem:[%s1438_s7 + $0x40] ss:$8 sps:$4 sm:$0xff]   ;;  %v1249_v29 = vld [vmem:[%s1438_s7 + $0x54] ss:$8 sps:$4 sm:$0xff]   ;;  %v1253_v31 = vld [vmem:[%s1438_s7 + $0x50] ss:$8 sps:$4 sm:$0xff]  }
  0x2f   : > { %813 = vmatpush1.bf16.msra.mxu0 %v1230_v16  ;;  %761 = vmatprep.subr.bf16.mxu1 %v1231_v17  ;;  %v1248_v28 = vld [vmem:[%s1438_s7 + $0x140] ss:$8 sps:$4 sm:$0xff]   ;;  %v1251_v30 = vld [vmem:[%s1438_s7 + $0x154] ss:$8 sps:$4 sm:$0xff]   ;;  %v1254_v32 = vld [vmem:[%s1438_s7 + $0x150] ss:$8 sps:$4 sm:$0xff]  }
  0x30   : > { %814 = vmatprep.subr.bf16.mxu0 %v1233_v18  ;;  %v1255_v33 = vld [vmem:[%s1438_s7 + $0x64] ss:$8 sps:$4 sm:$0xff]   ;;  %v1259_v35 = vld [vmem:[%s1438_s7 + $0x60] ss:$8 sps:$4 sm:$0xff]   ;;  %v1261_v37 = vld [vmem:[%s1438_s7 + $0x74] ss:$8 sps:$4 sm:$0xff]  }
  0x31   : > { %v1257_v34 = vld [vmem:[%s1438_s7 + $0x164] ss:$8 sps:$4 sm:$0xff]   ;;  %v1260_v36 = vld [vmem:[%s1438_s7 + $0x160] ss:$8 sps:$4 sm:$0xff]   ;;  %v1263_v38 = vld [vmem:[%s1438_s7 + $0x174] ss:$8 sps:$4 sm:$0xff]  }
  0x32   : > { %762 = vmatpush1.bf16.msra.mxu1 %v1235_v19  ;;  %v1265_v39 = vld [vmem:[%s1438_s7 + $0x70] ss:$8 sps:$4 sm:$0xff]   ;;  %v1267_v41 = vld [vmem:[%s1438_s7 + $0x84] ss:$8 sps:$4 sm:$0xff]   ;;  %v1271_v43 = vld [vmem:[%s1438_s7 + $0x80] ss:$8 sps:$4 sm:$0xff]  }
  0x33   : > { %815 = vmatpush1.bf16.msra.mxu0 %v1236_v20  ;;  %763 = vmatprep.subr.bf16.mxu1 %v1237_v21  ;;  %v1266_v40 = vld [vmem:[%s1438_s7 + $0x170] ss:$8 sps:$4 sm:$0xff]   ;;  %v1269_v42 = vld [vmem:[%s1438_s7 + $0x184] ss:$8 sps:$4 sm:$0xff]   ;;  %v1272_v44 = vld [vmem:[%s1438_s7 + $0x180] ss:$8 sps:$4 sm:$0xff]  }
  0x34   : > { %816 = vmatprep.subr.bf16.mxu0 %v1239_v22  ;;  %v1273_v45 = vld [vmem:[%s1438_s7 + $0x94] ss:$8 sps:$4 sm:$0xff]   ;;  %v1277_v47 = vld [vmem:[%s1438_s7 + $0x90] ss:$8 sps:$4 sm:$0xff]   ;;  %v1279_v49 = vld [vmem:[%s1438_s7 + $0xa4] ss:$8 sps:$4 sm:$0xff]  }
  0x35   : > { %v1275_v46 = vld [vmem:[%s1438_s7 + $0x194] ss:$8 sps:$4 sm:$0xff]   ;;  %v1278_v48 = vld [vmem:[%s1438_s7 + $0x190] ss:$8 sps:$4 sm:$0xff]   ;;  %v1281_v50 = vld [vmem:[%s1438_s7 + $0x1a4] ss:$8 sps:$4 sm:$0xff]  }
  0x36   : > { %764 = vmatpush1.bf16.msra.mxu1 %v1241_v23  ;;  %v1283_v51 = vld [vmem:[%s1438_s7 + $0xa0] ss:$8 sps:$4 sm:$0xff]   ;;  %v1285_v53 = vld [vmem:[%s1438_s7 + $0xb4] ss:$8 sps:$4 sm:$0xff]   ;;  %v1289_v55 = vld [vmem:[%s1438_s7 + $0xb0] ss:$8 sps:$4 sm:$0xff]  }
  0x37   : > { %817 = vmatpush1.bf16.msra.mxu0 %v1242_v24  ;;  %765 = vmatprep.subr.bf16.mxu1 %v1243_v25  ;;  %v1284_v52 = vld [vmem:[%s1438_s7 + $0x1a0] ss:$8 sps:$4 sm:$0xff]   ;;  %v1287_v54 = vld [vmem:[%s1438_s7 + $0x1b4] ss:$8 sps:$4 sm:$0xff]   ;;  %v1290_v56 = vld [vmem:[%s1438_s7 + $0x1b0] ss:$8 sps:$4 sm:$0xff]  }
  0x38   : > { %818 = vmatprep.subr.bf16.mxu0 %v1245_v26  ;;  %v1291_v57 = vld [vmem:[%s1438_s7 + $0xc4] ss:$8 sps:$4 sm:$0xff]   ;;  %v1295_v61 = vld [vmem:[%s1438_s7 + $0xc0] ss:$8 sps:$4 sm:$0xff]   ;;  %v1297_v63 = vld [vmem:[%s1438_s7 + $0xd4] ss:$8 sps:$4 sm:$0xff]  }
  0x39   : > { %v1317_v58 = vld [vmem:[%s1440_s8 + $0x4] ss:$16 sps:$4 sm:$0xff]   ;;  %v1320_v60 = vld [vmem:[%s1440_s8 + $0xc] ss:$16 sps:$4 sm:$0xff]   ;;  %v1296_v62 = vld [vmem:[%s1438_s7 + $0x1c0] ss:$8 sps:$4 sm:$0xff]  }
  0x3a   : > { %766 = vmatpush1.bf16.msra.mxu1 %v1247_v27  ;;  %v1293_v59 = vld [vmem:[%s1438_s7 + $0x1c4] ss:$8 sps:$4 sm:$0xff]   ;;  %789 = vmatprep.mubr.bf16.mxu1 %v1317_v58  ;;  %v1299_v0 = vld [vmem:[%s1438_s7 + $0x1d4] ss:$8 sps:$4 sm:$0xff]   ;;  %v1301_v1 = vld [vmem:[%s1438_s7 + $0xd0] ss:$8 sps:$4 sm:$0xff]  }
  0x3b   : > { %819 = vmatpush1.bf16.msra.mxu0 %v1248_v28  ;;  %767 = vmatprep.subr.bf16.mxu1 %v1249_v29  ;;  %v1302_v2 = vld [vmem:[%s1438_s7 + $0x1d0] ss:$8 sps:$4 sm:$0xff]   ;;  %v1303_v3 = vld [vmem:[%s1438_s7 + $0xe4] ss:$8 sps:$4 sm:$0xff]   ;;  %v1307_v5 = vld [vmem:[%s1438_s7 + $0xe0] ss:$8 sps:$4 sm:$0xff]  }
  0x3c   : > { %820 = vmatprep.subr.bf16.mxu0 %v1251_v30  ;;  %842 = vmatprep.mubr.bf16.mxu0 %v1320_v60  ;;  %v1305_v4 = vld [vmem:[%s1438_s7 + $0x1e4] ss:$8 sps:$4 sm:$0xff]   ;;  %v1308_v6 = vld [vmem:[%s1438_s7 + $0x1e0] ss:$8 sps:$4 sm:$0xff]   ;;  %v1309_v7 = vld [vmem:[%s1438_s7 + $0xf4] ss:$8 sps:$4 sm:$0xff]  }
  0x3d   : > { %v1311_v8 = vld [vmem:[%s1438_s7 + $0x1f4] ss:$8 sps:$4 sm:$0xff]   ;;  %v1313_v9 = vld [vmem:[%s1438_s7 + $0xf0] ss:$8 sps:$4 sm:$0xff]   ;;  %v317_v18 = vld [vmem:[#allocation2] sm:$0xff]  ;;  %p1155_p11 = scmp.ne.s32.totalorder %s1357_s14, 2 }
  0x3e   : > { %768 = vmatpush1.bf16.msra.mxu1 %v1253_v31  ;;  %v1314_v10 = vld [vmem:[%s1438_s7 + $0x1f0] ss:$8 sps:$4 sm:$0xff]   ;;  %v1321_v13 = vld [vmem:[%s1440_s8 + $0x24] ss:$16 sps:$4 sm:$0xff]   ;;  %v1323_v14 = vld [vmem:[%s1440_s8 + $0x2c] ss:$16 sps:$4 sm:$0xff]  }
  0x3f   : > { %821 = vmatpush1.bf16.msra.mxu0 %v1254_v32  ;;  %769 = vmatprep.subr.bf16.mxu1 %v1255_v33  ;;  %v1315_v11 = vld [vmem:[%s1440_s8] ss:$16 sps:$4 sm:$0xff]   ;;  %v1318_v12 = vld [vmem:[%s1440_s8 + $0x8] ss:$16 sps:$4 sm:$0xff]  }
  0x40   : > { %822 = vmatprep.subr.bf16.mxu0 %v1257_v34  ;;  %v1325_v15 = vld [vmem:[%s1440_s8 + $0x20] ss:$16 sps:$4 sm:$0xff]   ;;  %v1326_v16 = vld [vmem:[%s1440_s8 + $0x28] ss:$16 sps:$4 sm:$0xff]  }
  0x41   : > { %v318_v22 = vld [vmem:[#allocation2 + $0x8] sm:$0xff]  ;;  %v319_v26 = vld [vmem:[#allocation2 + $0x10] sm:$0xff]  ;;  %v320_v31 = vld [vmem:[#allocation2 + $0x18] sm:$0xff] }
  0x42   : > { %770 = vmatpush1.bf16.msra.mxu1 %v1259_v35 }
  0x43   : > { %823 = vmatpush1.bf16.msra.mxu0 %v1260_v36  ;;  %771 = vmatprep.subr.bf16.mxu1 %v1261_v37 }
  0x44   : > { %824 = vmatprep.subr.bf16.mxu0 %v1263_v38  ;;  %v321_v38 = vld [vmem:[#allocation2 + $0x20] sm:$0xff] }
  0x46   : > { %772 = vmatpush1.bf16.msra.mxu1 %v1265_v39 }
  0x47   : > { %825 = vmatpush1.bf16.msra.mxu0 %v1266_v40  ;;  %773 = vmatprep.subr.bf16.mxu1 %v1267_v41 }
  0x48   : > { %826 = vmatprep.subr.bf16.mxu0 %v1269_v42  ;;  %v322_v42 = vld [vmem:[#allocation2 + $0x28] sm:$0xff] }
  0x4a   : > { %774 = vmatpush1.bf16.msra.mxu1 %v1271_v43 }
  0x4b   : > { %827 = vmatpush1.bf16.msra.mxu0 %v1272_v44  ;;  %775 = vmatprep.subr.bf16.mxu1 %v1273_v45 }
  0x4c   : > { %828 = vmatprep.subr.bf16.mxu0 %v1275_v46  ;;  %v323_v46 = vld [vmem:[#allocation2 + $0x30] sm:$0xff] }
  0x4e   : > { %776 = vmatpush1.bf16.msra.mxu1 %v1277_v47 }
  0x4f   : > { %829 = vmatpush1.bf16.msra.mxu0 %v1278_v48  ;;  %777 = vmatprep.subr.bf16.mxu1 %v1279_v49 }
  0x50   : > { %830 = vmatprep.subr.bf16.mxu0 %v1281_v50 }
  0x52   : > { %778 = vmatpush1.bf16.msra.mxu1 %v1283_v51  ;;  %v324_v51 = vld [vmem:[#allocation2 + $0x38] sm:$0xff] }
  0x53   : > { %831 = vmatpush1.bf16.msra.mxu0 %v1284_v52  ;;  %779 = vmatprep.subr.bf16.mxu1 %v1285_v53 }
  0x54   : > { %832 = vmatprep.subr.bf16.mxu0 %v1287_v54 }
  0x56   : > { %780 = vmatpush1.bf16.msra.mxu1 %v1289_v55 }
  0x57   : > { %833 = vmatpush1.bf16.msra.mxu0 %v1290_v56  ;;  %781 = vmatprep.subr.bf16.mxu1 %v1291_v57  ;;  %v893_v57 = vlaneseq (!%p1155_p11) }
  0x58   : > { %834 = vmatprep.subr.bf16.mxu0 %v1293_v59  ;;  %v891_v59 = vld [vmem:[%s1548_s2] sm:$0x3] (!%p1155_p11) }
  0x59   : > { %v894_v58 = vshrl.u32 (!%p1155_p11), %v893_v57, 7 }
  0x5a   : > { %782 = vmatpush1.bf16.msra.mxu1 %v1295_v61 }
  0x5b   : > { %835 = vmatpush1.bf16.msra.mxu0 %v1296_v62  ;;  %783 = vmatprep.subr.bf16.mxu1 %v1297_v63  ;;  %v895_v62 = vsub.s32 (!%p1155_p11), 0, %v894_v58  ;;  %v899_v63 = vsub.s32 (!%p1155_p11), 1, %v894_v58 }
  0x5c   : > { %836 = vmatprep.subr.bf16.mxu0 %v1299_v0 }
  0x5e   : > { %784 = vmatpush1.bf16.msra.mxu1 %v1301_v1 }
  0x5f   : > { %837 = vmatpush1.bf16.msra.mxu0 %v1302_v2  ;;  %785 = vmatprep.subr.bf16.mxu1 %v1303_v3  ;;  %v896_v3 = vrot.slane (!%p1155_p11), %v891_v59, %v895_v62 }
  0x60   : > { %838 = vmatprep.subr.bf16.mxu0 %v1305_v4  ;;  %v900_v4 = vrot.slane (!%p1155_p11), %v891_v59, %v899_v63 }
  0x62   : > { %786 = vmatpush1.bf16.msra.mxu1 %v1307_v5 }
  0x63   : > { %839 = vmatpush1.bf16.msra.mxu0 %v1308_v6  ;;  %787 = vmatprep.subr.bf16.mxu1 %v1309_v7 }
  0x64   : > { %840 = vmatprep.subr.bf16.mxu0 %v1311_v8 }
  0x66   : > { %788 = vmatpush1.bf16.msra.mxu1 %v1313_v9 }
  0x67   : > { %841 = vmatpush1.bf16.msra.mxu0 %v1314_v10 }
  0x69   : > { %790 = vmatmul.mubr.bf16.vlgmr.msra.gmra.mrb[0].mxu1 %v1315_v11 }
  0x6a   : > { %843 = vmatmul.mubr.bf16.vlgmr.msra.gmra.mrb[0].mxu0 %v1318_v12  ;;  %799 = vmatprep.mubr.bf16.mxu1 %v1321_v13 }
  0x6b   : > { %852 = vmatprep.mubr.bf16.mxu0 %v1323_v14 }
  0x71   : > { %800 = vmatmul.mubr.bf16.gmra.mrb[4].mxu1 %v1325_v15 }
  0x72   : > { %853 = vmatmul.mubr.bf16.gmra.mrb[4].mxu0 %v1326_v16 }
 0x13c   : > { %v791_v17 = vpop.f32.mrb[0].mxu1 }
 0x13d   : > { %v844_v19 = vpop.f32.mrb[0].mxu0  ;;  %v793_v21 = vpop.f32.mrb[1].mxu1 }
 0x13e   : > { %v845_v20 = vadd.f32 %v844_v19, %v791_v17  ;;  %v846_v23 = vpop.f32.mrb[1].mxu0  ;;  %v795_v25 = vpop.f32.mrb[2].mxu1 }
 0x13f   : > { %v847_v24 = vadd.f32 %v846_v23, %v793_v21  ;;  %v848_v27 = vpop.f32.mrb[2].mxu0  ;;  %v797_v30 = vpop.f32.mrb[3].mxu1 }
 0x140   : > { %v863_v28 = vadd.f32 %v845_v20, %v317_v18  ;;  %v849_v29 = vadd.f32 %v848_v27, %v795_v25  ;;  %v850_v32 = vpop.f32.mrb[3].mxu0 }
 0x141   : > { %v864_v33 = vadd.f32 %v847_v24, %v318_v22  ;;  %v851_v34 = vadd.f32 %v850_v32, %v797_v30 }
 0x142   : > { %871 = vst [vmem:[#allocation2] sm:$0xff] %v863_v28  ;;  %v865_v35 = vadd.f32 %v849_v29, %v319_v26 }
 0x143   : > { %872 = vst [vmem:[#allocation2 + $0x8] sm:$0xff] %v864_v33  ;;  %v866_v36 = vadd.f32 %v851_v34, %v320_v31 }
 0x144   : > { %873 = vst [vmem:[#allocation2 + $0x10] sm:$0xff] %v865_v35  ;;  %v801_v37 = vpop.f32.mrb[4].mxu1 }
 0x145   : > { %874 = vst [vmem:[#allocation2 + $0x18] sm:$0xff] %v866_v36  ;;  %v854_v39 = vpop.f32.mrb[4].mxu0  ;;  %v803_v41 = vpop.f32.mrb[5].mxu1 }
 0x146   : > { %v855_v40 = vadd.f32 %v854_v39, %v801_v37  ;;  %v856_v43 = vpop.f32.mrb[5].mxu0  ;;  %v805_v45 = vpop.f32.mrb[6].mxu1 }
 0x147   : > { %v857_v44 = vadd.f32 %v856_v43, %v803_v41  ;;  %v858_v47 = vpop.f32.mrb[6].mxu0  ;;  %v807_v50 = vpop.f32.mrb[7].mxu1  ;;  %882 = sbr.rel (%p1155_p11) target bundleno = 348 (0x15c), region = 63 }
 0x148   : > { %v867_v48 = vadd.f32 %v855_v40, %v321_v38  ;;  %v859_v49 = vadd.f32 %v858_v47, %v805_v45  ;;  %v860_v52 = vpop.f32.mrb[7].mxu0 }
 0x149   : > { %v868_v53 = vadd.f32 %v857_v44, %v322_v42  ;;  %v861_v54 = vadd.f32 %v860_v52, %v807_v50  ;;  %v883_v60 = vld [vmem:[#allocation2] sm:$0xff] (!%p1155_p11) }
 0x14a   : > { %875 = vst [vmem:[#allocation2 + $0x20] sm:$0xff] %v867_v48  ;;  %v869_v55 = vadd.f32 %v859_v49, %v323_v46  ;;  %v884_v61 = vld [vmem:[#allocation2 + $0x8] sm:$0xff] (!%p1155_p11)  ;;  %v903_v8 = vadd.f32 (!%p1155_p11), %v896_v3, %v883_v60 }
 0x14b   : > { %876 = vst [vmem:[#allocation2 + $0x28] sm:$0xff] %v868_v53  ;;  %v870_v56 = vadd.f32 %v861_v54, %v324_v51  ;;  %v885_v0 = vld [vmem:[#allocation2 + $0x10] sm:$0xff] (!%p1155_p11)  ;;  %v904_v9 = vadd.f32 (!%p1155_p11), %v900_v4, %v884_v61 }
 0x14c   : > { %877 = vst [vmem:[#allocation2 + $0x30] sm:$0xff] %v869_v55  ;;  %v886_v1 = vld [vmem:[#allocation2 + $0x18] sm:$0xff] (!%p1155_p11)  ;;  %v905_v10 = vadd.f32 (!%p1155_p11), %v896_v3, %v885_v0  ;;  %v911_v16 = vmax.f32 (!%p1155_p11), %v903_v8, 0.0 }
 0x14d   : > { %878 = vst [vmem:[#allocation2 + $0x38] sm:$0xff] %v870_v56  ;;  %v906_v11 = vadd.f32 (!%p1155_p11), %v900_v4, %v886_v1  ;;  %v912_v17 = vmax.f32 (!%p1155_p11), %v904_v9, 0.0 }
 0x14e   : > { %v913_v18 = vmax.f32 %v905_v10, 0.0 }
 0x14f   : > { %v914_v19 = vmax.f32 %v906_v11, 0.0  ;;  %v1166_v24 = vpack.c.bf16 %v912_v17, %v911_v16 }
 0x151   : > { %v887_v2 = vld [vmem:[#allocation2 + $0x20] sm:$0xff]  ;;  %v1167_v25 = vpack.c.bf16 %v914_v19, %v913_v18  ;;  %943 = vst [vmem:[%s1549_s3] sm:$0xff] %v1166_v24 }
 0x152   : > { %v888_v5 = vld [vmem:[#allocation2 + $0x28] sm:$0xff]  ;;  %v907_v12 = vadd.f32 %v896_v3, %v887_v2 }
 0x153   : > { %v889_v6 = vld [vmem:[#allocation2 + $0x30] sm:$0xff]  ;;  %v908_v13 = vadd.f32 %v900_v4, %v888_v5  ;;  %944 = vst [vmem:[%s1549_s3 + $0x8] sm:$0xff] %v1167_v25 }
 0x154   : > { %v890_v7 = vld [vmem:[#allocation2 + $0x38] sm:$0xff]  ;;  %v909_v14 = vadd.f32 %v896_v3, %v889_v6  ;;  %v915_v20 = vmax.f32 %v907_v12, 0.0 }
 0x155   : > { %v910_v15 = vadd.f32 %v900_v4, %v890_v7  ;;  %v916_v21 = vmax.f32 %v908_v13, 0.0 }
 0x156   : > { %v917_v22 = vmax.f32 %v909_v14, 0.0 }
 0x157   : > { %v918_v23 = vmax.f32 %v910_v15, 0.0  ;;  %v1168_v26 = vpack.c.bf16 %v916_v21, %v915_v20 }
 0x159   : > { %v1169_v27 = vpack.c.bf16 %v918_v23, %v917_v22  ;;  %945 = vst [vmem:[%s1549_s3 + $0x10] sm:$0xff] %v1168_v26 }
 0x15b   : > { %946 = vst [vmem:[%s1549_s3 + $0x18] sm:$0xff] %v1169_v27 }
 0x15c PF: > { %s13_s16 = sadd.s32 1, %s1365_s16   ;;  %s1550_s12 = smov %s1353_s13 }
 0x15d   : > { %p10_p12 = scmp.ge.s32.totalorder %s13_s16, 5   ;;  %s1551_s13 = smov %s1423_s20 }
 0x15e   : > { %s1552_s14 = smov %s1361_s15  ;;  %s1553_s15 = smov %s1555_s17 }
 0x15f   :  { %12 = sbr.rel (!%p10_p12) target bundleno = 3 (0x3), region = 104 }

// kernel: model_forward.19
= control target key start
LH: loop header
LB: loop body
LE: loop exit
PB: predicated region body
PF: predicated region fallthrough
CT: control target
= control target key end

     0   :  { %s1801_s12 = smov 0   ;;  %s1803_s13 = smov 0   ;;  %s2073_s0 = inlined_call_operand.vmem [shape: bf16[128,1024], index: 0, kind: input, shape index: {}]   ;;  %s2074_s1 = inlined_call_operand.vmem [shape: bf16[1024,128], index: 1, kind: input, shape index: {}]   ;;  %s2075_s2 = inlined_call_operand.vmem [shape: f32[1,128], index: 2, kind: input, shape index: {}]   ;;  %s2076_s3 = inlined_call_operand.vmem [shape: f32[128,128], index: 3, kind: output, shape index: {}]  }
   0x1   :  { %s1805_s14 = smov 0   ;;  %s1807_s15 = smov 0  }
   0x2   :  { %s1809_s16 = smov 0  }
   0x3 LB: > { %s25_s17 = sadd.s32 1, %s1774_s15  ;;  %p48_p1 = scmp.ne.s32.totalorder %s1766_s13, %s1762_s12  ;;  %s1778_s16 = sphi %s1809_s16, %s13_s16   ;;  %s1774_s15 = sphi %s1807_s15, %s2080_s15   ;;  %s1770_s14 = sphi %s1805_s14, %s2079_s14   ;;  %s1766_s13 = sphi %s1803_s13, %s2078_s13   ;;  %s1762_s12 = sphi %s1801_s12, %s2077_s12  }
   0x4   : > { %p26_p0 = scmp.ge.s32.totalorder %s25_s17, 2  ;;  %p49_p2 = scmp.eq.s32.totalorder %s1778_s16, 0 }
   0x5   : > { %s41_s19 = sadd.s32 1, %s1766_s13  ;;  %p1347_p5 = scmp.ge.s32.totalorder %s1778_s16, 2 }
   0x6   : > { %s2082_s17 = smov (%p26_p0, %s25_s17), 0  ;;  %p50_p3 = por %p49_p2, %p48_p1 }
   0x7   : > { %s37_s18 = ssub.s32 %s1774_s15, %s2082_s17  ;;  %162 = sbr.rel (%p1347_p5) target bundleno = 34 (0x22), region = 20 }
   0x8   : > { %p39_p4 = scmp.eq.s32.totalorder %s37_s18, 0 }
   0xa   : > { %s1836_s20 = scalar_select %p39_p4, %s1766_s13, %s41_s19  }
   0xe   : > { %165 = sbr.rel (!%p50_p3) target bundleno = 34 (0x22), region = 24  ;;  %s167_s21 = sand.u32 (%p50_p3), 1, %s1766_s13  }
   0xf   : > { %s1426_s22 = sshll.u32 (%p50_p3), %s1774_s15, 4  ;;  %s1348_s23 = sshll.u32 (%p50_p3), %s167_s21, 8 }
  0x10   : > { %s1844_s26 = scalar_lea.vmem (%p50_p3), %s2073_s0, %s1426_s22  ;;  %s1849_s27 = scalar_lea.vmem (%p50_p3), [#allocation3], %s1348_s23 }
  0x11   : > { %v188_v0 = vld [vmem:[%s1844_s26] sm:$0xff] (%p50_p3)  ;;  %v190_v1 = vld [vmem:[%s1844_s26 + $0x8] sm:$0xff] (%p50_p3) }
  0x12   : > { %v192_v2 = vld [vmem:[%s1844_s26 + $0x20] sm:$0xff] (%p50_p3)  ;;  %189 = vst [vmem:[%s1849_s27] sm:$0xff] (%p50_p3), %v188_v0  ;;  %191 = vst [vmem:[%s1849_s27 + $0x8] sm:$0xff] (%p50_p3), %v190_v1  ;;  %v194_v3 = vld [vmem:[%s1844_s26 + $0x28] sm:$0xff] (%p50_p3) }
  0x13   : > { %193 = vst [vmem:[%s1849_s27 + $0x10] sm:$0xff] (%p50_p3), %v192_v2  ;;  %v196_v4 = vld [vmem:[%s1844_s26 + $0x40] sm:$0xff] (%p50_p3)  ;;  %v198_v5 = vld [vmem:[%s1844_s26 + $0x48] sm:$0xff] (%p50_p3)  ;;  %195 = vst [vmem:[%s1849_s27 + $0x18] sm:$0xff] (%p50_p3), %v194_v3 }
  0x14   : > { %197 = vst [vmem:[%s1849_s27 + $0x20] sm:$0xff] (%p50_p3), %v196_v4  ;;  %199 = vst [vmem:[%s1849_s27 + $0x28] sm:$0xff] (%p50_p3), %v198_v5  ;;  %v200_v6 = vld [vmem:[%s1844_s26 + $0x60] sm:$0xff] (%p50_p3)  ;;  %v202_v7 = vld [vmem:[%s1844_s26 + $0x68] sm:$0xff] (%p50_p3) }
  0x15   : > { %v204_v8 = vld [vmem:[%s1844_s26 + $0x80] sm:$0xff]  ;;  %201 = vst [vmem:[%s1849_s27 + $0x30] sm:$0xff] %v200_v6  ;;  %203 = vst [vmem:[%s1849_s27 + $0x38] sm:$0xff] %v202_v7  ;;  %v206_v9 = vld [vmem:[%s1844_s26 + $0x88] sm:$0xff] }
  0x16   : > { %205 = vst [vmem:[%s1849_s27 + $0x40] sm:$0xff] %v204_v8  ;;  %v208_v10 = vld [vmem:[%s1844_s26 + $0xa0] sm:$0xff]  ;;  %v210_v11 = vld [vmem:[%s1844_s26 + $0xa8] sm:$0xff]  ;;  %207 = vst [vmem:[%s1849_s27 + $0x48] sm:$0xff] %v206_v9 }
  0x17   : > { %209 = vst [vmem:[%s1849_s27 + $0x50] sm:$0xff] %v208_v10  ;;  %211 = vst [vmem:[%s1849_s27 + $0x58] sm:$0xff] %v210_v11  ;;  %v212_v12 = vld [vmem:[%s1844_s26 + $0xc0] sm:$0xff]  ;;  %v214_v13 = vld [vmem:[%s1844_s26 + $0xc8] sm:$0xff] }
  0x18   : > { %v216_v14 = vld [vmem:[%s1844_s26 + $0xe0] sm:$0xff]  ;;  %213 = vst [vmem:[%s1849_s27 + $0x60] sm:$0xff] %v212_v12  ;;  %215 = vst [vmem:[%s1849_s27 + $0x68] sm:$0xff] %v214_v13  ;;  %v218_v15 = vld [vmem:[%s1844_s26 + $0xe8] sm:$0xff] }
  0x19   : > { %217 = vst [vmem:[%s1849_s27 + $0x70] sm:$0xff] %v216_v14  ;;  %v220_v16 = vld [vmem:[%s1844_s26 + $0x100] sm:$0xff]  ;;  %v222_v17 = vld [vmem:[%s1844_s26 + $0x108] sm:$0xff]  ;;  %219 = vst [vmem:[%s1849_s27 + $0x78] sm:$0xff] %v218_v15 }
  0x1a   : > { %221 = vst [vmem:[%s1849_s27 + $0x80] sm:$0xff] %v220_v16  ;;  %223 = vst [vmem:[%s1849_s27 + $0x88] sm:$0xff] %v222_v17  ;;  %v224_v18 = vld [vmem:[%s1844_s26 + $0x120] sm:$0xff]  ;;  %v226_v19 = vld [vmem:[%s1844_s26 + $0x128] sm:$0xff] }
  0x1b   : > { %v228_v20 = vld [vmem:[%s1844_s26 + $0x140] sm:$0xff]  ;;  %225 = vst [vmem:[%s1849_s27 + $0x90] sm:$0xff] %v224_v18  ;;  %227 = vst [vmem:[%s1849_s27 + $0x98] sm:$0xff] %v226_v19  ;;  %v230_v21 = vld [vmem:[%s1844_s26 + $0x148] sm:$0xff] }
  0x1c   : > { %229 = vst [vmem:[%s1849_s27 + $0xa0] sm:$0xff] %v228_v20  ;;  %v232_v22 = vld [vmem:[%s1844_s26 + $0x160] sm:$0xff]  ;;  %v234_v23 = vld [vmem:[%s1844_s26 + $0x168] sm:$0xff]  ;;  %231 = vst [vmem:[%s1849_s27 + $0xa8] sm:$0xff] %v230_v21 }
  0x1d   : > { %233 = vst [vmem:[%s1849_s27 + $0xb0] sm:$0xff] %v232_v22  ;;  %235 = vst [vmem:[%s1849_s27 + $0xb8] sm:$0xff] %v234_v23  ;;  %v236_v24 = vld [vmem:[%s1844_s26 + $0x180] sm:$0xff]  ;;  %v238_v25 = vld [vmem:[%s1844_s26 + $0x188] sm:$0xff] }
  0x1e   : > { %v240_v26 = vld [vmem:[%s1844_s26 + $0x1a0] sm:$0xff]  ;;  %237 = vst [vmem:[%s1849_s27 + $0xc0] sm:$0xff] %v236_v24  ;;  %239 = vst [vmem:[%s1849_s27 + $0xc8] sm:$0xff] %v238_v25  ;;  %v242_v27 = vld [vmem:[%s1844_s26 + $0x1a8] sm:$0xff] }
  0x1f   : > { %241 = vst [vmem:[%s1849_s27 + $0xd0] sm:$0xff] %v240_v26  ;;  %v244_v28 = vld [vmem:[%s1844_s26 + $0x1c0] sm:$0xff]  ;;  %v246_v29 = vld [vmem:[%s1844_s26 + $0x1c8] sm:$0xff]  ;;  %243 = vst [vmem:[%s1849_s27 + $0xd8] sm:$0xff] %v242_v27 }
  0x20   : > { %245 = vst [vmem:[%s1849_s27 + $0xe0] sm:$0xff] %v244_v28  ;;  %247 = vst [vmem:[%s1849_s27 + $0xe8] sm:$0xff] %v246_v29  ;;  %v248_v30 = vld [vmem:[%s1844_s26 + $0x1e0] sm:$0xff]  ;;  %v250_v31 = vld [vmem:[%s1844_s26 + $0x1e8] sm:$0xff] }
  0x21   : > { %249 = vst [vmem:[%s1849_s27 + $0xf0] sm:$0xff] %v248_v30  ;;  %251 = vst [vmem:[%s1849_s27 + $0xf8] sm:$0xff] %v250_v31 }
  0x22 PF: > { %p1351_p6 = scmp.ge.s32.totalorder %s1778_s16, 1  ;;  %p268_p7 = scmp.lt.s32.totalorder %s1778_s16, 3 }
  0x24   : > { %p269_p8 = pnand %p1351_p6, %p268_p7 }
  0x25   : > { %s275_s28 = sand.u32 (!%p269_p8), 1, %s1762_s12   ;;  %s1353_s29 = sshll.u32 (!%p269_p8), %s1770_s14, 6 }
  0x26   : > { %272 = sbr.rel (%p269_p8) target bundleno = 418 (0x1a2), region = 51  ;;  %s1352_s30 = sshll.u32 (!%p269_p8), %s275_s28, 8 }
  0x27   : > { %p315_p9 = scmp.lt.s32.totalorder (!%p269_p8), %s1353_s29, 127  ;;  %s1921_s8 = scalar_lea.vmem (!%p269_p8), [#allocation3], %s1352_s30 }
  0x28   : > { %p1355_p10 = scmp.ne.s32.totalorder (!%p269_p8), %s1770_s14, 0 }
  0x2d   : > { %s2084_s29 = smov (!%p315_p9, %s1353_s29), 127  ;;  %339 = sbr.rel (%p1355_p10) target bundleno = 55 (0x37), region = 59 }
  0x2e   : > { %s1354_s4 = sshll.u32 %s2084_s29, 2  ;;  %v1780_v32 = vmov (!%p1355_p10), 0.0  }
  0x2f   : > { %s1919_s7 = scalar_lea.vmem %s2074_s1, %s1354_s4  ;;  %340 = vst [vmem:[#allocation2] sm:$0xff] (!%p1355_p10), %v1780_v32  ;;  %341 = vst [vmem:[#allocation2 + $0x8] sm:$0xff] (!%p1355_p10), %v1780_v32 }
  0x30   : > { %342 = vst [vmem:[#allocation2 + $0x10] sm:$0xff] (!%p1355_p10), %v1780_v32  ;;  %343 = vst [vmem:[#allocation2 + $0x18] sm:$0xff] (!%p1355_p10), %v1780_v32 }
  0x31   : > { %344 = vst [vmem:[#allocation2 + $0x20] sm:$0xff] (!%p1355_p10), %v1780_v32  ;;  %345 = vst [vmem:[#allocation2 + $0x28] sm:$0xff] (!%p1355_p10), %v1780_v32 }
  0x32   : > { %346 = vst [vmem:[#allocation2 + $0x30] sm:$0xff] (!%p1355_p10), %v1780_v32  ;;  %347 = vst [vmem:[#allocation2 + $0x38] sm:$0xff] (!%p1355_p10), %v1780_v32 }
  0x33   : > { %348 = vst [vmem:[#allocation2 + $0x40] sm:$0xff] (!%p1355_p10), %v1780_v32  ;;  %349 = vst [vmem:[#allocation2 + $0x48] sm:$0xff] (!%p1355_p10), %v1780_v32 }
  0x34   : > { %350 = vst [vmem:[#allocation2 + $0x50] sm:$0xff] %v1780_v32  ;;  %351 = vst [vmem:[#allocation2 + $0x58] sm:$0xff] %v1780_v32 }
  0x35   : > { %352 = vst [vmem:[#allocation2 + $0x60] sm:$0xff] %v1780_v32  ;;  %353 = vst [vmem:[#allocation2 + $0x68] sm:$0xff] %v1780_v32 }
  0x36   : > { %354 = vst [vmem:[#allocation2 + $0x70] sm:$0xff] %v1780_v32  ;;  %355 = vst [vmem:[#allocation2 + $0x78] sm:$0xff] %v1780_v32 }
  0x37 PF: > { %v1596_v33 = vld [vmem:[%s1919_s7 + $0x40] sm:$0xff]   ;;  %v1600_v37 = vld [vmem:[%s1919_s7 + $0x48] sm:$0xff]   ;;  %v1604_v41 = vld [vmem:[%s1919_s7 + $0x50] sm:$0xff]   ;;  %p1420_p11 = scmp.ne.s32.totalorder %s1770_s14, 1 }
  0x38   : > { %v1597_v34 = vld [vmem:[%s1919_s7 + $0xc0] sm:$0xff]   ;;  %1427 = vmatprep.subr.bf16.mxu0 %v1596_v33  ;;  %v1601_v38 = vld [vmem:[%s1919_s7 + $0xc8] sm:$0xff]   ;;  %v1605_v42 = vld [vmem:[%s1919_s7 + $0xd0] sm:$0xff]  }
  0x39   : > { %v1598_v35 = vld [vmem:[%s1919_s7] sm:$0xff]   ;;  %1491 = vmatprep.subr.bf16.mxu1 %v1597_v34  ;;  %v1602_v39 = vld [vmem:[%s1919_s7 + $0x8] sm:$0xff]   ;;  %v1606_v43 = vld [vmem:[%s1919_s7 + $0x10] sm:$0xff]  }
  0x3a   : > { %v1599_v36 = vld [vmem:[%s1919_s7 + $0x80] sm:$0xff]   ;;  %1428 = vmatpush3.bf16.msra.mxu0 %v1598_v35  ;;  %v1603_v40 = vld [vmem:[%s1919_s7 + $0x88] sm:$0xff]   ;;  %v1607_v44 = vld [vmem:[%s1919_s7 + $0x90] sm:$0xff]  }
  0x3b   : > { %1492 = vmatpush3.bf16.msra.mxu1 %v1599_v36  ;;  %1429 = vmatprep.subr.bf16.mxu0 %v1600_v37  ;;  %v1608_v45 = vld [vmem:[%s1919_s7 + $0x58] sm:$0xff]   ;;  %v1612_v49 = vld [vmem:[%s1919_s7 + $0x60] sm:$0xff]   ;;  %v1616_v53 = vld [vmem:[%s1919_s7 + $0x68] sm:$0xff]  }
  0x3c   : > { %1493 = vmatprep.subr.bf16.mxu1 %v1601_v38  ;;  %v1609_v46 = vld [vmem:[%s1919_s7 + $0xd8] sm:$0xff]   ;;  %v1613_v50 = vld [vmem:[%s1919_s7 + $0xe0] sm:$0xff]   ;;  %v1617_v54 = vld [vmem:[%s1919_s7 + $0xe8] sm:$0xff]  }
  0x3d   : > { %v1610_v47 = vld [vmem:[%s1919_s7 + $0x18] sm:$0xff]   ;;  %v1614_v51 = vld [vmem:[%s1919_s7 + $0x20] sm:$0xff]   ;;  %v1618_v55 = vld [vmem:[%s1919_s7 + $0x28] sm:$0xff]  }
  0x3e   : > { %1430 = vmatpush3.bf16.msra.mxu0 %v1602_v39  ;;  %v1611_v48 = vld [vmem:[%s1919_s7 + $0x98] sm:$0xff]   ;;  %v1615_v52 = vld [vmem:[%s1919_s7 + $0xa0] sm:$0xff]   ;;  %v1619_v56 = vld [vmem:[%s1919_s7 + $0xa8] sm:$0xff]  }
  0x3f   : > { %1494 = vmatpush3.bf16.msra.mxu1 %v1603_v40  ;;  %1431 = vmatprep.subr.bf16.mxu0 %v1604_v41  ;;  %v1620_v57 = vld [vmem:[%s1919_s7 + $0x70] sm:$0xff]   ;;  %v1624_v61 = vld [vmem:[%s1919_s7 + $0x78] sm:$0xff]  }
  0x40   : > { %1495 = vmatprep.subr.bf16.mxu1 %v1605_v42  ;;  %v1621_v58 = vld [vmem:[%s1919_s7 + $0xf0] sm:$0xff]   ;;  %v1625_v62 = vld [vmem:[%s1919_s7 + $0xf8] sm:$0xff]   ;;  %v356_v42 = vld [vmem:[#allocation2] sm:$0xff] }
  0x41   : > { %v1622_v59 = vld [vmem:[%s1919_s7 + $0x30] sm:$0xff]   ;;  %v1626_v63 = vld [vmem:[%s1919_s7 + $0x38] sm:$0xff]  }
  0x42   : > { %1432 = vmatpush3.bf16.msra.mxu0 %v1606_v43  ;;  %v1623_v60 = vld [vmem:[%s1919_s7 + $0xb0] sm:$0xff]   ;;  %v1627_v0 = vld [vmem:[%s1919_s7 + $0xb8] sm:$0xff]  }
  0x43   : > { %1496 = vmatpush3.bf16.msra.mxu1 %v1607_v44  ;;  %1433 = vmatprep.subr.bf16.mxu0 %v1608_v45  ;;  %v1628_v1 = vld [vmem:[%s1921_s8] ss:$16 sps:$4 sm:$0xff]   ;;  %v1630_v2 = vld [vmem:[%s1921_s8 + $0x4] ss:$16 sps:$4 sm:$0xff]   ;;  %v1631_v3 = vld [vmem:[%s1921_s8 + $0x8] ss:$16 sps:$4 sm:$0xff]  }
  0x44   : > { %1497 = vmatprep.subr.bf16.mxu1 %v1609_v46  ;;  %v1633_v4 = vld [vmem:[%s1921_s8 + $0xc] ss:$16 sps:$4 sm:$0xff]   ;;  %852 = vmatprep.mubr.bf16.mxu0 %v1630_v2  ;;  %v1634_v5 = vld [vmem:[%s1921_s8 + $0x24] ss:$16 sps:$4 sm:$0xff]   ;;  %v1638_v7 = vld [vmem:[%s1921_s8 + $0x20] ss:$16 sps:$4 sm:$0xff]  }
  0x45   : > { %949 = vmatprep.mubr.bf16.mxu1 %v1633_v4  ;;  %v1636_v6 = vld [vmem:[%s1921_s8 + $0x2c] ss:$16 sps:$4 sm:$0xff]   ;;  %v1639_v8 = vld [vmem:[%s1921_s8 + $0x28] ss:$16 sps:$4 sm:$0xff]   ;;  %v1640_v9 = vld [vmem:[%s1921_s8 + $0x44] ss:$16 sps:$4 sm:$0xff]  }
  0x46   : > { %1434 = vmatpush3.bf16.msra.mxu0 %v1610_v47  ;;  %v1642_v10 = vld [vmem:[%s1921_s8 + $0x4c] ss:$16 sps:$4 sm:$0xff]   ;;  %v1644_v11 = vld [vmem:[%s1921_s8 + $0x40] ss:$16 sps:$4 sm:$0xff]   ;;  %v1645_v12 = vld [vmem:[%s1921_s8 + $0x48] ss:$16 sps:$4 sm:$0xff]  }
  0x47   : > { %1498 = vmatpush3.bf16.msra.mxu1 %v1611_v48  ;;  %1435 = vmatprep.subr.bf16.mxu0 %v1612_v49  ;;  %v1646_v13 = vld [vmem:[%s1921_s8 + $0x64] ss:$16 sps:$4 sm:$0xff]   ;;  %v1648_v14 = vld [vmem:[%s1921_s8 + $0x6c] ss:$16 sps:$4 sm:$0xff]   ;;  %v1650_v15 = vld [vmem:[%s1921_s8 + $0x60] ss:$16 sps:$4 sm:$0xff]  }
  0x48   : > { %1499 = vmatprep.subr.bf16.mxu1 %v1613_v50  ;;  %v1651_v16 = vld [vmem:[%s1921_s8 + $0x68] ss:$16 sps:$4 sm:$0xff]   ;;  %v1652_v17 = vld [vmem:[%s1921_s8 + $0x84] ss:$16 sps:$4 sm:$0xff]   ;;  %v1654_v18 = vld [vmem:[%s1921_s8 + $0x8c] ss:$16 sps:$4 sm:$0xff]  }
  0x49   : > { %v1656_v19 = vld [vmem:[%s1921_s8 + $0x80] ss:$16 sps:$4 sm:$0xff]   ;;  %v1657_v20 = vld [vmem:[%s1921_s8 + $0x88] ss:$16 sps:$4 sm:$0xff]   ;;  %v1658_v21 = vld [vmem:[%s1921_s8 + $0xa4] ss:$16 sps:$4 sm:$0xff]  }
  0x4a   : > { %1436 = vmatpush3.bf16.msra.mxu0 %v1614_v51  ;;  %v1660_v22 = vld [vmem:[%s1921_s8 + $0xac] ss:$16 sps:$4 sm:$0xff]   ;;  %v1662_v23 = vld [vmem:[%s1921_s8 + $0xa0] ss:$16 sps:$4 sm:$0xff]   ;;  %v1663_v24 = vld [vmem:[%s1921_s8 + $0xa8] ss:$16 sps:$4 sm:$0xff]  }
  0x4b   : > { %1500 = vmatpush3.bf16.msra.mxu1 %v1615_v52  ;;  %1437 = vmatprep.subr.bf16.mxu0 %v1616_v53  ;;  %v1664_v25 = vld [vmem:[%s1921_s8 + $0xc4] ss:$16 sps:$4 sm:$0xff]   ;;  %v1666_v26 = vld [vmem:[%s1921_s8 + $0xcc] ss:$16 sps:$4 sm:$0xff]   ;;  %v1668_v27 = vld [vmem:[%s1921_s8 + $0xc0] ss:$16 sps:$4 sm:$0xff]  }
  0x4c   : > { %1501 = vmatprep.subr.bf16.mxu1 %v1617_v54  ;;  %v1669_v28 = vld [vmem:[%s1921_s8 + $0xc8] ss:$16 sps:$4 sm:$0xff]   ;;  %v1670_v29 = vld [vmem:[%s1921_s8 + $0xe4] ss:$16 sps:$4 sm:$0xff]   ;;  %v1672_v30 = vld [vmem:[%s1921_s8 + $0xec] ss:$16 sps:$4 sm:$0xff]  }
  0x4d   : > { %v1674_v31 = vld [vmem:[%s1921_s8 + $0xe0] ss:$16 sps:$4 sm:$0xff]   ;;  %v1675_v32 = vld [vmem:[%s1921_s8 + $0xe8] ss:$16 sps:$4 sm:$0xff]  }
  0x4e   : > { %1438 = vmatpush3.bf16.msra.mxu0 %v1618_v55  ;;  %v357_v47 = vld [vmem:[#allocation2 + $0x8] sm:$0xff] }
  0x4f   : > { %1502 = vmatpush3.bf16.msra.mxu1 %v1619_v56  ;;  %1439 = vmatprep.subr.bf16.mxu0 %v1620_v57 }
  0x50   : > { %1503 = vmatprep.subr.bf16.mxu1 %v1621_v58 }
  0x52   : > { %1440 = vmatpush3.bf16.msra.mxu0 %v1622_v59 }
  0x53   : > { %1504 = vmatpush3.bf16.msra.mxu1 %v1623_v60  ;;  %1441 = vmatprep.subr.bf16.mxu0 %v1624_v61  ;;  %v358_v60 = vld [vmem:[#allocation2 + $0x10] sm:$0xff] }
  0x54   : > { %1505 = vmatprep.subr.bf16.mxu1 %v1625_v62 }
  0x56   : > { %1442 = vmatpush3.bf16.msra.mxu0 %v1626_v63 }
  0x57   : > { %1506 = vmatpush3.bf16.msra.mxu1 %v1627_v0 }
  0x59   : > { %853 = vmatmul.mubr.bf16.vlgmr.msra.gmra.mrb[0].mxu0 %v1628_v1  ;;  %v359_v1 = vld [vmem:[#allocation2 + $0x18] sm:$0xff] }
  0x5a   : > { %950 = vmatmul.mubr.bf16.vlgmr.msra.gmra.mrb[0].mxu1 %v1631_v3  ;;  %860 = vmatprep.mubr.bf16.mxu0 %v1634_v5 }
  0x5b   : > { %957 = vmatprep.mubr.bf16.mxu1 %v1636_v6 }
  0x61   : > { %861 = vmatmul.mubr.bf16.gmra.mrb[4].mxu0 %v1638_v7 }
  0x62   : > { %958 = vmatmul.mubr.bf16.gmra.mrb[4].mxu1 %v1639_v8  ;;  %868 = vmatprep.mubr.bf16.mxu0 %v1640_v9 }
  0x63   : > { %965 = vmatprep.mubr.bf16.mxu1 %v1642_v10 }
  0x69   : > { %869 = vmatmul.mubr.bf16.gmra.mrb[8].mxu0 %v1644_v11 }
  0x6a   : > { %966 = vmatmul.mubr.bf16.gmra.mrb[8].mxu1 %v1645_v12  ;;  %876 = vmatprep.mubr.bf16.mxu0 %v1646_v13 }
  0x6b   : > { %973 = vmatprep.mubr.bf16.mxu1 %v1648_v14  ;;  %v360_v14 = vld [vmem:[#allocation2 + $0x20] sm:$0xff] }
  0x71   : > { %877 = vmatmul.mubr.bf16.gmra.mrb[12].mxu0 %v1650_v15 }
  0x72   : > { %974 = vmatmul.mubr.bf16.gmra.mrb[12].mxu1 %v1651_v16  ;;  %884 = vmatprep.mubr.bf16.mxu0 %v1652_v17 }
  0x73   : > { %981 = vmatprep.mubr.bf16.mxu1 %v1654_v18 }
  0x79   : > { %885 = vmatmul.mubr.bf16.gmra.mrb[16].mxu0 %v1656_v19  ;;  %v361_v19 = vld [vmem:[#allocation2 + $0x28] sm:$0xff] }
  0x7a   : > { %982 = vmatmul.mubr.bf16.gmra.mrb[16].mxu1 %v1657_v20  ;;  %892 = vmatprep.mubr.bf16.mxu0 %v1658_v21 }
  0x7b   : > { %989 = vmatprep.mubr.bf16.mxu1 %v1660_v22 }
  0x81   : > { %893 = vmatmul.mubr.bf16.gmra.mrb[20].mxu0 %v1662_v23 }
  0x82   : > { %990 = vmatmul.mubr.bf16.gmra.mrb[20].mxu1 %v1663_v24  ;;  %900 = vmatprep.mubr.bf16.mxu0 %v1664_v25 }
  0x83   : > { %997 = vmatprep.mubr.bf16.mxu1 %v1666_v26 }
  0x89   : > { %901 = vmatmul.mubr.bf16.gmra.mrb[24].mxu0 %v1668_v27 }
  0x8a   : > { %998 = vmatmul.mubr.bf16.gmra.mrb[24].mxu1 %v1669_v28  ;;  %908 = vmatprep.mubr.bf16.mxu0 %v1670_v29 }
  0x8b   : > { %1005 = vmatprep.mubr.bf16.mxu1 %v1672_v30 }
  0x91   : > { %909 = vmatmul.mubr.bf16.gmra.mrb[28].mxu0 %v1674_v31 }
  0x92   : > { %1006 = vmatmul.mubr.bf16.gmra.mrb[28].mxu1 %v1675_v32  ;;  %v362_v32 = vld [vmem:[#allocation2 + $0x30] sm:$0xff] }
 0x12c   : > { %v1443_v33 = vpop.f32.mrb[0].mxu0 }
 0x12d   : > { %v1507_v34 = vpop.f32.mrb[0].mxu1  ;;  %v1444_v35 = vpop.f32.mrb[1].mxu0 }
 0x12e   : > { %v1445_v36 = vadd.f32 %v1444_v35, %v1443_v33  ;;  %v1508_v37 = vpop.f32.mrb[1].mxu1  ;;  %v1446_v38 = vpop.f32.mrb[2].mxu0 }
 0x12f   : > { %v1509_v39 = vadd.f32 %v1508_v37, %v1507_v34  ;;  %v1510_v40 = vpop.f32.mrb[2].mxu1  ;;  %v1447_v41 = vpop.f32.mrb[3].mxu0  ;;  %v363_v37 = vld [vmem:[#allocation2 + $0x38] sm:$0xff] }
 0x130   : > { %v1448_v43 = vadd.f32 %v1447_v41, %v1446_v38  ;;  %v1511_v44 = vpop.f32.mrb[3].mxu1 }
 0x131   : > { %v952_v45 = vadd.f32 %v1509_v39, %v1445_v36  ;;  %v1512_v46 = vadd.f32 %v1511_v44, %v1510_v40 }
 0x133   : > { %v1014_v48 = vadd.f32 %v952_v45, %v356_v42  ;;  %v955_v49 = vadd.f32 %v1512_v46, %v1448_v43 }
 0x134   : > { %v1449_v50 = vpop.f32.mrb[4].mxu0 }
 0x135   : > { %1030 = vst [vmem:[#allocation2] sm:$0xff] %v1014_v48  ;;  %v1015_v51 = vadd.f32 %v955_v49, %v357_v47  ;;  %v1513_v52 = vpop.f32.mrb[4].mxu1  ;;  %v1450_v53 = vpop.f32.mrb[5].mxu0 }
 0x136   : > { %v1451_v54 = vadd.f32 %v1450_v53, %v1449_v50  ;;  %v1514_v55 = vpop.f32.mrb[5].mxu1  ;;  %v1452_v56 = vpop.f32.mrb[6].mxu0  ;;  %v364_v50 = vld [vmem:[#allocation2 + $0x40] sm:$0xff] }
 0x137   : > { %1031 = vst [vmem:[#allocation2 + $0x8] sm:$0xff] %v1015_v51  ;;  %v1515_v57 = vadd.f32 %v1514_v55, %v1513_v52  ;;  %v1516_v58 = vpop.f32.mrb[6].mxu1  ;;  %v1453_v59 = vpop.f32.mrb[7].mxu0  ;;  %v365_v55 = vld [vmem:[#allocation2 + $0x48] sm:$0xff] }
 0x138   : > { %v1454_v61 = vadd.f32 %v1453_v59, %v1452_v56  ;;  %v1517_v62 = vpop.f32.mrb[7].mxu1 }
 0x139   : > { %v960_v63 = vadd.f32 %v1515_v57, %v1451_v54  ;;  %v1518_v0 = vadd.f32 %v1517_v62, %v1516_v58 }
 0x13b   : > { %v1016_v2 = vadd.f32 %v960_v63, %v358_v60  ;;  %v963_v3 = vadd.f32 %v1518_v0, %v1454_v61 }
 0x13c   : > { %v1455_v4 = vpop.f32.mrb[8].mxu0 }
 0x13d   : > { %1032 = vst [vmem:[#allocation2 + $0x10] sm:$0xff] %v1016_v2  ;;  %v1017_v5 = vadd.f32 %v963_v3, %v359_v1  ;;  %v1519_v6 = vpop.f32.mrb[8].mxu1  ;;  %v1456_v7 = vpop.f32.mrb[9].mxu0 }
 0x13e   : > { %v1457_v8 = vadd.f32 %v1456_v7, %v1455_v4  ;;  %v1520_v9 = vpop.f32.mrb[9].mxu1  ;;  %v1458_v10 = vpop.f32.mrb[10].mxu0  ;;  %v366_v4 = vld [vmem:[#allocation2 + $0x50] sm:$0xff] }
 0x13f   : > { %1033 = vst [vmem:[#allocation2 + $0x18] sm:$0xff] %v1017_v5  ;;  %v1521_v11 = vadd.f32 %v1520_v9, %v1519_v6  ;;  %v1522_v12 = vpop.f32.mrb[10].mxu1  ;;  %v1459_v13 = vpop.f32.mrb[11].mxu0  ;;  %v367_v9 = vld [vmem:[#allocation2 + $0x58] sm:$0xff] }
 0x140   : > { %v1460_v15 = vadd.f32 %v1459_v13, %v1458_v10  ;;  %v1523_v16 = vpop.f32.mrb[11].mxu1 }
 0x141   : > { %v968_v17 = vadd.f32 %v1521_v11, %v1457_v8  ;;  %v1524_v18 = vadd.f32 %v1523_v16, %v1522_v12 }
 0x143   : > { %v1018_v20 = vadd.f32 %v968_v17, %v360_v14  ;;  %v971_v21 = vadd.f32 %v1524_v18, %v1460_v15 }
 0x144   : > { %v1461_v22 = vpop.f32.mrb[12].mxu0 }
 0x145   : > { %1034 = vst [vmem:[#allocation2 + $0x20] sm:$0xff] %v1018_v20  ;;  %v1019_v23 = vadd.f32 %v971_v21, %v361_v19  ;;  %v1525_v24 = vpop.f32.mrb[12].mxu1  ;;  %v1462_v25 = vpop.f32.mrb[13].mxu0 }
 0x146   : > { %v1463_v26 = vadd.f32 %v1462_v25, %v1461_v22  ;;  %v1526_v27 = vpop.f32.mrb[13].mxu1  ;;  %v1464_v28 = vpop.f32.mrb[14].mxu0  ;;  %v368_v22 = vld [vmem:[#allocation2 + $0x60] sm:$0xff] }
 0x147   : > { %1035 = vst [vmem:[#allocation2 + $0x28] sm:$0xff] %v1019_v23  ;;  %v1527_v29 = vadd.f32 %v1526_v27, %v1525_v24  ;;  %v1528_v30 = vpop.f32.mrb[14].mxu1  ;;  %v1465_v31 = vpop.f32.mrb[15].mxu0  ;;  %v369_v27 = vld [vmem:[#allocation2 + $0x68] sm:$0xff] }
 0x148   : > { %v1466_v33 = vadd.f32 %v1465_v31, %v1464_v28  ;;  %v1529_v34 = vpop.f32.mrb[15].mxu1 }
 0x149   : > { %v976_v35 = vadd.f32 %v1527_v29, %v1463_v26  ;;  %v1530_v36 = vadd.f32 %v1529_v34, %v1528_v30 }
 0x14b   : > { %v1020_v38 = vadd.f32 %v976_v35, %v362_v32  ;;  %v979_v39 = vadd.f32 %v1530_v36, %v1466_v33 }
 0x14c   : > { %v1467_v40 = vpop.f32.mrb[16].mxu0 }
 0x14d   : > { %1036 = vst [vmem:[#allocation2 + $0x30] sm:$0xff] %v1020_v38  ;;  %v1021_v41 = vadd.f32 %v979_v39, %v363_v37  ;;  %v1531_v42 = vpop.f32.mrb[16].mxu1  ;;  %v1468_v43 = vpop.f32.mrb[17].mxu0 }
 0x14e   : > { %v1469_v44 = vadd.f32 %v1468_v43, %v1467_v40  ;;  %v1532_v45 = vpop.f32.mrb[17].mxu1  ;;  %v1470_v46 = vpop.f32.mrb[18].mxu0  ;;  %v370_v40 = vld [vmem:[#allocation2 + $0x70] sm:$0xff] }
 0x14f   : > { %1037 = vst [vmem:[#allocation2 + $0x38] sm:$0xff] %v1021_v41  ;;  %v1533_v47 = vadd.f32 %v1532_v45, %v1531_v42  ;;  %v1534_v48 = vpop.f32.mrb[18].mxu1  ;;  %v1471_v49 = vpop.f32.mrb[19].mxu0  ;;  %v371_v45 = vld [vmem:[#allocation2 + $0x78] sm:$0xff] }
 0x150   : > { %v1472_v51 = vadd.f32 %v1471_v49, %v1470_v46  ;;  %v1535_v52 = vpop.f32.mrb[19].mxu1  ;;  %v1050_v49 = vld [vmem:[#allocation2] sm:$0xff] (!%p1420_p11) }
 0x151   : > { %v984_v53 = vadd.f32 %v1533_v47, %v1469_v44  ;;  %v1536_v54 = vadd.f32 %v1535_v52, %v1534_v48 }
 0x153   : > { %v1022_v56 = vadd.f32 %v984_v53, %v364_v50  ;;  %v987_v57 = vadd.f32 %v1536_v54, %v1472_v51  ;;  %v1992_v50 = vld [vmem:[%s2075_s2] ss:$0 sm:$0xff] (!%p1420_p11)  ;;  %v1051_v51 = vld [vmem:[#allocation2 + $0x8] sm:$0xff] (!%p1420_p11)  ;;  %v1052_v54 = vld [vmem:[#allocation2 + $0x10] sm:$0xff] (!%p1420_p11) }
 0x154   : > { %v1473_v58 = vpop.f32.mrb[20].mxu0  ;;  %v1073_v52 = vadd.f32 (!%p1420_p11), %v1992_v50, %v1050_v49  ;;  %v1074_v53 = vadd.f32 (!%p1420_p11), %v1992_v50, %v1051_v51 }
 0x155   : > { %1038 = vst [vmem:[#allocation2 + $0x40] sm:$0xff] %v1022_v56  ;;  %v1023_v59 = vadd.f32 %v987_v57, %v365_v55  ;;  %v1537_v60 = vpop.f32.mrb[20].mxu1  ;;  %v1474_v61 = vpop.f32.mrb[21].mxu0  ;;  %v1053_v55 = vld [vmem:[#allocation2 + $0x18] sm:$0xff] (!%p1420_p11)  ;;  %v1054_v56 = vld [vmem:[#allocation2 + $0x20] sm:$0xff] (!%p1420_p11)  ;;  %v1075_v57 = vadd.f32 (!%p1420_p11), %v1992_v50, %v1052_v54 }
 0x156   : > { %v1475_v62 = vadd.f32 %v1474_v61, %v1473_v58  ;;  %v1538_v63 = vpop.f32.mrb[21].mxu1  ;;  %v1476_v0 = vpop.f32.mrb[22].mxu0  ;;  %v1076_v58 = vadd.f32 (!%p1420_p11), %v1992_v50, %v1053_v55  ;;  %v1056_v61 = vld [vmem:[#allocation2 + $0x30] sm:$0xff] (!%p1420_p11) }
 0x157   : > { %1039 = vst [vmem:[#allocation2 + $0x48] sm:$0xff] %v1023_v59  ;;  %v1539_v1 = vadd.f32 %v1538_v63, %v1537_v60  ;;  %v1540_v2 = vpop.f32.mrb[22].mxu1  ;;  %v1477_v3 = vpop.f32.mrb[23].mxu0  ;;  %v1077_v59 = vadd.f32 (!%p1420_p11), %v1992_v50, %v1054_v56  ;;  %v1055_v60 = vld [vmem:[#allocation2 + $0x28] sm:$0xff] (!%p1420_p11)  ;;  %v1089_v63 = vsub.f32 (!%p1420_p11), 0.0, %v1073_v52 }
 0x158   : > { %v1478_v5 = vadd.f32 %v1477_v3, %v1476_v0  ;;  %v1541_v6 = vpop.f32.mrb[23].mxu1  ;;  %v1090_v0 = vsub.f32 (!%p1420_p11), 0.0, %v1074_v53  ;;  %v1091_v3 = vsub.f32 (!%p1420_p11), 0.0, %v1075_v57 }
 0x159   : > { %v992_v7 = vadd.f32 %v1539_v1, %v1475_v62  ;;  %v1542_v8 = vadd.f32 %v1541_v6, %v1540_v2  ;;  %v1057_v62 = vld [vmem:[#allocation2 + $0x38] sm:$0xff] (!%p1420_p11)  ;;  %v1078_v1 = vadd.f32 (!%p1420_p11), %v1992_v50, %v1055_v60  ;;  %v1079_v2 = vadd.f32 (!%p1420_p11), %v1992_v50, %v1056_v61 }
 0x15a   : > { %v1080_v6 = vadd.f32 (!%p1420_p11), %v1992_v50, %v1057_v62 }
 0x15b   : > { %v1024_v10 = vadd.f32 %v992_v7, %v366_v4  ;;  %v995_v11 = vadd.f32 %v1542_v8, %v1478_v5  ;;  %v1092_v4 = vsub.f32 (!%p1420_p11), 0.0, %v1076_v58  ;;  %v1093_v5 = vsub.f32 (!%p1420_p11), 0.0, %v1077_v59 }
 0x15c   : > { %v1479_v12 = vpop.f32.mrb[24].mxu0  ;;  %v1058_v7 = vld [vmem:[#allocation2 + $0x40] sm:$0xff] (!%p1420_p11)  ;;  %v1105_v8 = vmin.f32 (!%p1420_p11), %v1089_v63, 60.0 }
 0x15d   : > { %1040 = vst [vmem:[#allocation2 + $0x50] sm:$0xff] %v1024_v10  ;;  %v1025_v13 = vadd.f32 %v995_v11, %v367_v9  ;;  %v1543_v14 = vpop.f32.mrb[24].mxu1  ;;  %v1480_v15 = vpop.f32.mrb[25].mxu0  ;;  %v1106_v9 = vmin.f32 (!%p1420_p11), %v1090_v0, 60.0  ;;  %v1094_v10 = vsub.f32 (!%p1420_p11), 0.0, %v1078_v1  ;;  %v1095_v11 = vsub.f32 (!%p1420_p11), 0.0, %v1079_v2 }
 0x15e   : > { %v1481_v16 = vadd.f32 %v1480_v15, %v1479_v12  ;;  %v1544_v17 = vpop.f32.mrb[25].mxu1  ;;  %v1482_v18 = vpop.f32.mrb[26].mxu0  ;;  %v1059_v12 = vld [vmem:[#allocation2 + $0x48] sm:$0xff] (!%p1420_p11)  ;;  %v1108_v15 = vmin.f32 (!%p1420_p11), %v1092_v4, 60.0 }
 0x15f   : > { %1041 = vst [vmem:[#allocation2 + $0x58] sm:$0xff] %v1025_v13  ;;  %v1545_v19 = vadd.f32 %v1544_v17, %v1543_v14  ;;  %v1546_v20 = vpop.f32.mrb[26].mxu1  ;;  %v1483_v21 = vpop.f32.mrb[27].mxu0  ;;  %v1107_v14 = vmin.f32 (!%p1420_p11), %v1091_v3, 60.0  ;;  %v1096_v17 = vsub.f32 (!%p1420_p11), 0.0, %v1080_v6 }
 0x160   : > { %v1484_v23 = vadd.f32 %v1483_v21, %v1482_v18  ;;  %v1547_v24 = vpop.f32.mrb[27].mxu1  ;;  %v1123_v21 = vmul.f32 (!%p1420_p11), 1.442695, %v1106_v9 }
 0x161   : > { %v1000_v25 = vadd.f32 %v1545_v19, %v1481_v16  ;;  %v1548_v26 = vadd.f32 %v1547_v24, %v1546_v20  ;;  %v1109_v16 = vmin.f32 (!%p1420_p11), %v1093_v5, 60.0  ;;  %v1121_v20 = vmul.f32 (!%p1420_p11), 1.442695, %v1105_v8 }
 0x162   : > { %v1125_v24 = vmul.f32 (!%p1420_p11), 1.442695, %v1107_v14 }
 0x163   : > { %v1026_v28 = vadd.f32 %v1000_v25, %v368_v22  ;;  %v1003_v29 = vadd.f32 %v1548_v26, %v1484_v23  ;;  %v1110_v22 = vmin.f32 (!%p1420_p11), %v1094_v10, 60.0  ;;  %v1111_v23 = vmin.f32 (!%p1420_p11), %v1095_v11, 60.0 }
 0x164   : > { %v1485_v30 = vpop.f32.mrb[28].mxu0  ;;  %v1060_v13 = vld [vmem:[#allocation2 + $0x50] sm:$0xff] (!%p1420_p11)  ;;  %v1127_v25 = vmul.f32 (!%p1420_p11), 1.442695, %v1108_v15  ;;  %v1129_v26 = vmul.f32 (!%p1420_p11), 1.442695, %v1109_v16  ;;  %1676 = vpow2.f32 (!%p1420_p11), %v1121_v20 }
 0x165   : > { %1042 = vst [vmem:[#allocation2 + $0x60] sm:$0xff] %v1026_v28  ;;  %v1027_v31 = vadd.f32 %v1003_v29, %v369_v27  ;;  %v1549_v32 = vpop.f32.mrb[28].mxu1  ;;  %v1486_v33 = vpop.f32.mrb[29].mxu0  ;;  %v1081_v27 = vadd.f32 (!%p1420_p11), %v1992_v50, %v1058_v7  ;;  %v1131_v28 = vmul.f32 (!%p1420_p11), 1.442695, %v1110_v22  ;;  %1678 = vpow2.f32 (!%p1420_p11), %v1123_v21 }
 0x166   : > { %v1487_v34 = vadd.f32 %v1486_v33, %v1485_v30  ;;  %v1550_v35 = vpop.f32.mrb[29].mxu1  ;;  %v1488_v36 = vpop.f32.mrb[30].mxu0  ;;  %v1061_v18 = vld [vmem:[#allocation2 + $0x58] sm:$0xff] (!%p1420_p11)  ;;  %v1133_v29 = vmul.f32 (!%p1420_p11), 1.442695, %v1111_v23  ;;  %v1112_v30 = vmin.f32 (!%p1420_p11), %v1096_v17, 60.0  ;;  %v1083_v33 = vadd.f32 (!%p1420_p11), %v1992_v50, %v1060_v13 }
 0x167   : > { %1043 = vst [vmem:[#allocation2 + $0x68] sm:$0xff] %v1027_v31  ;;  %v1551_v37 = vadd.f32 %v1550_v35, %v1549_v32  ;;  %v1552_v38 = vpop.f32.mrb[30].mxu1  ;;  %v1489_v39 = vpop.f32.mrb[31].mxu0  ;;  %v1097_v31 = vsub.f32 (!%p1420_p11), 0.0, %v1081_v27  ;;  %v1082_v32 = vadd.f32 (!%p1420_p11), %v1992_v50, %v1059_v12  ;;  %1680 = vpow2.f32 (!%p1420_p11), %v1125_v24 }
 0x168   : > { %v1490_v41 = vadd.f32 %v1489_v39, %v1488_v36  ;;  %v1553_v42 = vpop.f32.mrb[31].mxu1  ;;  %v1084_v35 = vadd.f32 (!%p1420_p11), %v1992_v50, %v1061_v18  ;;  %1682 = vpow2.f32 (!%p1420_p11), %v1127_v25  ;;  %v1099_v39 = vsub.f32 (!%p1420_p11), 0.0, %v1083_v33 }
 0x169   : > { %v1008_v43 = vadd.f32 %v1551_v37, %v1487_v34  ;;  %v1554_v44 = vadd.f32 %v1553_v42, %v1552_v38  ;;  %1049 = sbr.rel (%p1420_p11) target bundleno = 418 (0x1a2), region = 63  ;;  %v1135_v34 = vmul.f32 (!%p1420_p11), 1.442695, %v1112_v30  ;;  %v1113_v37 = vmin.f32 (!%p1420_p11), %v1097_v31, 60.0 }
 0x16a   : > { %v1098_v38 = vsub.f32 (!%p1420_p11), 0.0, %v1082_v32  ;;  %1684 = vpow2.f32 (!%p1420_p11), %v1129_v26 }
 0x16b   : > { %v1028_v46 = vadd.f32 %v1008_v43, %v370_v40  ;;  %v1011_v47 = vadd.f32 %v1554_v44, %v1490_v41  ;;  %v1100_v40 = vsub.f32 (!%p1420_p11), 0.0, %v1084_v35  ;;  %1686 = vpow2.f32 (!%p1420_p11), %v1131_v28 }
 0x16c   : > { %v1062_v19 = vld [vmem:[#allocation2 + $0x60] sm:$0xff] (!%p1420_p11)  ;;  %v1137_v42 = vmul.f32 (!%p1420_p11), 1.442695, %v1113_v37  ;;  %v1114_v43 = vmin.f32 (!%p1420_p11), %v1098_v38, 60.0  ;;  %v1115_v44 = vmin.f32 (!%p1420_p11), %v1099_v39, 60.0  ;;  %1688 = vpow2.f32 (!%p1420_p11), %v1133_v29 }
 0x16d   : > { %1044 = vst [vmem:[#allocation2 + $0x70] sm:$0xff] %v1028_v46  ;;  %v1029_v48 = vadd.f32 %v1011_v47, %v371_v45  ;;  %v1085_v36 = vadd.f32 (!%p1420_p11), %v1992_v50, %v1062_v19  ;;  %v1116_v45 = vmin.f32 (!%p1420_p11), %v1100_v40, 60.0  ;;  %1690 = vpow2.f32 (!%p1420_p11), %v1135_v34 }
 0x16e   : > { %v1139_v47 = vmul.f32 (!%p1420_p11), 1.442695, %v1114_v43  ;;  %v1063_v49 = vld [vmem:[#allocation2 + $0x68] sm:$0xff] (!%p1420_p11)  ;;  %1692 = vpow2.f32 (!%p1420_p11), %v1137_v42  ;;  %v1677_v55 = vpop.eup (!%p1420_p11), %1676 }
 0x16f   : > { %1045 = vst [vmem:[#allocation2 + $0x78] sm:$0xff] %v1029_v48  ;;  %v1101_v41 = vsub.f32 (!%p1420_p11), 0.0, %v1085_v36  ;;  %v1141_v48 = vmul.f32 (!%p1420_p11), 1.442695, %v1115_v44  ;;  %v1143_v51 = vmul.f32 (!%p1420_p11), 1.442695, %v1116_v45  ;;  %v1086_v56 = vadd.f32 (!%p1420_p11), %v1992_v50, %v1063_v49  ;;  %v1679_v57 = vpop.eup (!%p1420_p11), %1678 }
 0x170   : > { %1694 = vpow2.f32 %v1139_v47  ;;  %v1153_v58 = vadd.f32 1.0, %v1677_v55  ;;  %v1154_v61 = vadd.f32 1.0, %v1679_v57 }
 0x171   : > { %v1117_v46 = vmin.f32 %v1101_v41, 60.0  ;;  %1696 = vpow2.f32 %v1141_v48  ;;  %v1681_v60 = vpop.eup %1680  ;;  %v1102_v3 = vsub.f32 0.0, %v1086_v56 }
 0x172   : > { %1698 = vpow2.f32 %v1143_v51  ;;  %v1683_v63 = vpop.eup %1682  ;;  %v1155_v0 = vadd.f32 1.0, %v1681_v60 }
 0x173   : > { %v1145_v52 = vmul.f32 1.442695, %v1117_v46  ;;  %v1156_v2 = vadd.f32 1.0, %v1683_v63  ;;  %v1118_v13 = vmin.f32 %v1102_v3, 60.0 }
 0x174   : > { %v1064_v53 = vld [vmem:[#allocation2 + $0x70] sm:$0xff]  ;;  %v1685_v1 = vpop.eup %1684 }
 0x175   : > { %v1087_v59 = vadd.f32 %v1992_v50, %v1064_v53  ;;  %1700 = vpow2.f32 %v1145_v52  ;;  %v1687_v4 = vpop.eup %1686  ;;  %v1157_v5 = vadd.f32 1.0, %v1685_v1  ;;  %v1147_v24 = vmul.f32 1.442695, %v1118_v13 }
 0x176   : > { %v1065_v54 = vld [vmem:[#allocation2 + $0x78] sm:$0xff]  ;;  %1702 = vrcp.f32 %v1153_v58  ;;  %v1689_v7 = vpop.eup %1688  ;;  %v1158_v8 = vadd.f32 1.0, %v1687_v4 }
 0x177   : > { %v1088_v62 = vadd.f32 %v1992_v50, %v1065_v54  ;;  %1704 = vrcp.f32 %v1154_v61  ;;  %v1103_v6 = vsub.f32 0.0, %v1087_v59  ;;  %v1691_v10 = vpop.eup %1690  ;;  %v1159_v11 = vadd.f32 1.0, %v1689_v7 }
 0x178   : > { %1706 = vrcp.f32 %v1155_v0  ;;  %v1693_v12 = vpop.eup %1692  ;;  %v1160_v50 = vadd.f32 1.0, %v1691_v10 }
 0x179   : > { %1708 = vrcp.f32 %v1156_v2  ;;  %v1104_v9 = vsub.f32 0.0, %v1088_v62  ;;  %v1161_v15 = vadd.f32 1.0, %v1693_v12  ;;  %v1119_v16 = vmin.f32 %v1103_v6, 60.0 }
 0x17a   : > { %1710 = vrcp.f32 %v1157_v5  ;;  %v1695_v14 = vpop.eup %1694 }
 0x17b   : > { %1712 = vrcp.f32 %v1158_v8  ;;  %v1697_v17 = vpop.eup %1696  ;;  %v1162_v18 = vadd.f32 1.0, %v1695_v14  ;;  %v1120_v19 = vmin.f32 %v1104_v9, 60.0  ;;  %v1149_v27 = vmul.f32 1.442695, %v1119_v16 }
 0x17c   : > { %1714 = vrcp.f32 %v1159_v11  ;;  %v1699_v20 = vpop.eup %1698  ;;  %v1163_v21 = vadd.f32 1.0, %v1697_v17 }
 0x17d   : > { %1716 = vrcp.f32 %v1160_v50  ;;  %v1164_v23 = vadd.f32 1.0, %v1699_v20  ;;  %v1151_v30 = vmul.f32 1.442695, %v1120_v19 }
 0x17e   : > { %1718 = vrcp.f32 %v1161_v15 }
 0x17f   : > { %v1701_v22 = vpop.eup %1700  ;;  %1720 = vrcp.f32 %v1162_v18 }
 0x180   : > { %v1703_v25 = vpop.eup %1702  ;;  %1722 = vrcp.f32 %v1163_v21  ;;  %v1165_v26 = vadd.f32 1.0, %v1701_v22 }
 0x181   : > { %v1705_v28 = vpop.eup %1704  ;;  %v1185_v29 = vmax.f32 %v1703_v25, 0.0  ;;  %1724 = vrcp.f32 %v1164_v23 }
 0x182   : > { %v1707_v31 = vpop.eup %1706  ;;  %v1186_v32 = vmax.f32 %v1705_v28, 0.0  ;;  %1726 = vrcp.f32 %v1165_v26 }
 0x183   : > { %v1709_v33 = vpop.eup %1708  ;;  %v1201_v34 = vmin.f32 %v1185_v29, 1.0  ;;  %v1187_v35 = vmax.f32 %v1707_v31, 0.0  ;;  %1728 = vpow2.f32 %v1147_v24 }
 0x184   : > { %v1711_v36 = vpop.eup %1710  ;;  %v1202_v37 = vmin.f32 %v1186_v32, 1.0  ;;  %v1188_v38 = vmax.f32 %v1709_v33, 0.0  ;;  %1730 = vpow2.f32 %v1149_v27 }
 0x185   : > { %v1713_v39 = vpop.eup %1712  ;;  %1217 = vst [vmem:[%s2076_s3] sm:$0xff] %v1201_v34  ;;  %v1203_v40 = vmin.f32 %v1187_v35, 1.0  ;;  %v1189_v41 = vmax.f32 %v1711_v36, 0.0  ;;  %1732 = vpow2.f32 %v1151_v30 }
 0x186   : > { %v1715_v42 = vpop.eup %1714  ;;  %1218 = vst [vmem:[%s2076_s3 + $0x8] sm:$0xff] %v1202_v37  ;;  %v1204_v43 = vmin.f32 %v1188_v38, 1.0  ;;  %v1190_v44 = vmax.f32 %v1713_v39, 0.0 }
 0x187   : > { %v1717_v45 = vpop.eup %1716  ;;  %1219 = vst [vmem:[%s2076_s3 + $0x10] sm:$0xff] %v1203_v40  ;;  %v1205_v46 = vmin.f32 %v1189_v41, 1.0  ;;  %v1191_v47 = vmax.f32 %v1715_v42, 0.0 }
 0x188   : > { %v1719_v48 = vpop.eup %1718  ;;  %1220 = vst [vmem:[%s2076_s3 + $0x18] sm:$0xff] %v1204_v43  ;;  %v1206_v49 = vmin.f32 %v1190_v44, 1.0  ;;  %v1192_v51 = vmax.f32 %v1717_v45, 0.0 }
 0x189   : > { %v1721_v52 = vpop.eup %1720  ;;  %1221 = vst [vmem:[%s2076_s3 + $0x20] sm:$0xff] %v1205_v46  ;;  %v1207_v53 = vmin.f32 %v1191_v47, 1.0  ;;  %v1193_v54 = vmax.f32 %v1719_v48, 0.0 }
 0x18a   : > { %v1723_v55 = vpop.eup %1722  ;;  %1222 = vst [vmem:[%s2076_s3 + $0x28] sm:$0xff] %v1206_v49  ;;  %v1208_v56 = vmin.f32 %v1192_v51, 1.0  ;;  %v1194_v57 = vmax.f32 %v1721_v52, 0.0 }
 0x18b   : > { %v1725_v58 = vpop.eup %1724  ;;  %1223 = vst [vmem:[%s2076_s3 + $0x30] sm:$0xff] %v1207_v53  ;;  %v1209_v59 = vmin.f32 %v1193_v54, 1.0  ;;  %v1195_v60 = vmax.f32 %v1723_v55, 0.0 }
 0x18c   : > { %v1727_v61 = vpop.eup %1726  ;;  %1224 = vst [vmem:[%s2076_s3 + $0x38] sm:$0xff] %v1208_v56  ;;  %v1210_v62 = vmin.f32 %v1194_v57, 1.0  ;;  %v1196_v63 = vmax.f32 %v1725_v58, 0.0 }
 0x18d   : > { %v1729_v0 = vpop.eup %1728  ;;  %1225 = vst [vmem:[%s2076_s3 + $0x40] sm:$0xff] %v1209_v59  ;;  %v1211_v1 = vmin.f32 %v1195_v60, 1.0  ;;  %v1197_v2 = vmax.f32 %v1727_v61, 0.0 }
 0x18e   : > { %v1731_v3 = vpop.eup %1730  ;;  %1226 = vst [vmem:[%s2076_s3 + $0x48] sm:$0xff] %v1210_v62  ;;  %v1212_v4 = vmin.f32 %v1196_v63, 1.0  ;;  %v1166_v5 = vadd.f32 1.0, %v1729_v0 }
 0x18f   : > { %v1733_v6 = vpop.eup %1732  ;;  %1227 = vst [vmem:[%s2076_s3 + $0x50] sm:$0xff] %v1211_v1  ;;  %v1213_v7 = vmin.f32 %v1197_v2, 1.0  ;;  %v1167_v8 = vadd.f32 1.0, %v1731_v3 }
 0x190   : > { %1228 = vst [vmem:[%s2076_s3 + $0x58] sm:$0xff] %v1212_v4  ;;  %1734 = vrcp.f32 %v1166_v5  ;;  %v1168_v9 = vadd.f32 1.0, %v1733_v6 }
 0x191   : > { %1229 = vst [vmem:[%s2076_s3 + $0x60] sm:$0xff] %v1213_v7  ;;  %1736 = vrcp.f32 %v1167_v8 }
 0x192   : > { %1738 = vrcp.f32 %v1168_v9 }
 0x19a   : > { %v1735_v10 = vpop.eup %1734 }
 0x19b   : > { %v1737_v11 = vpop.eup %1736  ;;  %v1198_v12 = vmax.f32 %v1735_v10, 0.0 }
 0x19c   : > { %v1739_v50 = vpop.eup %1738  ;;  %v1199_v13 = vmax.f32 %v1737_v11, 0.0 }
 0x19d   : > { %v1214_v14 = vmin.f32 %v1198_v12, 1.0  ;;  %v1200_v15 = vmax.f32 %v1739_v50, 0.0 }
 0x19e   : > { %v1215_v16 = vmin.f32 %v1199_v13, 1.0 }
 0x19f   : > { %1230 = vst [vmem:[%s2076_s3 + $0x68] sm:$0xff] %v1214_v14  ;;  %v1216_v17 = vmin.f32 %v1200_v15, 1.0 }
 0x1a0   : > { %1231 = vst [vmem:[%s2076_s3 + $0x70] sm:$0xff] %v1215_v16 }
 0x1a1   : > { %1232 = vst [vmem:[%s2076_s3 + $0x78] sm:$0xff] %v1216_v17 }
 0x1a2 PF: > { %s13_s16 = sadd.s32 1, %s1778_s16   ;;  %s2077_s12 = smov %s1766_s13 }
 0x1a3   : > { %p10_p12 = scmp.ge.s32.totalorder %s13_s16, 4   ;;  %s2078_s13 = smov %s1836_s20 }
 0x1a4   : > { %s2079_s14 = smov %s1774_s15  ;;  %s2080_s15 = smov %s2082_s17 }
 0x1a5   :  { %12 = sbr.rel (!%p10_p12) target bundleno = 3 (0x3), region = 104 }

</bundles_post_ra>
